<compile_context>
chip_gen: v7x
topology: tpu7x:2x2x1
jax: 0.10.0
libtpu: 0.0.40
codegen_flags: <defaults>
</compile_context>

<pallas_src>
import functools

import jax
import jax.numpy as jnp
from jax import lax
from jax.experimental import pallas as pl
from jax.experimental.pallas import tpu as pltpu


MXU_DTYPE = jnp.bfloat16      # MXU operand dtype; accumulation/epilogue stay f32
ACT_DTYPE = jnp.bfloat16      # inter-layer activation dtype (halves HBM traffic vs f32)


# ----------------------------------------------------------------------------
# Small helpers
# ----------------------------------------------------------------------------
def _round_up(v, m):
    return ((v + m - 1) // m) * m


@functools.lru_cache(maxsize=None)
def _vmem_limit_bytes():
    """Scoped-VMEM request: generous on 128-MiB v5e/v6e, conservative on 64-MiB v7x."""
    try:
        cap = int(pltpu.get_tpu_info().vmem_capacity_bytes)
    except Exception:
        cap = 64 << 20
    return min(96 << 20, max(32 << 20, cap - (32 << 20)))


def _elu(x):
    # ELU(alpha=1).  exp(min(x,0)) keeps the untaken branch finite; <=1 ulp vs expm1.
    return jnp.where(x > 0, x, jnp.exp(jnp.minimum(x, 0.0)) - 1.0)


def _pick_tm(M, K, cout_pad):
    """Lane tile for M = N*H*W: a 128-multiple divisor of M, capped so the double-buffered
    blocks stay well inside VMEM, preferring >=2 grid steps so both v7x cores get work."""
    if M % 128 != 0:
        return M                                   # tiny/odd extents: one full-width tile
    budget = 24 << 20
    tm = 128
    for cand in (256, 512, 1024, 2048):
        if M % cand != 0:
            continue
        if cand >= M:                              # keep >= 2 steps on the parallel axis
            break
        if 2 * cand * (2 * K + 4 * cout_pad) + 2 * cout_pad * K > budget:
            break
        tm = cand
    return tm


# ----------------------------------------------------------------------------
# Pallas kernel 1: single conv as matmul + bias (+ ELU) (+ folded BatchNorm)
# ----------------------------------------------------------------------------
def _epilogue(acc, aux_ref, o_ref, apply_elu, apply_bn):
    acc = acc + aux_ref[:, 0:1]                    # bias (broadcast over lanes)
    if apply_elu:
        acc = _elu(acc)
    if apply_bn:
        acc = acc * aux_ref[:, 1:2] + aux_ref[:, 2:3]   # folded BatchNorm(eval)
    o_ref[...] = acc.astype(o_ref.dtype)


def _make_conv_kernel(apply_elu, apply_bn, multi_k):
    if multi_k:
        def kernel(w_ref, p_ref, aux_ref, o_ref, acc_ref):
            @pl.when(pl.program_id(1) == 0)
            def _():
                acc_ref[...] = jnp.zeros_like(acc_ref)
            acc_ref[...] += jnp.dot(w_ref[...], p_ref[...],
                                    preferred_element_type=jnp.float32)

            @pl.when(pl.program_id(1) == pl.num_programs(1) - 1)
            def _():
                _epilogue(acc_ref[...], aux_ref, o_ref, apply_elu, apply_bn)
    else:
        def kernel(w_ref, p_ref, aux_ref, o_ref):
            acc = jnp.dot(w_ref[...], p_ref[...], preferred_element_type=jnp.float32)
            _epilogue(acc, aux_ref, o_ref, apply_elu, apply_bn)
    return kernel


def conv_matmul(wmat, patches, aux, *, apply_elu, apply_bn, out_dtype):
    """out = bn?(elu?(wmat @ patches + bias)).

    wmat: (Cout_pad, K) bf16, patches: (K, M) bf16, aux: (Cout_pad, 3) f32.
    Returns (Cout_pad, M) out_dtype with M = N*H*W lane-dense.
    """
    cout_pad, K = wmat.shape
    M = patches.shape[1]
    patches = patches.astype(MXU_DTYPE)            # no-op when already bf16
    TM = _pick_tm(M, K, cout_pad)
    # K-reduction axis only for very deep contractions (dormant at demo channel counts).
    TK = 512 if (K >= 4096 and K % 512 == 0) else K
    multi_k = TK != K
    grid = (M // TM, K // TK)

    out_isz = jnp.dtype(out_dtype).itemsize
    cost = pl.CostEstimate(
        flops=int(2 * cout_pad * K * M),
        transcendentals=int(cout_pad * M if apply_elu else 0),
        bytes_accessed=int(wmat.size * 2 + patches.size * 2 + aux.size * 4
                           + cout_pad * M * out_isz))
    scratch = [pltpu.VMEM((cout_pad, TM), jnp.float32)] if multi_k else []

    return pl.pallas_call(
        _make_conv_kernel(apply_elu, apply_bn, multi_k),
        out_shape=jax.ShapeDtypeStruct((cout_pad, M), out_dtype),
        grid=grid,
        in_specs=[
            pl.BlockSpec((cout_pad, TK), lambda j, k: (0, k)),
            pl.BlockSpec((TK, TM), lambda j, k: (k, j)),
            pl.BlockSpec((cout_pad, 3), lambda j, k: (0, 0)),
        ],
        out_specs=pl.BlockSpec((cout_pad, TM), lambda j, k: (0, j)),
        scratch_shapes=scratch,
        compiler_params=pltpu.CompilerParams(
            dimension_semantics=("parallel", "arbitrary"),
            vmem_limit_bytes=_vmem_limit_bytes()),
        cost_estimate=cost,
    )(wmat, patches, aux)


# ----------------------------------------------------------------------------
# Pallas kernel 2: fused ConvBlock('cancan') = (conv+ELU+BN) x 2 in one call
# ----------------------------------------------------------------------------
def _make_cancan_kernel(w_img):
    offsets = [(dh, dw) for dh in (-1, 0, 1) for dw in (-1, 0, 1)]   # (kh,kw) row-major

    def kernel(w1_ref, aux1_ref, w2_ref, aux2_ref, msk_ref, p_ref, o_ref):
        # ---- conv1 + bias + ELU + BN (im2col panel built by the wrapper) -------------
        y = jnp.dot(w1_ref[...], p_ref[...], preferred_element_type=jnp.float32)
        y = y + aux1_ref[:, 0:1]
        y = _elu(y)
        y = y * aux1_ref[:, 1:2] + aux1_ref[:, 2:3]
        y = y.astype(MXU_DTYPE)                    # (f1_pad, M); padded rows are exactly 0
        # ---- conv2's 3x3 gather stays in VMEM: 9 lane-shifted, boundary-masked taps ---
        taps = []
        for t, (dh, dw) in enumerate(offsets):
            off = dh * w_img + dw                  # lane offset of tap (dh, dw)
            if off == 0:
                taps.append(y)                     # centre tap: mask is all-ones
                continue
            # circular lane shift (== jnp.roll(y, -off, axis=1)); wrapped lanes masked.
            sh = jnp.concatenate([y[:, off:], y[:, :off]], axis=1)
            taps.append(sh * msk_ref[t:t + 1, :])
        panel2 = jnp.concatenate(taps, axis=0)     # (9*f1_pad, M) bf16
        # ---- conv2 + bias + ELU + BN ---------------------------------------------------
        acc = jnp.dot(w2_ref[...], panel2, preferred_element_type=jnp.float32)
        acc = acc + aux2_ref[:, 0:1]
        acc = _elu(acc)
        acc = acc * aux2_ref[:, 1:2] + aux2_ref[:, 2:3]
        o_ref[...] = acc.astype(o_ref.dtype)

    return kernel


def _boundary_masks(n, h, w):
    """(9, n*h*w) {0,1} bf16 masks: tap (dh, dw) valid iff (h+dh, w+dw) is inside the image."""
    hh = jnp.arange(h)[:, None]
    ww = jnp.arange(w)[None, :]
    rows = []
    for dh in (-1, 0, 1):
        for dw in (-1, 0, 1):
            m = ((hh + dh >= 0) & (hh + dh < h) & (ww + dw >= 0) & (ww + dw < w))
            rows.append(jnp.tile(m.reshape(-1), (n,)))          # lane order (n, h, w)
    return jnp.stack(rows, axis=0).astype(MXU_DTYPE)            # constant-folded by XLA


# ----------------------------------------------------------------------------
# XLA glue: im2col on (C, N, H, W), pooling, conv wrappers
# ----------------------------------------------------------------------------
def _im2col(xp, h_out, w_out, k):
    """(C, N, Hp, Wp) -> (k*k*C, N*h_out*w_out); rows ordered (kh, kw, cin), lanes (n, h, w)."""
    c, n = xp.shape[0], xp.shape[1]
    cols = [lax.slice(xp, (0, 0, di, dj), (c, n, di + h_out, dj + w_out))
            for di in range(k) for dj in range(k)]
    return jnp.concatenate(cols, axis=0).reshape(k * k * c, n * h_out * w_out)


def conv3x3_same(x, p, *, apply_elu, apply_bn, out_dtype):
    """Conv2d(k=3, stride=1, padding='same') + optional ELU + optional folded BN."""
    _, n, h, w = x.shape
    xp = jnp.pad(x, ((0, 0), (0, 0), (1, 1), (1, 1)))
    patches = _im2col(xp, h, w, 3)
    out = conv_matmul(p["wmat"], patches, p["aux"],
                      apply_elu=apply_elu, apply_bn=apply_bn, out_dtype=out_dtype)
    cout = p["cout"]
    return out[:cout].reshape(cout, n, h, w)       # already the (C, N, H, W) layout: free


def cancan_block(x, p1, p2):
    """ConvBlock('cancan') fused into one pallas_call (intermediate stays in VMEM)."""
    cin, n, h, w = x.shape
    M = n * h * w
    f1_pad = p1["wmat"].shape[0]
    f2_pad = p2["wmat"].shape[0]
    K1 = 9 * cin
    # In-kernel footprint estimate (panel, intermediate, taps, accumulator); fused path
    # needs the whole image in one block (no halo handling yet).
    est = (K1 * M + 9 * f1_pad * M + f2_pad * M) * 2 + f1_pad * M * 6 + f2_pad * M * 4
    if est > (20 << 20):
        # TODO(synk): halo exchange for spatially-tiled fused blocks; fall back to 2 calls.
        y = conv3x3_same(x, p1, apply_elu=True, apply_bn=True, out_dtype=ACT_DTYPE)
        return conv3x3_same(y, p2, apply_elu=True, apply_bn=True, out_dtype=ACT_DTYPE)

    xp = jnp.pad(x, ((0, 0), (0, 0), (1, 1), (1, 1)))
    patches = _im2col(xp, h, w, 3)                 # (9*cin, M) bf16
    masks = _boundary_masks(n, h, w)               # (9, M) bf16 constants
    cost = pl.CostEstimate(
        flops=int(2 * M * (f1_pad * K1 + f2_pad * 9 * f1_pad)),
        transcendentals=int((f1_pad + f2_pad) * M),
        bytes_accessed=int((p1["wmat"].size + p2["wmat_f"].size + patches.size
                            + masks.size + f2_pad * M) * 2
                           + (p1["aux"].size + p2["aux"].size) * 4))
    out = pl.pallas_call(
        _make_cancan_kernel(w),
        out_shape=jax.ShapeDtypeStruct((f2_pad, M), ACT_DTYPE),
        grid=(1,),
        in_specs=[
            pl.BlockSpec((f1_pad, K1), lambda i: (0, 0)),
            pl.BlockSpec((f1_pad, 3), lambda i: (0, 0)),
            pl.BlockSpec((f2_pad, 9 * f1_pad), lambda i: (0, 0)),
            pl.BlockSpec((f2_pad, 3), lambda i: (0, 0)),
            pl.BlockSpec((9, M), lambda i: (0, 0)),
            pl.BlockSpec((K1, M), lambda i: (0, 0)),
        ],
        out_specs=pl.BlockSpec((f2_pad, M), lambda i: (0, 0)),
        compiler_params=pltpu.CompilerParams(
            dimension_semantics=("arbitrary",),
            vmem_limit_bytes=_vmem_limit_bytes()),
        cost_estimate=cost,
    )(p1["wmat"], p1["aux"], p2["wmat_f"], p2["aux"], masks, patches)
    cout = p2["cout"]
    return out[:cout].reshape(cout, n, h, w)


def conv_transpose3x3_s2(x, p, *, apply_elu):
    """ConvTranspose2d(C, C, 3, stride=2, padding=1, output_padding=1) (+ ELU).

    4-phase sub-convolution: one stacked matmul over a 2x2-tap panel (no interior zeros),
    then interleave the phases into the (2H, 2W) output.
    """
    _, n, h, w = x.shape
    cout = p["cout"]
    xp = jnp.pad(x, ((0, 0), (0, 0), (0, 1), (0, 1)))          # one trailing zero row/col
    patches = _im2col(xp, h, w, 2)                              # (4*cin, n*h*w)
    out = conv_matmul(p["wmat"], patches, p["aux"],
                      apply_elu=apply_elu, apply_bn=False, out_dtype=ACT_DTYPE)
    out = out[:4 * cout].reshape(2, 2, cout, n, h, w)           # (r, s, co, n, p, q)
    return out.transpose(2, 3, 4, 0, 5, 1).reshape(cout, n, 2 * h, 2 * w)


def maxpool2x2(x):
    # MaxPool2d((2,2),(2,2)) on the (C, N, H, W) layout; fuses into the next conv's im2col.
    c, n, h, w = x.shape
    return x.reshape(c, n, h // 2, 2, w // 2, 2).max(axis=(3, 5))


# ----------------------------------------------------------------------------
# Deterministic parameter construction (weights packed once for the kernels)
# ----------------------------------------------------------------------------
def _bn_fold(keys, cout, bn, eps):
    if not bn:
        return jnp.ones((cout,), jnp.float32), jnp.zeros((cout,), jnp.float32)
    gamma = 1.0 + 0.1 * jax.random.normal(keys[0], (cout,), jnp.float32)
    beta = 0.1 * jax.random.normal(keys[1], (cout,), jnp.float32)
    rmean = 0.1 * jax.random.normal(keys[2], (cout,), jnp.float32)
    rvar = 1.0 + 0.1 * jnp.abs(jax.random.normal(keys[3], (cout,), jnp.float32))
    scale = gamma / jnp.sqrt(rvar + eps)            # BatchNorm2d(eval) folded once
    shift = beta - rmean * scale
    return scale, shift


def _pack_conv(key, cin, cout, k=3, bn=True, fused=False, eps=1e-5):
    """Packed Conv2d: wmat (Cout_pad, k*k*cin) bf16, aux (Cout_pad, 3) f32 = [b, scale, shift].
    fused=True additionally emits wmat_f with cin padded (for the in-kernel second conv)."""
    ks = jax.random.split(key, 6)
    fan_in = k * k * cin
    w = jax.random.normal(ks[0], (cout, cin, k, k), jnp.float32) / jnp.sqrt(fan_in)
    b = 0.05 * jax.random.normal(ks[1], (cout,), jnp.float32)
    scale, shift = _bn_fold(ks[2:6], cout, bn, eps)
    cpad = _round_up(cout, 16)                      # bf16 sublane packing
    wk = w.transpose(0, 2, 3, 1)                    # (cout, kh, kw, cin)
    wmat = jnp.pad(wk.reshape(cout, k * k * cin),
                   ((0, cpad - cout), (0, 0))).astype(MXU_DTYPE)
    aux = jnp.pad(jnp.stack([b, scale, shift], axis=1),
                  ((0, cpad - cout), (0, 0))).astype(jnp.float32)
    out = {"wmat": wmat, "aux": aux, "cout": cout}
    if fused:
        cin_pad = _round_up(cin, 16)
        wf = jnp.pad(wk, ((0, cpad - cout), (0, 0), (0, 0), (0, cin_pad - cin)))
        out["wmat_f"] = wf.reshape(cpad, k * k * cin_pad).astype(MXU_DTYPE)
    return out


def _pack_conv_transpose(key, c, k=3):
    """ConvTranspose2d(c, c, 3, stride=2, padding=1, output_padding=1) packed as the
    4-phase stacked matmul.  Rows = (r, s, cout), cols = (a, b, cin); the coefficient of
    x[ci, p+a, q+b] in y[co, 2p+r, 2q+s] is W_t[ci, co, r+1-2a, s+1-2b] (0 when outside)."""
    ks = jax.random.split(key, 2)
    wt = jax.random.normal(ks[0], (c, c, k, k), jnp.float32) / jnp.sqrt(k * k * c)
    b = 0.05 * jax.random.normal(ks[1], (c,), jnp.float32)
    phase_rows = []
    for r in range(2):
        for s in range(2):
            cols = []
            for a in range(2):
                for bb in range(2):
                    kh, kw = r + 1 - 2 * a, s + 1 - 2 * bb
                    if 0 <= kh < k and 0 <= kw < k:
                        cols.append(wt[:, :, kh, kw].T)          # (cout, cin)
                    else:
                        cols.append(jnp.zeros((c, c), jnp.float32))
            phase_rows.append(jnp.concatenate(cols, axis=1))     # (cout, 4*cin)
    wmat = jnp.concatenate(phase_rows, axis=0)                   # (4*cout, 4*cin)
    rows = 4 * c
    rpad = _round_up(rows, 16)
    wmat = jnp.pad(wmat, ((0, rpad - rows), (0, 0))).astype(MXU_DTYPE)
    aux = jnp.stack([jnp.tile(b, 4), jnp.ones((rows,), jnp.float32),
                     jnp.zeros((rows,), jnp.float32)], axis=1)
    aux = jnp.pad(aux, ((0, rpad - rows), (0, 0))).astype(jnp.float32)
    return {"wmat": wmat, "aux": aux, "cout": c}


def init_unet_params(key, in_channels, depth, init_filters, out_filters=1):
    keys = iter(jax.random.split(key, 4 * depth + 8))
    params = {"down": [], "up": []}
    c = in_channels
    for d in range(depth):                           # ConvBlock('cancan', c, f) per level
        f = init_filters * 2 ** d
        params["down"].append({
            "c1": _pack_conv(next(keys), c, f, bn=True),
            "c2": _pack_conv(next(keys), f, f, bn=True, fused=True),
        })
        c = f
    f = init_filters * 2 ** depth                    # bottom ConvBlock('cancan', c, f)
    params["bottom"] = {"c1": _pack_conv(next(keys), c, f, bn=True),
                        "c2": _pack_conv(next(keys), f, f, bn=True, fused=True)}
    c = f
    for d in range(depth - 1, -1, -1):               # Up(layout, c, f)
        f = init_filters * 2 ** d
        params["up"].append({
            "t": _pack_conv_transpose(next(keys), c),                     # ConvBlock('tad')
            "c1": _pack_conv(next(keys), 3 * f, f, bn=True),              # ConvBlock('cancan')
            "c2": _pack_conv(next(keys), f, f, bn=True, fused=True),
        })
        c = f
    params["out"] = _pack_conv(next(keys), c, out_filters, bn=False)      # ConvBlock('c')
    return params


# ----------------------------------------------------------------------------
# U-Net forward (inference mode)
# ----------------------------------------------------------------------------
def unet_forward(params, x):
    """PyTorch-layout NCHW in / NCHW out.  Eval mode: BN running stats, Dropout2d = identity."""
    h = jnp.transpose(x, (1, 0, 2, 3)).astype(ACT_DTYPE)    # single relayout to (C, N, H, W)
    skips = []
    for lvl in params["down"]:
        h = cancan_block(h, lvl["c1"], lvl["c2"])
        skips.append(h)
        h = maxpool2x2(h)              # ConvBlock('pd'): MaxPool2d + Dropout2d(identity)
    h = cancan_block(h, params["bottom"]["c1"], params["bottom"]["c2"])
    for i, up in enumerate(params["up"]):
        y = skips[len(skips) - 1 - i]                                   # skip connection
        u = conv_transpose3x3_s2(h, up["t"], apply_elu=True)            # ConvBlock('tad')
        h = jnp.concatenate([u, y], axis=0)                             # torch.cat(dim=1)
        h = cancan_block(h, up["c1"], up["c2"])
    # output ConvBlock(layout='c'): plain conv, no activation / norm, f32 result
    out = conv3x3_same(h, params["out"], apply_elu=False, apply_bn=False,
                       out_dtype=jnp.float32)
    return jnp.transpose(out, (1, 0, 2, 3))                             # back to NCHW


if __name__ == "__main__":
    key = jax.random.PRNGKey(0)
    kp, kx = jax.random.split(key)

    in_channels, depth, init_filters, out_filters = 4, 2, 8, 1
    params = init_unet_params(kp, in_channels, depth, init_filters,
                              out_filters=out_filters)

    # PyTorch-style NCHW input
    x = jax.random.normal(kx, (2, in_channels, 16, 16), jnp.float32)

    forward = jax.jit(functools.partial(unet_forward, params))
    out = jax.block_until_ready(forward(x))

    assert out.shape == (2, out_filters, 16, 16), out.shape
    assert bool(jnp.all(jnp.isfinite(out)))
    print("KERNEL_OK")
</pallas_src>

<mosaic_0001>
module attributes {stable_mosaic.version = 11 : i64} {
  func.func @kernel(%arg0: i32, %arg1: memref<16x36xbf16, #tpu.memory_space<vmem>>, %arg2: memref<16x3xf32, #tpu.memory_space<vmem>>, %arg3: memref<16x144xbf16, #tpu.memory_space<vmem>>, %arg4: memref<16x3xf32, #tpu.memory_space<vmem>>, %arg5: memref<9x512xbf16, #tpu.memory_space<vmem>>, %arg6: memref<36x512xbf16, #tpu.memory_space<vmem>>, %arg7: memref<16x512xbf16, #tpu.memory_space<vmem>>) attributes {dimension_semantics = [#tpu.dimension_semantics<arbitrary>], iteration_bounds = array<i64: 1>, scalar_prefetch = 0 : i64, scratch_operands = 0 : i64, tpu.core_type = #tpu.core_type<tc>, window_params = [{pipeline_mode = #tpu.pipeline_mode<synchronous>, transform_indices = @transform_0, window_bounds = array<i64: 16, 36>}, {pipeline_mode = #tpu.pipeline_mode<synchronous>, transform_indices = @transform_1, window_bounds = array<i64: 16, 3>}, {pipeline_mode = #tpu.pipeline_mode<synchronous>, transform_indices = @transform_2, window_bounds = array<i64: 16, 144>}, {pipeline_mode = #tpu.pipeline_mode<synchronous>, transform_indices = @transform_3, window_bounds = array<i64: 16, 3>}, {pipeline_mode = #tpu.pipeline_mode<synchronous>, transform_indices = @transform_4, window_bounds = array<i64: 9, 512>}, {pipeline_mode = #tpu.pipeline_mode<synchronous>, transform_indices = @transform_5, window_bounds = array<i64: 36, 512>}, {pipeline_mode = #tpu.pipeline_mode<synchronous>, transform_indices = @transform_6, window_bounds = array<i64: 16, 512>}]} {
    %c0 = arith.constant 0 : index
    %c0_0 = arith.constant 0 : index
    %0 = vector.load %arg1[%c0, %c0_0] : memref<16x36xbf16, #tpu.memory_space<vmem>>, vector<16x36xbf16>
    %c0_1 = arith.constant 0 : index
    %c0_2 = arith.constant 0 : index
    %1 = vector.load %arg6[%c0_1, %c0_2] : memref<36x512xbf16, #tpu.memory_space<vmem>>, vector<36x512xbf16>
    %cst = arith.constant dense<0.000000e+00> : vector<16x512xf32>
    %2 = tpu.matmul %0, %1, %cst {dimension_numbers = #tpu.dot_dimension_numbers<[1], [0], [0], [1], [0, 0, 1, 1], [], []>} : vector<16x36xbf16>, vector<36x512xbf16>, vector<16x512xf32> -> vector<16x512xf32>
    %c0_3 = arith.constant 0 : index
    %c0_4 = arith.constant 0 : index
    %3 = vector.load %arg2[%c0_3, %c0_4] : memref<16x3xf32, #tpu.memory_space<vmem>>, vector<16x1xf32>
    %4 = vector.broadcast %3 : vector<16x1xf32> to vector<16x512xf32>
    %5 = arith.addf %2, %4 : vector<16x512xf32>
    %cst_5 = arith.constant 0.000000e+00 : f32
    %6 = vector.broadcast %cst_5 : f32 to vector<16x512xf32>
    %7 = arith.cmpf ogt, %5, %6 : vector<16x512xf32>
    %cst_6 = arith.constant 0.000000e+00 : f32
    %8 = vector.broadcast %cst_6 : f32 to vector<16x512xf32>
    %9 = arith.minimumf %5, %8 : vector<16x512xf32>
    %10 = math.exp %9 : vector<16x512xf32>
    %cst_7 = arith.constant 1.000000e+00 : f32
    %11 = vector.broadcast %cst_7 : f32 to vector<16x512xf32>
    %12 = arith.subf %10, %11 : vector<16x512xf32>
    %13 = arith.select %7, %5, %12 : vector<16x512xi1>, vector<16x512xf32>
    %c0_8 = arith.constant 0 : index
    %c1 = arith.constant 1 : index
    %14 = vector.load %arg2[%c0_8, %c1] : memref<16x3xf32, #tpu.memory_space<vmem>>, vector<16x1xf32>
    %15 = vector.broadcast %14 : vector<16x1xf32> to vector<16x512xf32>
    %16 = arith.mulf %13, %15 : vector<16x512xf32>
    %c0_9 = arith.constant 0 : index
    %c2 = arith.constant 2 : index
    %17 = vector.load %arg2[%c0_9, %c2] : memref<16x3xf32, #tpu.memory_space<vmem>>, vector<16x1xf32>
    %18 = vector.broadcast %17 : vector<16x1xf32> to vector<16x512xf32>
    %19 = arith.addf %16, %18 : vector<16x512xf32>
    %20 = arith.truncf %19 : vector<16x512xf32> to vector<16x512xbf16>
    %21 = vector.extract_strided_slice %20 {offsets = [0, 495], sizes = [16, 17], strides = [1, 1]} : vector<16x512xbf16> to vector<16x17xbf16>
    %22 = vector.extract_strided_slice %20 {offsets = [0, 0], sizes = [16, 495], strides = [1, 1]} : vector<16x512xbf16> to vector<16x495xbf16>
    %23 = tpu.concatenate %21, %22 in 1 : vector<16x17xbf16>, vector<16x495xbf16> -> vector<16x512xbf16>
    %c0_10 = arith.constant 0 : index
    %c0_11 = arith.constant 0 : index
    %24 = vector.load %arg5[%c0_10, %c0_11] : memref<9x512xbf16, #tpu.memory_space<vmem>>, vector<1x512xbf16>
    %25 = vector.broadcast %24 : vector<1x512xbf16> to vector<16x512xbf16>
    %26 = arith.mulf %23, %25 : vector<16x512xbf16>
    %27 = vector.extract_strided_slice %20 {offsets = [0, 496], sizes = [16, 16], strides = [1, 1]} : vector<16x512xbf16> to vector<16x16xbf16>
    %28 = vector.extract_strided_slice %20 {offsets = [0, 0], sizes = [16, 496], strides = [1, 1]} : vector<16x512xbf16> to vector<16x496xbf16>
    %29 = tpu.concatenate %27, %28 in 1 : vector<16x16xbf16>, vector<16x496xbf16> -> vector<16x512xbf16>
    %c1_12 = arith.constant 1 : index
    %c0_13 = arith.constant 0 : index
    %30 = vector.load %arg5[%c1_12, %c0_13] : memref<9x512xbf16, #tpu.memory_space<vmem>>, vector<1x512xbf16>
    %31 = vector.broadcast %30 : vector<1x512xbf16> to vector<16x512xbf16>
    %32 = arith.mulf %29, %31 : vector<16x512xbf16>
    %33 = vector.extract_strided_slice %20 {offsets = [0, 497], sizes = [16, 15], strides = [1, 1]} : vector<16x512xbf16> to vector<16x15xbf16>
    %34 = vector.extract_strided_slice %20 {offsets = [0, 0], sizes = [16, 497], strides = [1, 1]} : vector<16x512xbf16> to vector<16x497xbf16>
    %35 = tpu.concatenate %33, %34 in 1 : vector<16x15xbf16>, vector<16x497xbf16> -> vector<16x512xbf16>
    %c2_14 = arith.constant 2 : index
    %c0_15 = arith.constant 0 : index
    %36 = vector.load %arg5[%c2_14, %c0_15] : memref<9x512xbf16, #tpu.memory_space<vmem>>, vector<1x512xbf16>
    %37 = vector.broadcast %36 : vector<1x512xbf16> to vector<16x512xbf16>
    %38 = arith.mulf %35, %37 : vector<16x512xbf16>
    %39 = vector.extract_strided_slice %20 {offsets = [0, 511], sizes = [16, 1], strides = [1, 1]} : vector<16x512xbf16> to vector<16x1xbf16>
    %40 = vector.extract_strided_slice %20 {offsets = [0, 0], sizes = [16, 511], strides = [1, 1]} : vector<16x512xbf16> to vector<16x511xbf16>
    %41 = tpu.concatenate %39, %40 in 1 : vector<16x1xbf16>, vector<16x511xbf16> -> vector<16x512xbf16>
    %c3 = arith.constant 3 : index
    %c0_16 = arith.constant 0 : index
    %42 = vector.load %arg5[%c3, %c0_16] : memref<9x512xbf16, #tpu.memory_space<vmem>>, vector<1x512xbf16>
    %43 = vector.broadcast %42 : vector<1x512xbf16> to vector<16x512xbf16>
    %44 = arith.mulf %41, %43 : vector<16x512xbf16>
    %45 = vector.extract_strided_slice %20 {offsets = [0, 1], sizes = [16, 511], strides = [1, 1]} : vector<16x512xbf16> to vector<16x511xbf16>
    %46 = vector.extract_strided_slice %20 {offsets = [0, 0], sizes = [16, 1], strides = [1, 1]} : vector<16x512xbf16> to vector<16x1xbf16>
    %47 = tpu.concatenate %45, %46 in 1 : vector<16x511xbf16>, vector<16x1xbf16> -> vector<16x512xbf16>
    %c5 = arith.constant 5 : index
    %c0_17 = arith.constant 0 : index
    %48 = vector.load %arg5[%c5, %c0_17] : memref<9x512xbf16, #tpu.memory_space<vmem>>, vector<1x512xbf16>
    %49 = vector.broadcast %48 : vector<1x512xbf16> to vector<16x512xbf16>
    %50 = arith.mulf %47, %49 : vector<16x512xbf16>
    %51 = vector.extract_strided_slice %20 {offsets = [0, 15], sizes = [16, 497], strides = [1, 1]} : vector<16x512xbf16> to vector<16x497xbf16>
    %52 = vector.extract_strided_slice %20 {offsets = [0, 0], sizes = [16, 15], strides = [1, 1]} : vector<16x512xbf16> to vector<16x15xbf16>
    %53 = tpu.concatenate %51, %52 in 1 : vector<16x497xbf16>, vector<16x15xbf16> -> vector<16x512xbf16>
    %c6 = arith.constant 6 : index
    %c0_18 = arith.constant 0 : index
    %54 = vector.load %arg5[%c6, %c0_18] : memref<9x512xbf16, #tpu.memory_space<vmem>>, vector<1x512xbf16>
    %55 = vector.broadcast %54 : vector<1x512xbf16> to vector<16x512xbf16>
    %56 = arith.mulf %53, %55 : vector<16x512xbf16>
    %57 = vector.extract_strided_slice %20 {offsets = [0, 16], sizes = [16, 496], strides = [1, 1]} : vector<16x512xbf16> to vector<16x496xbf16>
    %58 = vector.extract_strided_slice %20 {offsets = [0, 0], sizes = [16, 16], strides = [1, 1]} : vector<16x512xbf16> to vector<16x16xbf16>
    %59 = tpu.concatenate %57, %58 in 1 : vector<16x496xbf16>, vector<16x16xbf16> -> vector<16x512xbf16>
    %c7 = arith.constant 7 : index
    %c0_19 = arith.constant 0 : index
    %60 = vector.load %arg5[%c7, %c0_19] : memref<9x512xbf16, #tpu.memory_space<vmem>>, vector<1x512xbf16>
    %61 = vector.broadcast %60 : vector<1x512xbf16> to vector<16x512xbf16>
    %62 = arith.mulf %59, %61 : vector<16x512xbf16>
    %63 = vector.extract_strided_slice %20 {offsets = [0, 17], sizes = [16, 495], strides = [1, 1]} : vector<16x512xbf16> to vector<16x495xbf16>
    %64 = vector.extract_strided_slice %20 {offsets = [0, 0], sizes = [16, 17], strides = [1, 1]} : vector<16x512xbf16> to vector<16x17xbf16>
    %65 = tpu.concatenate %63, %64 in 1 : vector<16x495xbf16>, vector<16x17xbf16> -> vector<16x512xbf16>
    %c8 = arith.constant 8 : index
    %c0_20 = arith.constant 0 : index
    %66 = vector.load %arg5[%c8, %c0_20] : memref<9x512xbf16, #tpu.memory_space<vmem>>, vector<1x512xbf16>
    %67 = vector.broadcast %66 : vector<1x512xbf16> to vector<16x512xbf16>
    %68 = arith.mulf %65, %67 : vector<16x512xbf16>
    %69 = tpu.concatenate %26, %32, %38, %44, %20, %50, %56, %62, %68 in 0 : vector<16x512xbf16>, vector<16x512xbf16>, vector<16x512xbf16>, vector<16x512xbf16>, vector<16x512xbf16>, vector<16x512xbf16>, vector<16x512xbf16>, vector<16x512xbf16>, vector<16x512xbf16> -> vector<144x512xbf16>
    %c0_21 = arith.constant 0 : index
    %c0_22 = arith.constant 0 : index
    %70 = vector.load %arg3[%c0_21, %c0_22] : memref<16x144xbf16, #tpu.memory_space<vmem>>, vector<16x144xbf16>
    %cst_23 = arith.constant dense<0.000000e+00> : vector<16x512xf32>
    %71 = tpu.matmul %70, %69, %cst_23 {dimension_numbers = #tpu.dot_dimension_numbers<[1], [0], [0], [1], [0, 0, 1, 1], [], []>} : vector<16x144xbf16>, vector<144x512xbf16>, vector<16x512xf32> -> vector<16x512xf32>
    %c0_24 = arith.constant 0 : index
    %c0_25 = arith.constant 0 : index
    %72 = vector.load %arg4[%c0_24, %c0_25] : memref<16x3xf32, #tpu.memory_space<vmem>>, vector<16x1xf32>
    %73 = vector.broadcast %72 : vector<16x1xf32> to vector<16x512xf32>
    %74 = arith.addf %71, %73 : vector<16x512xf32>
    %cst_26 = arith.constant 0.000000e+00 : f32
    %75 = vector.broadcast %cst_26 : f32 to vector<16x512xf32>
    %76 = arith.cmpf ogt, %74, %75 : vector<16x512xf32>
    %cst_27 = arith.constant 0.000000e+00 : f32
    %77 = vector.broadcast %cst_27 : f32 to vector<16x512xf32>
    %78 = arith.minimumf %74, %77 : vector<16x512xf32>
    %79 = math.exp %78 : vector<16x512xf32>
    %cst_28 = arith.constant 1.000000e+00 : f32
    %80 = vector.broadcast %cst_28 : f32 to vector<16x512xf32>
    %81 = arith.subf %79, %80 : vector<16x512xf32>
    %82 = arith.select %76, %74, %81 : vector<16x512xi1>, vector<16x512xf32>
    %c0_29 = arith.constant 0 : index
    %c1_30 = arith.constant 1 : index
    %83 = vector.load %arg4[%c0_29, %c1_30] : memref<16x3xf32, #tpu.memory_space<vmem>>, vector<16x1xf32>
    %84 = vector.broadcast %83 : vector<16x1xf32> to vector<16x512xf32>
    %85 = arith.mulf %82, %84 : vector<16x512xf32>
    %c0_31 = arith.constant 0 : index
    %c2_32 = arith.constant 2 : index
    %86 = vector.load %arg4[%c0_31, %c2_32] : memref<16x3xf32, #tpu.memory_space<vmem>>, vector<16x1xf32>
    %87 = vector.broadcast %86 : vector<16x1xf32> to vector<16x512xf32>
    %88 = arith.addf %85, %87 : vector<16x512xf32>
    %89 = arith.truncf %88 : vector<16x512xf32> to vector<16x512xbf16>
    %c0_33 = arith.constant 0 : index
    %c0_34 = arith.constant 0 : index
    %90 = vector.load %arg7[%c0_33, %c0_34] : memref<16x512xbf16, #tpu.memory_space<vmem>>, vector<16x512xbf16>
    tpu.vector_store %arg7[%c0_33, %c0_34], %89 {strides = array<i32>} : memref<16x512xbf16, #tpu.memory_space<vmem>>, vector<16x512xbf16>,
    return
  }
  func.func @transform_0(%arg0: i32) -> (i32, i32) {
    %c0_i32 = arith.constant 0 : i32
    %c0_i32_0 = arith.constant 0 : i32
    %c0_i32_1 = arith.constant 0 : i32
    return %c0_i32, %c0_i32_0 : i32, i32
  }
  func.func @transform_1(%arg0: i32) -> (i32, i32) {
    %c0_i32 = arith.constant 0 : i32
    %c0_i32_0 = arith.constant 0 : i32
    %c0_i32_1 = arith.constant 0 : i32
    return %c0_i32, %c0_i32_0 : i32, i32
  }
  func.func @transform_2(%arg0: i32) -> (i32, i32) {
    %c0_i32 = arith.constant 0 : i32
    %c0_i32_0 = arith.constant 0 : i32
    %c0_i32_1 = arith.constant 0 : i32
    return %c0_i32, %c0_i32_0 : i32, i32
  }
  func.func @transform_3(%arg0: i32) -> (i32, i32) {
    %c0_i32 = arith.constant 0 : i32
    %c0_i32_0 = arith.constant 0 : i32
    %c0_i32_1 = arith.constant 0 : i32
    return %c0_i32, %c0_i32_0 : i32, i32
  }
  func.func @transform_4(%arg0: i32) -> (i32, i32) {
    %c0_i32 = arith.constant 0 : i32
    %c0_i32_0 = arith.constant 0 : i32
    %c0_i32_1 = arith.constant 0 : i32
    return %c0_i32, %c0_i32_0 : i32, i32
  }
  func.func @transform_5(%arg0: i32) -> (i32, i32) {
    %c0_i32 = arith.constant 0 : i32
    %c0_i32_0 = arith.constant 0 : i32
    %c0_i32_1 = arith.constant 0 : i32
    return %c0_i32, %c0_i32_0 : i32, i32
  }
  func.func @transform_6(%arg0: i32) -> (i32, i32) {
    %c0_i32 = arith.constant 0 : i32
    %c0_i32_0 = arith.constant 0 : i32
    %c0_i32_1 = arith.constant 0 : i32
    return %c0_i32, %c0_i32_0 : i32, i32
  }
}

module attributes {stable_mosaic.version = 11 : i64} {
  func.func @kernel(%arg0: i32, %arg1: memref<16x72xbf16, #tpu.memory_space<vmem>>, %arg2: memref<16x3xf32, #tpu.memory_space<vmem>>, %arg3: memref<16x144xbf16, #tpu.memory_space<vmem>>, %arg4: memref<16x3xf32, #tpu.memory_space<vmem>>, %arg5: memref<9x128xbf16, #tpu.memory_space<vmem>>, %arg6: memref<72x128xbf16, #tpu.memory_space<vmem>>, %arg7: memref<16x128xbf16, #tpu.memory_space<vmem>>) attributes {dimension_semantics = [#tpu.dimension_semantics<arbitrary>], iteration_bounds = array<i64: 1>, scalar_prefetch = 0 : i64, scratch_operands = 0 : i64, tpu.core_type = #tpu.core_type<tc>, window_params = [{pipeline_mode = #tpu.pipeline_mode<synchronous>, transform_indices = @transform_0, window_bounds = array<i64: 16, 72>}, {pipeline_mode = #tpu.pipeline_mode<synchronous>, transform_indices = @transform_1, window_bounds = array<i64: 16, 3>}, {pipeline_mode = #tpu.pipeline_mode<synchronous>, transform_indices = @transform_2, window_bounds = array<i64: 16, 144>}, {pipeline_mode = #tpu.pipeline_mode<synchronous>, transform_indices = @transform_3, window_bounds = array<i64: 16, 3>}, {pipeline_mode = #tpu.pipeline_mode<synchronous>, transform_indices = @transform_4, window_bounds = array<i64: 9, 128>}, {pipeline_mode = #tpu.pipeline_mode<synchronous>, transform_indices = @transform_5, window_bounds = array<i64: 72, 128>}, {pipeline_mode = #tpu.pipeline_mode<synchronous>, transform_indices = @transform_6, window_bounds = array<i64: 16, 128>}]} {
    %c0 = arith.constant 0 : index
    %c0_0 = arith.constant 0 : index
    %0 = vector.load %arg1[%c0, %c0_0] : memref<16x72xbf16, #tpu.memory_space<vmem>>, vector<16x72xbf16>
    %c0_1 = arith.constant 0 : index
    %c0_2 = arith.constant 0 : index
    %1 = vector.load %arg6[%c0_1, %c0_2] : memref<72x128xbf16, #tpu.memory_space<vmem>>, vector<72x128xbf16>
    %cst = arith.constant dense<0.000000e+00> : vector<16x128xf32>
    %2 = tpu.matmul %0, %1, %cst {dimension_numbers = #tpu.dot_dimension_numbers<[1], [0], [0], [1], [0, 0, 1, 1], [], []>} : vector<16x72xbf16>, vector<72x128xbf16>, vector<16x128xf32> -> vector<16x128xf32>
    %c0_3 = arith.constant 0 : index
    %c0_4 = arith.constant 0 : index
    %3 = vector.load %arg2[%c0_3, %c0_4] : memref<16x3xf32, #tpu.memory_space<vmem>>, vector<16x1xf32>
    %4 = vector.broadcast %3 : vector<16x1xf32> to vector<16x128xf32>
    %5 = arith.addf %2, %4 : vector<16x128xf32>
    %cst_5 = arith.constant 0.000000e+00 : f32
    %6 = vector.broadcast %cst_5 : f32 to vector<16x128xf32>
    %7 = arith.cmpf ogt, %5, %6 : vector<16x128xf32>
    %cst_6 = arith.constant 0.000000e+00 : f32
    %8 = vector.broadcast %cst_6 : f32 to vector<16x128xf32>
    %9 = arith.minimumf %5, %8 : vector<16x128xf32>
    %10 = math.exp %9 : vector<16x128xf32>
    %cst_7 = arith.constant 1.000000e+00 : f32
    %11 = vector.broadcast %cst_7 : f32 to vector<16x128xf32>
    %12 = arith.subf %10, %11 : vector<16x128xf32>
    %13 = arith.select %7, %5, %12 : vector<16x128xi1>, vector<16x128xf32>
    %c0_8 = arith.constant 0 : index
    %c1 = arith.constant 1 : index
    %14 = vector.load %arg2[%c0_8, %c1] : memref<16x3xf32, #tpu.memory_space<vmem>>, vector<16x1xf32>
    %15 = vector.broadcast %14 : vector<16x1xf32> to vector<16x128xf32>
    %16 = arith.mulf %13, %15 : vector<16x128xf32>
    %c0_9 = arith.constant 0 : index
    %c2 = arith.constant 2 : index
    %17 = vector.load %arg2[%c0_9, %c2] : memref<16x3xf32, #tpu.memory_space<vmem>>, vector<16x1xf32>
    %18 = vector.broadcast %17 : vector<16x1xf32> to vector<16x128xf32>
    %19 = arith.addf %16, %18 : vector<16x128xf32>
    %20 = arith.truncf %19 : vector<16x128xf32> to vector<16x128xbf16>
    %21 = vector.extract_strided_slice %20 {offsets = [0, 119], sizes = [16, 9], strides = [1, 1]} : vector<16x128xbf16> to vector<16x9xbf16>
    %22 = vector.extract_strided_slice %20 {offsets = [0, 0], sizes = [16, 119], strides = [1, 1]} : vector<16x128xbf16> to vector<16x119xbf16>
    %23 = tpu.concatenate %21, %22 in 1 : vector<16x9xbf16>, vector<16x119xbf16> -> vector<16x128xbf16>
    %c0_10 = arith.constant 0 : index
    %c0_11 = arith.constant 0 : index
    %24 = vector.load %arg5[%c0_10, %c0_11] : memref<9x128xbf16, #tpu.memory_space<vmem>>, vector<1x128xbf16>
    %25 = vector.broadcast %24 : vector<1x128xbf16> to vector<16x128xbf16>
    %26 = arith.mulf %23, %25 : vector<16x128xbf16>
    %27 = vector.extract_strided_slice %20 {offsets = [0, 120], sizes = [16, 8], strides = [1, 1]} : vector<16x128xbf16> to vector<16x8xbf16>
    %28 = vector.extract_strided_slice %20 {offsets = [0, 0], sizes = [16, 120], strides = [1, 1]} : vector<16x128xbf16> to vector<16x120xbf16>
    %29 = tpu.concatenate %27, %28 in 1 : vector<16x8xbf16>, vector<16x120xbf16> -> vector<16x128xbf16>
    %c1_12 = arith.constant 1 : index
    %c0_13 = arith.constant 0 : index
    %30 = vector.load %arg5[%c1_12, %c0_13] : memref<9x128xbf16, #tpu.memory_space<vmem>>, vector<1x128xbf16>
    %31 = vector.broadcast %30 : vector<1x128xbf16> to vector<16x128xbf16>
    %32 = arith.mulf %29, %31 : vector<16x128xbf16>
    %33 = vector.extract_strided_slice %20 {offsets = [0, 121], sizes = [16, 7], strides = [1, 1]} : vector<16x128xbf16> to vector<16x7xbf16>
    %34 = vector.extract_strided_slice %20 {offsets = [0, 0], sizes = [16, 121], strides = [1, 1]} : vector<16x128xbf16> to vector<16x121xbf16>
    %35 = tpu.concatenate %33, %34 in 1 : vector<16x7xbf16>, vector<16x121xbf16> -> vector<16x128xbf16>
    %c2_14 = arith.constant 2 : index
    %c0_15 = arith.constant 0 : index
    %36 = vector.load %arg5[%c2_14, %c0_15] : memref<9x128xbf16, #tpu.memory_space<vmem>>, vector<1x128xbf16>
    %37 = vector.broadcast %36 : vector<1x128xbf16> to vector<16x128xbf16>
    %38 = arith.mulf %35, %37 : vector<16x128xbf16>
    %39 = vector.extract_strided_slice %20 {offsets = [0, 127], sizes = [16, 1], strides = [1, 1]} : vector<16x128xbf16> to vector<16x1xbf16>
    %40 = vector.extract_strided_slice %20 {offsets = [0, 0], sizes = [16, 127], strides = [1, 1]} : vector<16x128xbf16> to vector<16x127xbf16>
    %41 = tpu.concatenate %39, %40 in 1 : vector<16x1xbf16>, vector<16x127xbf16> -> vector<16x128xbf16>
    %c3 = arith.constant 3 : index
    %c0_16 = arith.constant 0 : index
    %42 = vector.load %arg5[%c3, %c0_16] : memref<9x128xbf16, #tpu.memory_space<vmem>>, vector<1x128xbf16>
    %43 = vector.broadcast %42 : vector<1x128xbf16> to vector<16x128xbf16>
    %44 = arith.mulf %41, %43 : vector<16x128xbf16>
    %45 = vector.extract_strided_slice %20 {offsets = [0, 1], sizes = [16, 127], strides = [1, 1]} : vector<16x128xbf16> to vector<16x127xbf16>
    %46 = vector.extract_strided_slice %20 {offsets = [0, 0], sizes = [16, 1], strides = [1, 1]} : vector<16x128xbf16> to vector<16x1xbf16>
    %47 = tpu.concatenate %45, %46 in 1 : vector<16x127xbf16>, vector<16x1xbf16> -> vector<16x128xbf16>
    %c5 = arith.constant 5 : index
    %c0_17 = arith.constant 0 : index
    %48 = vector.load %arg5[%c5, %c0_17] : memref<9x128xbf16, #tpu.memory_space<vmem>>, vector<1x128xbf16>
    %49 = vector.broadcast %48 : vector<1x128xbf16> to vector<16x128xbf16>
    %50 = arith.mulf %47, %49 : vector<16x128xbf16>
    %51 = vector.extract_strided_slice %20 {offsets = [0, 7], sizes = [16, 121], strides = [1, 1]} : vector<16x128xbf16> to vector<16x121xbf16>
    %52 = vector.extract_strided_slice %20 {offsets = [0, 0], sizes = [16, 7], strides = [1, 1]} : vector<16x128xbf16> to vector<16x7xbf16>
    %53 = tpu.concatenate %51, %52 in 1 : vector<16x121xbf16>, vector<16x7xbf16> -> vector<16x128xbf16>
    %c6 = arith.constant 6 : index
    %c0_18 = arith.constant 0 : index
    %54 = vector.load %arg5[%c6, %c0_18] : memref<9x128xbf16, #tpu.memory_space<vmem>>, vector<1x128xbf16>
    %55 = vector.broadcast %54 : vector<1x128xbf16> to vector<16x128xbf16>
    %56 = arith.mulf %53, %55 : vector<16x128xbf16>
    %57 = vector.extract_strided_slice %20 {offsets = [0, 8], sizes = [16, 120], strides = [1, 1]} : vector<16x128xbf16> to vector<16x120xbf16>
    %58 = vector.extract_strided_slice %20 {offsets = [0, 0], sizes = [16, 8], strides = [1, 1]} : vector<16x128xbf16> to vector<16x8xbf16>
    %59 = tpu.concatenate %57, %58 in 1 : vector<16x120xbf16>, vector<16x8xbf16> -> vector<16x128xbf16>
    %c7 = arith.constant 7 : index
    %c0_19 = arith.constant 0 : index
    %60 = vector.load %arg5[%c7, %c0_19] : memref<9x128xbf16, #tpu.memory_space<vmem>>, vector<1x128xbf16>
    %61 = vector.broadcast %60 : vector<1x128xbf16> to vector<16x128xbf16>
    %62 = arith.mulf %59, %61 : vector<16x128xbf16>
    %63 = vector.extract_strided_slice %20 {offsets = [0, 9], sizes = [16, 119], strides = [1, 1]} : vector<16x128xbf16> to vector<16x119xbf16>
    %64 = vector.extract_strided_slice %20 {offsets = [0, 0], sizes = [16, 9], strides = [1, 1]} : vector<16x128xbf16> to vector<16x9xbf16>
    %65 = tpu.concatenate %63, %64 in 1 : vector<16x119xbf16>, vector<16x9xbf16> -> vector<16x128xbf16>
    %c8 = arith.constant 8 : index
    %c0_20 = arith.constant 0 : index
    %66 = vector.load %arg5[%c8, %c0_20] : memref<9x128xbf16, #tpu.memory_space<vmem>>, vector<1x128xbf16>
    %67 = vector.broadcast %66 : vector<1x128xbf16> to vector<16x128xbf16>
    %68 = arith.mulf %65, %67 : vector<16x128xbf16>
    %69 = tpu.concatenate %26, %32, %38, %44, %20, %50, %56, %62, %68 in 0 : vector<16x128xbf16>, vector<16x128xbf16>, vector<16x128xbf16>, vector<16x128xbf16>, vector<16x128xbf16>, vector<16x128xbf16>, vector<16x128xbf16>, vector<16x128xbf16>, vector<16x128xbf16> -> vector<144x128xbf16>
    %c0_21 = arith.constant 0 : index
    %c0_22 = arith.constant 0 : index
    %70 = vector.load %arg3[%c0_21, %c0_22] : memref<16x144xbf16, #tpu.memory_space<vmem>>, vector<16x144xbf16>
    %cst_23 = arith.constant dense<0.000000e+00> : vector<16x128xf32>
    %71 = tpu.matmul %70, %69, %cst_23 {dimension_numbers = #tpu.dot_dimension_numbers<[1], [0], [0], [1], [0, 0, 1, 1], [], []>} : vector<16x144xbf16>, vector<144x128xbf16>, vector<16x128xf32> -> vector<16x128xf32>
    %c0_24 = arith.constant 0 : index
    %c0_25 = arith.constant 0 : index
    %72 = vector.load %arg4[%c0_24, %c0_25] : memref<16x3xf32, #tpu.memory_space<vmem>>, vector<16x1xf32>
    %73 = vector.broadcast %72 : vector<16x1xf32> to vector<16x128xf32>
    %74 = arith.addf %71, %73 : vector<16x128xf32>
    %cst_26 = arith.constant 0.000000e+00 : f32
    %75 = vector.broadcast %cst_26 : f32 to vector<16x128xf32>
    %76 = arith.cmpf ogt, %74, %75 : vector<16x128xf32>
    %cst_27 = arith.constant 0.000000e+00 : f32
    %77 = vector.broadcast %cst_27 : f32 to vector<16x128xf32>
    %78 = arith.minimumf %74, %77 : vector<16x128xf32>
    %79 = math.exp %78 : vector<16x128xf32>
    %cst_28 = arith.constant 1.000000e+00 : f32
    %80 = vector.broadcast %cst_28 : f32 to vector<16x128xf32>
    %81 = arith.subf %79, %80 : vector<16x128xf32>
    %82 = arith.select %76, %74, %81 : vector<16x128xi1>, vector<16x128xf32>
    %c0_29 = arith.constant 0 : index
    %c1_30 = arith.constant 1 : index
    %83 = vector.load %arg4[%c0_29, %c1_30] : memref<16x3xf32, #tpu.memory_space<vmem>>, vector<16x1xf32>
    %84 = vector.broadcast %83 : vector<16x1xf32> to vector<16x128xf32>
    %85 = arith.mulf %82, %84 : vector<16x128xf32>
    %c0_31 = arith.constant 0 : index
    %c2_32 = arith.constant 2 : index
    %86 = vector.load %arg4[%c0_31, %c2_32] : memref<16x3xf32, #tpu.memory_space<vmem>>, vector<16x1xf32>
    %87 = vector.broadcast %86 : vector<16x1xf32> to vector<16x128xf32>
    %88 = arith.addf %85, %87 : vector<16x128xf32>
    %89 = arith.truncf %88 : vector<16x128xf32> to vector<16x128xbf16>
    %c0_33 = arith.constant 0 : index
    %c0_34 = arith.constant 0 : index
    %90 = vector.load %arg7[%c0_33, %c0_34] : memref<16x128xbf16, #tpu.memory_space<vmem>>, vector<16x128xbf16>
    tpu.vector_store %arg7[%c0_33, %c0_34], %89 {strides = array<i32>} : memref<16x128xbf16, #tpu.memory_space<vmem>>, vector<16x128xbf16>,
    return
  }
  func.func @transform_0(%arg0: i32) -> (i32, i32) {
    %c0_i32 = arith.constant 0 : i32
    %c0_i32_0 = arith.constant 0 : i32
    %c0_i32_1 = arith.constant 0 : i32
    return %c0_i32, %c0_i32_0 : i32, i32
  }
  func.func @transform_1(%arg0: i32) -> (i32, i32) {
    %c0_i32 = arith.constant 0 : i32
    %c0_i32_0 = arith.constant 0 : i32
    %c0_i32_1 = arith.constant 0 : i32
    return %c0_i32, %c0_i32_0 : i32, i32
  }
  func.func @transform_2(%arg0: i32) -> (i32, i32) {
    %c0_i32 = arith.constant 0 : i32
    %c0_i32_0 = arith.constant 0 : i32
    %c0_i32_1 = arith.constant 0 : i32
    return %c0_i32, %c0_i32_0 : i32, i32
  }
  func.func @transform_3(%arg0: i32) -> (i32, i32) {
    %c0_i32 = arith.constant 0 : i32
    %c0_i32_0 = arith.constant 0 : i32
    %c0_i32_1 = arith.constant 0 : i32
    return %c0_i32, %c0_i32_0 : i32, i32
  }
  func.func @transform_4(%arg0: i32) -> (i32, i32) {
    %c0_i32 = arith.constant 0 : i32
    %c0_i32_0 = arith.constant 0 : i32
    %c0_i32_1 = arith.constant 0 : i32
    return %c0_i32, %c0_i32_0 : i32, i32
  }
  func.func @transform_5(%arg0: i32) -> (i32, i32) {
    %c0_i32 = arith.constant 0 : i32
    %c0_i32_0 = arith.constant 0 : i32
    %c0_i32_1 = arith.constant 0 : i32
    return %c0_i32, %c0_i32_0 : i32, i32
  }
  func.func @transform_6(%arg0: i32) -> (i32, i32) {
    %c0_i32 = arith.constant 0 : i32
    %c0_i32_0 = arith.constant 0 : i32
    %c0_i32_1 = arith.constant 0 : i32
    return %c0_i32, %c0_i32_0 : i32, i32
  }
}

module attributes {stable_mosaic.version = 11 : i64} {
  func.func @kernel(%arg0: i32, %arg1: i32, %arg2: memref<128x128xbf16, #tpu.memory_space<vmem>>, %arg3: memref<128x32xbf16, #tpu.memory_space<vmem>>, %arg4: memref<128x3xf32, #tpu.memory_space<vmem>>, %arg5: memref<128x32xbf16, #tpu.memory_space<vmem>>) attributes {dimension_semantics = [#tpu.dimension_semantics<parallel>, #tpu.dimension_semantics<arbitrary>], iteration_bounds = array<i64: 1, 1>, scalar_prefetch = 0 : i64, scratch_operands = 0 : i64, tpu.core_type = #tpu.core_type<tc>, window_params = [{transform_indices = @transform_0, window_bounds = array<i64: 128, 128>}, {transform_indices = @transform_1, window_bounds = array<i64: 128, 32>}, {pipeline_mode = #tpu.pipeline_mode<synchronous>, transform_indices = @transform_2, window_bounds = array<i64: 128, 3>}, {transform_indices = @transform_3, window_bounds = array<i64: 128, 32>}]} {
    %c0 = arith.constant 0 : index
    %c0_0 = arith.constant 0 : index
    %0 = vector.load %arg2[%c0, %c0_0] : memref<128x128xbf16, #tpu.memory_space<vmem>>, vector<128x128xbf16>
    %c0_1 = arith.constant 0 : index
    %c0_2 = arith.constant 0 : index
    %1 = vector.load %arg3[%c0_1, %c0_2] : memref<128x32xbf16, #tpu.memory_space<vmem>>, vector<128x32xbf16>
    %cst = arith.constant dense<0.000000e+00> : vector<128x32xf32>
    %2 = tpu.matmul %0, %1, %cst {dimension_numbers = #tpu.dot_dimension_numbers<[1], [0], [0], [1], [0, 0, 1, 1], [], []>} : vector<128x128xbf16>, vector<128x32xbf16>, vector<128x32xf32> -> vector<128x32xf32>
    %c0_3 = arith.constant 0 : index
    %c0_4 = arith.constant 0 : index
    %3 = vector.load %arg4[%c0_3, %c0_4] : memref<128x3xf32, #tpu.memory_space<vmem>>, vector<128x1xf32>
    %4 = vector.broadcast %3 : vector<128x1xf32> to vector<128x32xf32>
    %5 = arith.addf %2, %4 : vector<128x32xf32>
    %cst_5 = arith.constant 0.000000e+00 : f32
    %6 = vector.broadcast %cst_5 : f32 to vector<128x32xf32>
    %7 = arith.cmpf ogt, %5, %6 : vector<128x32xf32>
    %cst_6 = arith.constant 0.000000e+00 : f32
    %8 = vector.broadcast %cst_6 : f32 to vector<128x32xf32>
    %9 = arith.minimumf %5, %8 : vector<128x32xf32>
    %10 = math.exp %9 : vector<128x32xf32>
    %cst_7 = arith.constant 1.000000e+00 : f32
    %11 = vector.broadcast %cst_7 : f32 to vector<128x32xf32>
    %12 = arith.subf %10, %11 : vector<128x32xf32>
    %13 = arith.select %7, %5, %12 : vector<128x32xi1>, vector<128x32xf32>
    %14 = arith.truncf %13 : vector<128x32xf32> to vector<128x32xbf16>
    %c0_8 = arith.constant 0 : index
    %c0_9 = arith.constant 0 : index
    %15 = vector.load %arg5[%c0_8, %c0_9] : memref<128x32xbf16, #tpu.memory_space<vmem>>, vector<128x32xbf16>
    tpu.vector_store %arg5[%c0_8, %c0_9], %14 {strides = array<i32>} : memref<128x32xbf16, #tpu.memory_space<vmem>>, vector<128x32xbf16>,
    return
  }
  func.func @transform_0(%arg0: i32, %arg1: i32) -> (i32, i32) {
    %c0_i32 = arith.constant 0 : i32
    %c0_i32_0 = arith.constant 0 : i32
    return %c0_i32, %arg1 : i32, i32
  }
  func.func @transform_1(%arg0: i32, %arg1: i32) -> (i32, i32) {
    %c0_i32 = arith.constant 0 : i32
    return %arg1, %arg0 : i32, i32
  }
  func.func @transform_2(%arg0: i32, %arg1: i32) -> (i32, i32) {
    %c0_i32 = arith.constant 0 : i32
    %c0_i32_0 = arith.constant 0 : i32
    %c0_i32_1 = arith.constant 0 : i32
    return %c0_i32, %c0_i32_0 : i32, i32
  }
  func.func @transform_3(%arg0: i32, %arg1: i32) -> (i32, i32) {
    %c0_i32 = arith.constant 0 : i32
    %c0_i32_0 = arith.constant 0 : i32
    return %c0_i32, %arg0 : i32, i32
  }
}

module attributes {stable_mosaic.version = 11 : i64} {
  func.func @kernel(%arg0: i32, %arg1: memref<32x144xbf16, #tpu.memory_space<vmem>>, %arg2: memref<32x3xf32, #tpu.memory_space<vmem>>, %arg3: memref<32x288xbf16, #tpu.memory_space<vmem>>, %arg4: memref<32x3xf32, #tpu.memory_space<vmem>>, %arg5: memref<9x32xbf16, #tpu.memory_space<vmem>>, %arg6: memref<144x32xbf16, #tpu.memory_space<vmem>>, %arg7: memref<32x32xbf16, #tpu.memory_space<vmem>>) attributes {dimension_semantics = [#tpu.dimension_semantics<arbitrary>], iteration_bounds = array<i64: 1>, scalar_prefetch = 0 : i64, scratch_operands = 0 : i64, tpu.core_type = #tpu.core_type<tc>, window_params = [{pipeline_mode = #tpu.pipeline_mode<synchronous>, transform_indices = @transform_0, window_bounds = array<i64: 32, 144>}, {pipeline_mode = #tpu.pipeline_mode<synchronous>, transform_indices = @transform_1, window_bounds = array<i64: 32, 3>}, {pipeline_mode = #tpu.pipeline_mode<synchronous>, transform_indices = @transform_2, window_bounds = array<i64: 32, 288>}, {pipeline_mode = #tpu.pipeline_mode<synchronous>, transform_indices = @transform_3, window_bounds = array<i64: 32, 3>}, {pipeline_mode = #tpu.pipeline_mode<synchronous>, transform_indices = @transform_4, window_bounds = array<i64: 9, 32>}, {pipeline_mode = #tpu.pipeline_mode<synchronous>, transform_indices = @transform_5, window_bounds = array<i64: 144, 32>}, {pipeline_mode = #tpu.pipeline_mode<synchronous>, transform_indices = @transform_6, window_bounds = array<i64: 32, 32>}]} {
    %c0 = arith.constant 0 : index
    %c0_0 = arith.constant 0 : index
    %0 = vector.load %arg1[%c0, %c0_0] : memref<32x144xbf16, #tpu.memory_space<vmem>>, vector<32x144xbf16>
    %c0_1 = arith.constant 0 : index
    %c0_2 = arith.constant 0 : index
    %1 = vector.load %arg6[%c0_1, %c0_2] : memref<144x32xbf16, #tpu.memory_space<vmem>>, vector<144x32xbf16>
    %cst = arith.constant dense<0.000000e+00> : vector<32x32xf32>
    %2 = tpu.matmul %0, %1, %cst {dimension_numbers = #tpu.dot_dimension_numbers<[1], [0], [0], [1], [0, 0, 1, 1], [], []>} : vector<32x144xbf16>, vector<144x32xbf16>, vector<32x32xf32> -> vector<32x32xf32>
    %c0_3 = arith.constant 0 : index
    %c0_4 = arith.constant 0 : index
    %3 = vector.load %arg2[%c0_3, %c0_4] : memref<32x3xf32, #tpu.memory_space<vmem>>, vector<32x1xf32>
    %4 = vector.broadcast %3 : vector<32x1xf32> to vector<32x32xf32>
    %5 = arith.addf %2, %4 : vector<32x32xf32>
    %cst_5 = arith.constant 0.000000e+00 : f32
    %6 = vector.broadcast %cst_5 : f32 to vector<32x32xf32>
    %7 = arith.cmpf ogt, %5, %6 : vector<32x32xf32>
    %cst_6 = arith.constant 0.000000e+00 : f32
    %8 = vector.broadcast %cst_6 : f32 to vector<32x32xf32>
    %9 = arith.minimumf %5, %8 : vector<32x32xf32>
    %10 = math.exp %9 : vector<32x32xf32>
    %cst_7 = arith.constant 1.000000e+00 : f32
    %11 = vector.broadcast %cst_7 : f32 to vector<32x32xf32>
    %12 = arith.subf %10, %11 : vector<32x32xf32>
    %13 = arith.select %7, %5, %12 : vector<32x32xi1>, vector<32x32xf32>
    %c0_8 = arith.constant 0 : index
    %c1 = arith.constant 1 : index
    %14 = vector.load %arg2[%c0_8, %c1] : memref<32x3xf32, #tpu.memory_space<vmem>>, vector<32x1xf32>
    %15 = vector.broadcast %14 : vector<32x1xf32> to vector<32x32xf32>
    %16 = arith.mulf %13, %15 : vector<32x32xf32>
    %c0_9 = arith.constant 0 : index
    %c2 = arith.constant 2 : index
    %17 = vector.load %arg2[%c0_9, %c2] : memref<32x3xf32, #tpu.memory_space<vmem>>, vector<32x1xf32>
    %18 = vector.broadcast %17 : vector<32x1xf32> to vector<32x32xf32>
    %19 = arith.addf %16, %18 : vector<32x32xf32>
    %20 = arith.truncf %19 : vector<32x32xf32> to vector<32x32xbf16>
    %21 = vector.extract_strided_slice %20 {offsets = [0, 27], sizes = [32, 5], strides = [1, 1]} : vector<32x32xbf16> to vector<32x5xbf16>
    %22 = vector.extract_strided_slice %20 {offsets = [0, 0], sizes = [32, 27], strides = [1, 1]} : vector<32x32xbf16> to vector<32x27xbf16>
    %23 = tpu.concatenate %21, %22 in 1 : vector<32x5xbf16>, vector<32x27xbf16> -> vector<32x32xbf16>
    %c0_10 = arith.constant 0 : index
    %c0_11 = arith.constant 0 : index
    %24 = vector.load %arg5[%c0_10, %c0_11] : memref<9x32xbf16, #tpu.memory_space<vmem>>, vector<1x32xbf16>
    %25 = vector.broadcast %24 : vector<1x32xbf16> to vector<32x32xbf16>
    %26 = arith.mulf %23, %25 : vector<32x32xbf16>
    %27 = vector.extract_strided_slice %20 {offsets = [0, 28], sizes = [32, 4], strides = [1, 1]} : vector<32x32xbf16> to vector<32x4xbf16>
    %28 = vector.extract_strided_slice %20 {offsets = [0, 0], sizes = [32, 28], strides = [1, 1]} : vector<32x32xbf16> to vector<32x28xbf16>
    %29 = tpu.concatenate %27, %28 in 1 : vector<32x4xbf16>, vector<32x28xbf16> -> vector<32x32xbf16>
    %c1_12 = arith.constant 1 : index
    %c0_13 = arith.constant 0 : index
    %30 = vector.load %arg5[%c1_12, %c0_13] : memref<9x32xbf16, #tpu.memory_space<vmem>>, vector<1x32xbf16>
    %31 = vector.broadcast %30 : vector<1x32xbf16> to vector<32x32xbf16>
    %32 = arith.mulf %29, %31 : vector<32x32xbf16>
    %33 = vector.extract_strided_slice %20 {offsets = [0, 29], sizes = [32, 3], strides = [1, 1]} : vector<32x32xbf16> to vector<32x3xbf16>
    %34 = vector.extract_strided_slice %20 {offsets = [0, 0], sizes = [32, 29], strides = [1, 1]} : vector<32x32xbf16> to vector<32x29xbf16>
    %35 = tpu.concatenate %33, %34 in 1 : vector<32x3xbf16>, vector<32x29xbf16> -> vector<32x32xbf16>
    %c2_14 = arith.constant 2 : index
    %c0_15 = arith.constant 0 : index
    %36 = vector.load %arg5[%c2_14, %c0_15] : memref<9x32xbf16, #tpu.memory_space<vmem>>, vector<1x32xbf16>
    %37 = vector.broadcast %36 : vector<1x32xbf16> to vector<32x32xbf16>
    %38 = arith.mulf %35, %37 : vector<32x32xbf16>
    %39 = vector.extract_strided_slice %20 {offsets = [0, 31], sizes = [32, 1], strides = [1, 1]} : vector<32x32xbf16> to vector<32x1xbf16>
    %40 = vector.extract_strided_slice %20 {offsets = [0, 0], sizes = [32, 31], strides = [1, 1]} : vector<32x32xbf16> to vector<32x31xbf16>
    %41 = tpu.concatenate %39, %40 in 1 : vector<32x1xbf16>, vector<32x31xbf16> -> vector<32x32xbf16>
    %c3 = arith.constant 3 : index
    %c0_16 = arith.constant 0 : index
    %42 = vector.load %arg5[%c3, %c0_16] : memref<9x32xbf16, #tpu.memory_space<vmem>>, vector<1x32xbf16>
    %43 = vector.broadcast %42 : vector<1x32xbf16> to vector<32x32xbf16>
    %44 = arith.mulf %41, %43 : vector<32x32xbf16>
    %45 = vector.extract_strided_slice %20 {offsets = [0, 1], sizes = [32, 31], strides = [1, 1]} : vector<32x32xbf16> to vector<32x31xbf16>
    %46 = vector.extract_strided_slice %20 {offsets = [0, 0], sizes = [32, 1], strides = [1, 1]} : vector<32x32xbf16> to vector<32x1xbf16>
    %47 = tpu.concatenate %45, %46 in 1 : vector<32x31xbf16>, vector<32x1xbf16> -> vector<32x32xbf16>
    %c5 = arith.constant 5 : index
    %c0_17 = arith.constant 0 : index
    %48 = vector.load %arg5[%c5, %c0_17] : memref<9x32xbf16, #tpu.memory_space<vmem>>, vector<1x32xbf16>
    %49 = vector.broadcast %48 : vector<1x32xbf16> to vector<32x32xbf16>
    %50 = arith.mulf %47, %49 : vector<32x32xbf16>
    %51 = vector.extract_strided_slice %20 {offsets = [0, 3], sizes = [32, 29], strides = [1, 1]} : vector<32x32xbf16> to vector<32x29xbf16>
    %52 = vector.extract_strided_slice %20 {offsets = [0, 0], sizes = [32, 3], strides = [1, 1]} : vector<32x32xbf16> to vector<32x3xbf16>
    %53 = tpu.concatenate %51, %52 in 1 : vector<32x29xbf16>, vector<32x3xbf16> -> vector<32x32xbf16>
    %c6 = arith.constant 6 : index
    %c0_18 = arith.constant 0 : index
    %54 = vector.load %arg5[%c6, %c0_18] : memref<9x32xbf16, #tpu.memory_space<vmem>>, vector<1x32xbf16>
    %55 = vector.broadcast %54 : vector<1x32xbf16> to vector<32x32xbf16>
    %56 = arith.mulf %53, %55 : vector<32x32xbf16>
    %57 = vector.extract_strided_slice %20 {offsets = [0, 4], sizes = [32, 28], strides = [1, 1]} : vector<32x32xbf16> to vector<32x28xbf16>
    %58 = vector.extract_strided_slice %20 {offsets = [0, 0], sizes = [32, 4], strides = [1, 1]} : vector<32x32xbf16> to vector<32x4xbf16>
    %59 = tpu.concatenate %57, %58 in 1 : vector<32x28xbf16>, vector<32x4xbf16> -> vector<32x32xbf16>
    %c7 = arith.constant 7 : index
    %c0_19 = arith.constant 0 : index
    %60 = vector.load %arg5[%c7, %c0_19] : memref<9x32xbf16, #tpu.memory_space<vmem>>, vector<1x32xbf16>
    %61 = vector.broadcast %60 : vector<1x32xbf16> to vector<32x32xbf16>
    %62 = arith.mulf %59, %61 : vector<32x32xbf16>
    %63 = vector.extract_strided_slice %20 {offsets = [0, 5], sizes = [32, 27], strides = [1, 1]} : vector<32x32xbf16> to vector<32x27xbf16>
    %64 = vector.extract_strided_slice %20 {offsets = [0, 0], sizes = [32, 5], strides = [1, 1]} : vector<32x32xbf16> to vector<32x5xbf16>
    %65 = tpu.concatenate %63, %64 in 1 : vector<32x27xbf16>, vector<32x5xbf16> -> vector<32x32xbf16>
    %c8 = arith.constant 8 : index
    %c0_20 = arith.constant 0 : index
    %66 = vector.load %arg5[%c8, %c0_20] : memref<9x32xbf16, #tpu.memory_space<vmem>>, vector<1x32xbf16>
    %67 = vector.broadcast %66 : vector<1x32xbf16> to vector<32x32xbf16>
    %68 = arith.mulf %65, %67 : vector<32x32xbf16>
    %69 = tpu.concatenate %26, %32, %38, %44, %20, %50, %56, %62, %68 in 0 : vector<32x32xbf16>, vector<32x32xbf16>, vector<32x32xbf16>, vector<32x32xbf16>, vector<32x32xbf16>, vector<32x32xbf16>, vector<32x32xbf16>, vector<32x32xbf16>, vector<32x32xbf16> -> vector<288x32xbf16>
    %c0_21 = arith.constant 0 : index
    %c0_22 = arith.constant 0 : index
    %70 = vector.load %arg3[%c0_21, %c0_22] : memref<32x288xbf16, #tpu.memory_space<vmem>>, vector<32x288xbf16>
    %cst_23 = arith.constant dense<0.000000e+00> : vector<32x32xf32>
    %71 = tpu.matmul %70, %69, %cst_23 {dimension_numbers = #tpu.dot_dimension_numbers<[1], [0], [0], [1], [0, 0, 1, 1], [], []>} : vector<32x288xbf16>, vector<288x32xbf16>, vector<32x32xf32> -> vector<32x32xf32>
    %c0_24 = arith.constant 0 : index
    %c0_25 = arith.constant 0 : index
    %72 = vector.load %arg4[%c0_24, %c0_25] : memref<32x3xf32, #tpu.memory_space<vmem>>, vector<32x1xf32>
    %73 = vector.broadcast %72 : vector<32x1xf32> to vector<32x32xf32>
    %74 = arith.addf %71, %73 : vector<32x32xf32>
    %cst_26 = arith.constant 0.000000e+00 : f32
    %75 = vector.broadcast %cst_26 : f32 to vector<32x32xf32>
    %76 = arith.cmpf ogt, %74, %75 : vector<32x32xf32>
    %cst_27 = arith.constant 0.000000e+00 : f32
    %77 = vector.broadcast %cst_27 : f32 to vector<32x32xf32>
    %78 = arith.minimumf %74, %77 : vector<32x32xf32>
    %79 = math.exp %78 : vector<32x32xf32>
    %cst_28 = arith.constant 1.000000e+00 : f32
    %80 = vector.broadcast %cst_28 : f32 to vector<32x32xf32>
    %81 = arith.subf %79, %80 : vector<32x32xf32>
    %82 = arith.select %76, %74, %81 : vector<32x32xi1>, vector<32x32xf32>
    %c0_29 = arith.constant 0 : index
    %c1_30 = arith.constant 1 : index
    %83 = vector.load %arg4[%c0_29, %c1_30] : memref<32x3xf32, #tpu.memory_space<vmem>>, vector<32x1xf32>
    %84 = vector.broadcast %83 : vector<32x1xf32> to vector<32x32xf32>
    %85 = arith.mulf %82, %84 : vector<32x32xf32>
    %c0_31 = arith.constant 0 : index
    %c2_32 = arith.constant 2 : index
    %86 = vector.load %arg4[%c0_31, %c2_32] : memref<32x3xf32, #tpu.memory_space<vmem>>, vector<32x1xf32>
    %87 = vector.broadcast %86 : vector<32x1xf32> to vector<32x32xf32>
    %88 = arith.addf %85, %87 : vector<32x32xf32>
    %89 = arith.truncf %88 : vector<32x32xf32> to vector<32x32xbf16>
    %c0_33 = arith.constant 0 : index
    %c0_34 = arith.constant 0 : index
    %90 = vector.load %arg7[%c0_33, %c0_34] : memref<32x32xbf16, #tpu.memory_space<vmem>>, vector<32x32xbf16>
    tpu.vector_store %arg7[%c0_33, %c0_34], %89 {strides = array<i32>} : memref<32x32xbf16, #tpu.memory_space<vmem>>, vector<32x32xbf16>,
    return
  }
  func.func @transform_0(%arg0: i32) -> (i32, i32) {
    %c0_i32 = arith.constant 0 : i32
    %c0_i32_0 = arith.constant 0 : i32
    %c0_i32_1 = arith.constant 0 : i32
    return %c0_i32, %c0_i32_0 : i32, i32
  }
  func.func @transform_1(%arg0: i32) -> (i32, i32) {
    %c0_i32 = arith.constant 0 : i32
    %c0_i32_0 = arith.constant 0 : i32
    %c0_i32_1 = arith.constant 0 : i32
    return %c0_i32, %c0_i32_0 : i32, i32
  }
  func.func @transform_2(%arg0: i32) -> (i32, i32) {
    %c0_i32 = arith.constant 0 : i32
    %c0_i32_0 = arith.constant 0 : i32
    %c0_i32_1 = arith.constant 0 : i32
    return %c0_i32, %c0_i32_0 : i32, i32
  }
  func.func @transform_3(%arg0: i32) -> (i32, i32) {
    %c0_i32 = arith.constant 0 : i32
    %c0_i32_0 = arith.constant 0 : i32
    %c0_i32_1 = arith.constant 0 : i32
    return %c0_i32, %c0_i32_0 : i32, i32
  }
  func.func @transform_4(%arg0: i32) -> (i32, i32) {
    %c0_i32 = arith.constant 0 : i32
    %c0_i32_0 = arith.constant 0 : i32
    %c0_i32_1 = arith.constant 0 : i32
    return %c0_i32, %c0_i32_0 : i32, i32
  }
  func.func @transform_5(%arg0: i32) -> (i32, i32) {
    %c0_i32 = arith.constant 0 : i32
    %c0_i32_0 = arith.constant 0 : i32
    %c0_i32_1 = arith.constant 0 : i32
    return %c0_i32, %c0_i32_0 : i32, i32
  }
  func.func @transform_6(%arg0: i32) -> (i32, i32) {
    %c0_i32 = arith.constant 0 : i32
    %c0_i32_0 = arith.constant 0 : i32
    %c0_i32_1 = arith.constant 0 : i32
    return %c0_i32, %c0_i32_0 : i32, i32
  }
}

module attributes {stable_mosaic.version = 11 : i64} {
  func.func @kernel(%arg0: i32, %arg1: i32, %arg2: memref<64x64xbf16, #tpu.memory_space<vmem>>, %arg3: memref<64x128xbf16, #tpu.memory_space<vmem>>, %arg4: memref<64x3xf32, #tpu.memory_space<vmem>>, %arg5: memref<64x128xbf16, #tpu.memory_space<vmem>>) attributes {dimension_semantics = [#tpu.dimension_semantics<parallel>, #tpu.dimension_semantics<arbitrary>], iteration_bounds = array<i64: 1, 1>, scalar_prefetch = 0 : i64, scratch_operands = 0 : i64, tpu.core_type = #tpu.core_type<tc>, window_params = [{transform_indices = @transform_0, window_bounds = array<i64: 64, 64>}, {transform_indices = @transform_1, window_bounds = array<i64: 64, 128>}, {pipeline_mode = #tpu.pipeline_mode<synchronous>, transform_indices = @transform_2, window_bounds = array<i64: 64, 3>}, {transform_indices = @transform_3, window_bounds = array<i64: 64, 128>}]} {
    %c0 = arith.constant 0 : index
    %c0_0 = arith.constant 0 : index
    %0 = vector.load %arg2[%c0, %c0_0] : memref<64x64xbf16, #tpu.memory_space<vmem>>, vector<64x64xbf16>
    %c0_1 = arith.constant 0 : index
    %c0_2 = arith.constant 0 : index
    %1 = vector.load %arg3[%c0_1, %c0_2] : memref<64x128xbf16, #tpu.memory_space<vmem>>, vector<64x128xbf16>
    %cst = arith.constant dense<0.000000e+00> : vector<64x128xf32>
    %2 = tpu.matmul %0, %1, %cst {dimension_numbers = #tpu.dot_dimension_numbers<[1], [0], [0], [1], [0, 0, 1, 1], [], []>} : vector<64x64xbf16>, vector<64x128xbf16>, vector<64x128xf32> -> vector<64x128xf32>
    %c0_3 = arith.constant 0 : index
    %c0_4 = arith.constant 0 : index
    %3 = vector.load %arg4[%c0_3, %c0_4] : memref<64x3xf32, #tpu.memory_space<vmem>>, vector<64x1xf32>
    %4 = vector.broadcast %3 : vector<64x1xf32> to vector<64x128xf32>
    %5 = arith.addf %2, %4 : vector<64x128xf32>
    %cst_5 = arith.constant 0.000000e+00 : f32
    %6 = vector.broadcast %cst_5 : f32 to vector<64x128xf32>
    %7 = arith.cmpf ogt, %5, %6 : vector<64x128xf32>
    %cst_6 = arith.constant 0.000000e+00 : f32
    %8 = vector.broadcast %cst_6 : f32 to vector<64x128xf32>
    %9 = arith.minimumf %5, %8 : vector<64x128xf32>
    %10 = math.exp %9 : vector<64x128xf32>
    %cst_7 = arith.constant 1.000000e+00 : f32
    %11 = vector.broadcast %cst_7 : f32 to vector<64x128xf32>
    %12 = arith.subf %10, %11 : vector<64x128xf32>
    %13 = arith.select %7, %5, %12 : vector<64x128xi1>, vector<64x128xf32>
    %14 = arith.truncf %13 : vector<64x128xf32> to vector<64x128xbf16>
    %c0_8 = arith.constant 0 : index
    %c0_9 = arith.constant 0 : index
    %15 = vector.load %arg5[%c0_8, %c0_9] : memref<64x128xbf16, #tpu.memory_space<vmem>>, vector<64x128xbf16>
    tpu.vector_store %arg5[%c0_8, %c0_9], %14 {strides = array<i32>} : memref<64x128xbf16, #tpu.memory_space<vmem>>, vector<64x128xbf16>,
    return
  }
  func.func @transform_0(%arg0: i32, %arg1: i32) -> (i32, i32) {
    %c0_i32 = arith.constant 0 : i32
    %c0_i32_0 = arith.constant 0 : i32
    return %c0_i32, %arg1 : i32, i32
  }
  func.func @transform_1(%arg0: i32, %arg1: i32) -> (i32, i32) {
    %c0_i32 = arith.constant 0 : i32
    return %arg1, %arg0 : i32, i32
  }
  func.func @transform_2(%arg0: i32, %arg1: i32) -> (i32, i32) {
    %c0_i32 = arith.constant 0 : i32
    %c0_i32_0 = arith.constant 0 : i32
    %c0_i32_1 = arith.constant 0 : i32
    return %c0_i32, %c0_i32_0 : i32, i32
  }
  func.func @transform_3(%arg0: i32, %arg1: i32) -> (i32, i32) {
    %c0_i32 = arith.constant 0 : i32
    %c0_i32_0 = arith.constant 0 : i32
    return %c0_i32, %arg0 : i32, i32
  }
}

module attributes {stable_mosaic.version = 11 : i64} {
  func.func @kernel(%arg0: i32, %arg1: memref<16x432xbf16, #tpu.memory_space<vmem>>, %arg2: memref<16x3xf32, #tpu.memory_space<vmem>>, %arg3: memref<16x144xbf16, #tpu.memory_space<vmem>>, %arg4: memref<16x3xf32, #tpu.memory_space<vmem>>, %arg5: memref<9x128xbf16, #tpu.memory_space<vmem>>, %arg6: memref<432x128xbf16, #tpu.memory_space<vmem>>, %arg7: memref<16x128xbf16, #tpu.memory_space<vmem>>) attributes {dimension_semantics = [#tpu.dimension_semantics<arbitrary>], iteration_bounds = array<i64: 1>, scalar_prefetch = 0 : i64, scratch_operands = 0 : i64, tpu.core_type = #tpu.core_type<tc>, window_params = [{pipeline_mode = #tpu.pipeline_mode<synchronous>, transform_indices = @transform_0, window_bounds = array<i64: 16, 432>}, {pipeline_mode = #tpu.pipeline_mode<synchronous>, transform_indices = @transform_1, window_bounds = array<i64: 16, 3>}, {pipeline_mode = #tpu.pipeline_mode<synchronous>, transform_indices = @transform_2, window_bounds = array<i64: 16, 144>}, {pipeline_mode = #tpu.pipeline_mode<synchronous>, transform_indices = @transform_3, window_bounds = array<i64: 16, 3>}, {pipeline_mode = #tpu.pipeline_mode<synchronous>, transform_indices = @transform_4, window_bounds = array<i64: 9, 128>}, {pipeline_mode = #tpu.pipeline_mode<synchronous>, transform_indices = @transform_5, window_bounds = array<i64: 432, 128>}, {pipeline_mode = #tpu.pipeline_mode<synchronous>, transform_indices = @transform_6, window_bounds = array<i64: 16, 128>}]} {
    %c0 = arith.constant 0 : index
    %c0_0 = arith.constant 0 : index
    %0 = vector.load %arg1[%c0, %c0_0] : memref<16x432xbf16, #tpu.memory_space<vmem>>, vector<16x432xbf16>
    %c0_1 = arith.constant 0 : index
    %c0_2 = arith.constant 0 : index
    %1 = vector.load %arg6[%c0_1, %c0_2] : memref<432x128xbf16, #tpu.memory_space<vmem>>, vector<432x128xbf16>
    %cst = arith.constant dense<0.000000e+00> : vector<16x128xf32>
    %2 = tpu.matmul %0, %1, %cst {dimension_numbers = #tpu.dot_dimension_numbers<[1], [0], [0], [1], [0, 0, 1, 1], [], []>} : vector<16x432xbf16>, vector<432x128xbf16>, vector<16x128xf32> -> vector<16x128xf32>
    %c0_3 = arith.constant 0 : index
    %c0_4 = arith.constant 0 : index
    %3 = vector.load %arg2[%c0_3, %c0_4] : memref<16x3xf32, #tpu.memory_space<vmem>>, vector<16x1xf32>
    %4 = vector.broadcast %3 : vector<16x1xf32> to vector<16x128xf32>
    %5 = arith.addf %2, %4 : vector<16x128xf32>
    %cst_5 = arith.constant 0.000000e+00 : f32
    %6 = vector.broadcast %cst_5 : f32 to vector<16x128xf32>
    %7 = arith.cmpf ogt, %5, %6 : vector<16x128xf32>
    %cst_6 = arith.constant 0.000000e+00 : f32
    %8 = vector.broadcast %cst_6 : f32 to vector<16x128xf32>
    %9 = arith.minimumf %5, %8 : vector<16x128xf32>
    %10 = math.exp %9 : vector<16x128xf32>
    %cst_7 = arith.constant 1.000000e+00 : f32
    %11 = vector.broadcast %cst_7 : f32 to vector<16x128xf32>
    %12 = arith.subf %10, %11 : vector<16x128xf32>
    %13 = arith.select %7, %5, %12 : vector<16x128xi1>, vector<16x128xf32>
    %c0_8 = arith.constant 0 : index
    %c1 = arith.constant 1 : index
    %14 = vector.load %arg2[%c0_8, %c1] : memref<16x3xf32, #tpu.memory_space<vmem>>, vector<16x1xf32>
    %15 = vector.broadcast %14 : vector<16x1xf32> to vector<16x128xf32>
    %16 = arith.mulf %13, %15 : vector<16x128xf32>
    %c0_9 = arith.constant 0 : index
    %c2 = arith.constant 2 : index
    %17 = vector.load %arg2[%c0_9, %c2] : memref<16x3xf32, #tpu.memory_space<vmem>>, vector<16x1xf32>
    %18 = vector.broadcast %17 : vector<16x1xf32> to vector<16x128xf32>
    %19 = arith.addf %16, %18 : vector<16x128xf32>
    %20 = arith.truncf %19 : vector<16x128xf32> to vector<16x128xbf16>
    %21 = vector.extract_strided_slice %20 {offsets = [0, 119], sizes = [16, 9], strides = [1, 1]} : vector<16x128xbf16> to vector<16x9xbf16>
    %22 = vector.extract_strided_slice %20 {offsets = [0, 0], sizes = [16, 119], strides = [1, 1]} : vector<16x128xbf16> to vector<16x119xbf16>
    %23 = tpu.concatenate %21, %22 in 1 : vector<16x9xbf16>, vector<16x119xbf16> -> vector<16x128xbf16>
    %c0_10 = arith.constant 0 : index
    %c0_11 = arith.constant 0 : index
    %24 = vector.load %arg5[%c0_10, %c0_11] : memref<9x128xbf16, #tpu.memory_space<vmem>>, vector<1x128xbf16>
    %25 = vector.broadcast %24 : vector<1x128xbf16> to vector<16x128xbf16>
    %26 = arith.mulf %23, %25 : vector<16x128xbf16>
    %27 = vector.extract_strided_slice %20 {offsets = [0, 120], sizes = [16, 8], strides = [1, 1]} : vector<16x128xbf16> to vector<16x8xbf16>
    %28 = vector.extract_strided_slice %20 {offsets = [0, 0], sizes = [16, 120], strides = [1, 1]} : vector<16x128xbf16> to vector<16x120xbf16>
    %29 = tpu.concatenate %27, %28 in 1 : vector<16x8xbf16>, vector<16x120xbf16> -> vector<16x128xbf16>
    %c1_12 = arith.constant 1 : index
    %c0_13 = arith.constant 0 : index
    %30 = vector.load %arg5[%c1_12, %c0_13] : memref<9x128xbf16, #tpu.memory_space<vmem>>, vector<1x128xbf16>
    %31 = vector.broadcast %30 : vector<1x128xbf16> to vector<16x128xbf16>
    %32 = arith.mulf %29, %31 : vector<16x128xbf16>
    %33 = vector.extract_strided_slice %20 {offsets = [0, 121], sizes = [16, 7], strides = [1, 1]} : vector<16x128xbf16> to vector<16x7xbf16>
    %34 = vector.extract_strided_slice %20 {offsets = [0, 0], sizes = [16, 121], strides = [1, 1]} : vector<16x128xbf16> to vector<16x121xbf16>
    %35 = tpu.concatenate %33, %34 in 1 : vector<16x7xbf16>, vector<16x121xbf16> -> vector<16x128xbf16>
    %c2_14 = arith.constant 2 : index
    %c0_15 = arith.constant 0 : index
    %36 = vector.load %arg5[%c2_14, %c0_15] : memref<9x128xbf16, #tpu.memory_space<vmem>>, vector<1x128xbf16>
    %37 = vector.broadcast %36 : vector<1x128xbf16> to vector<16x128xbf16>
    %38 = arith.mulf %35, %37 : vector<16x128xbf16>
    %39 = vector.extract_strided_slice %20 {offsets = [0, 127], sizes = [16, 1], strides = [1, 1]} : vector<16x128xbf16> to vector<16x1xbf16>
    %40 = vector.extract_strided_slice %20 {offsets = [0, 0], sizes = [16, 127], strides = [1, 1]} : vector<16x128xbf16> to vector<16x127xbf16>
    %41 = tpu.concatenate %39, %40 in 1 : vector<16x1xbf16>, vector<16x127xbf16> -> vector<16x128xbf16>
    %c3 = arith.constant 3 : index
    %c0_16 = arith.constant 0 : index
    %42 = vector.load %arg5[%c3, %c0_16] : memref<9x128xbf16, #tpu.memory_space<vmem>>, vector<1x128xbf16>
    %43 = vector.broadcast %42 : vector<1x128xbf16> to vector<16x128xbf16>
    %44 = arith.mulf %41, %43 : vector<16x128xbf16>
    %45 = vector.extract_strided_slice %20 {offsets = [0, 1], sizes = [16, 127], strides = [1, 1]} : vector<16x128xbf16> to vector<16x127xbf16>
    %46 = vector.extract_strided_slice %20 {offsets = [0, 0], sizes = [16, 1], strides = [1, 1]} : vector<16x128xbf16> to vector<16x1xbf16>
    %47 = tpu.concatenate %45, %46 in 1 : vector<16x127xbf16>, vector<16x1xbf16> -> vector<16x128xbf16>
    %c5 = arith.constant 5 : index
    %c0_17 = arith.constant 0 : index
    %48 = vector.load %arg5[%c5, %c0_17] : memref<9x128xbf16, #tpu.memory_space<vmem>>, vector<1x128xbf16>
    %49 = vector.broadcast %48 : vector<1x128xbf16> to vector<16x128xbf16>
    %50 = arith.mulf %47, %49 : vector<16x128xbf16>
    %51 = vector.extract_strided_slice %20 {offsets = [0, 7], sizes = [16, 121], strides = [1, 1]} : vector<16x128xbf16> to vector<16x121xbf16>
    %52 = vector.extract_strided_slice %20 {offsets = [0, 0], sizes = [16, 7], strides = [1, 1]} : vector<16x128xbf16> to vector<16x7xbf16>
    %53 = tpu.concatenate %51, %52 in 1 : vector<16x121xbf16>, vector<16x7xbf16> -> vector<16x128xbf16>
    %c6 = arith.constant 6 : index
    %c0_18 = arith.constant 0 : index
    %54 = vector.load %arg5[%c6, %c0_18] : memref<9x128xbf16, #tpu.memory_space<vmem>>, vector<1x128xbf16>
    %55 = vector.broadcast %54 : vector<1x128xbf16> to vector<16x128xbf16>
    %56 = arith.mulf %53, %55 : vector<16x128xbf16>
    %57 = vector.extract_strided_slice %20 {offsets = [0, 8], sizes = [16, 120], strides = [1, 1]} : vector<16x128xbf16> to vector<16x120xbf16>
    %58 = vector.extract_strided_slice %20 {offsets = [0, 0], sizes = [16, 8], strides = [1, 1]} : vector<16x128xbf16> to vector<16x8xbf16>
    %59 = tpu.concatenate %57, %58 in 1 : vector<16x120xbf16>, vector<16x8xbf16> -> vector<16x128xbf16>
    %c7 = arith.constant 7 : index
    %c0_19 = arith.constant 0 : index
    %60 = vector.load %arg5[%c7, %c0_19] : memref<9x128xbf16, #tpu.memory_space<vmem>>, vector<1x128xbf16>
    %61 = vector.broadcast %60 : vector<1x128xbf16> to vector<16x128xbf16>
    %62 = arith.mulf %59, %61 : vector<16x128xbf16>
    %63 = vector.extract_strided_slice %20 {offsets = [0, 9], sizes = [16, 119], strides = [1, 1]} : vector<16x128xbf16> to vector<16x119xbf16>
    %64 = vector.extract_strided_slice %20 {offsets = [0, 0], sizes = [16, 9], strides = [1, 1]} : vector<16x128xbf16> to vector<16x9xbf16>
    %65 = tpu.concatenate %63, %64 in 1 : vector<16x119xbf16>, vector<16x9xbf16> -> vector<16x128xbf16>
    %c8 = arith.constant 8 : index
    %c0_20 = arith.constant 0 : index
    %66 = vector.load %arg5[%c8, %c0_20] : memref<9x128xbf16, #tpu.memory_space<vmem>>, vector<1x128xbf16>
    %67 = vector.broadcast %66 : vector<1x128xbf16> to vector<16x128xbf16>
    %68 = arith.mulf %65, %67 : vector<16x128xbf16>
    %69 = tpu.concatenate %26, %32, %38, %44, %20, %50, %56, %62, %68 in 0 : vector<16x128xbf16>, vector<16x128xbf16>, vector<16x128xbf16>, vector<16x128xbf16>, vector<16x128xbf16>, vector<16x128xbf16>, vector<16x128xbf16>, vector<16x128xbf16>, vector<16x128xbf16> -> vector<144x128xbf16>
    %c0_21 = arith.constant 0 : index
    %c0_22 = arith.constant 0 : index
    %70 = vector.load %arg3[%c0_21, %c0_22] : memref<16x144xbf16, #tpu.memory_space<vmem>>, vector<16x144xbf16>
    %cst_23 = arith.constant dense<0.000000e+00> : vector<16x128xf32>
    %71 = tpu.matmul %70, %69, %cst_23 {dimension_numbers = #tpu.dot_dimension_numbers<[1], [0], [0], [1], [0, 0, 1, 1], [], []>} : vector<16x144xbf16>, vector<144x128xbf16>, vector<16x128xf32> -> vector<16x128xf32>
    %c0_24 = arith.constant 0 : index
    %c0_25 = arith.constant 0 : index
    %72 = vector.load %arg4[%c0_24, %c0_25] : memref<16x3xf32, #tpu.memory_space<vmem>>, vector<16x1xf32>
    %73 = vector.broadcast %72 : vector<16x1xf32> to vector<16x128xf32>
    %74 = arith.addf %71, %73 : vector<16x128xf32>
    %cst_26 = arith.constant 0.000000e+00 : f32
    %75 = vector.broadcast %cst_26 : f32 to vector<16x128xf32>
    %76 = arith.cmpf ogt, %74, %75 : vector<16x128xf32>
    %cst_27 = arith.constant 0.000000e+00 : f32
    %77 = vector.broadcast %cst_27 : f32 to vector<16x128xf32>
    %78 = arith.minimumf %74, %77 : vector<16x128xf32>
    %79 = math.exp %78 : vector<16x128xf32>
    %cst_28 = arith.constant 1.000000e+00 : f32
    %80 = vector.broadcast %cst_28 : f32 to vector<16x128xf32>
    %81 = arith.subf %79, %80 : vector<16x128xf32>
    %82 = arith.select %76, %74, %81 : vector<16x128xi1>, vector<16x128xf32>
    %c0_29 = arith.constant 0 : index
    %c1_30 = arith.constant 1 : index
    %83 = vector.load %arg4[%c0_29, %c1_30] : memref<16x3xf32, #tpu.memory_space<vmem>>, vector<16x1xf32>
    %84 = vector.broadcast %83 : vector<16x1xf32> to vector<16x128xf32>
    %85 = arith.mulf %82, %84 : vector<16x128xf32>
    %c0_31 = arith.constant 0 : index
    %c2_32 = arith.constant 2 : index
    %86 = vector.load %arg4[%c0_31, %c2_32] : memref<16x3xf32, #tpu.memory_space<vmem>>, vector<16x1xf32>
    %87 = vector.broadcast %86 : vector<16x1xf32> to vector<16x128xf32>
    %88 = arith.addf %85, %87 : vector<16x128xf32>
    %89 = arith.truncf %88 : vector<16x128xf32> to vector<16x128xbf16>
    %c0_33 = arith.constant 0 : index
    %c0_34 = arith.constant 0 : index
    %90 = vector.load %arg7[%c0_33, %c0_34] : memref<16x128xbf16, #tpu.memory_space<vmem>>, vector<16x128xbf16>
    tpu.vector_store %arg7[%c0_33, %c0_34], %89 {strides = array<i32>} : memref<16x128xbf16, #tpu.memory_space<vmem>>, vector<16x128xbf16>,
    return
  }
  func.func @transform_0(%arg0: i32) -> (i32, i32) {
    %c0_i32 = arith.constant 0 : i32
    %c0_i32_0 = arith.constant 0 : i32
    %c0_i32_1 = arith.constant 0 : i32
    return %c0_i32, %c0_i32_0 : i32, i32
  }
  func.func @transform_1(%arg0: i32) -> (i32, i32) {
    %c0_i32 = arith.constant 0 : i32
    %c0_i32_0 = arith.constant 0 : i32
    %c0_i32_1 = arith.constant 0 : i32
    return %c0_i32, %c0_i32_0 : i32, i32
  }
  func.func @transform_2(%arg0: i32) -> (i32, i32) {
    %c0_i32 = arith.constant 0 : i32
    %c0_i32_0 = arith.constant 0 : i32
    %c0_i32_1 = arith.constant 0 : i32
    return %c0_i32, %c0_i32_0 : i32, i32
  }
  func.func @transform_3(%arg0: i32) -> (i32, i32) {
    %c0_i32 = arith.constant 0 : i32
    %c0_i32_0 = arith.constant 0 : i32
    %c0_i32_1 = arith.constant 0 : i32
    return %c0_i32, %c0_i32_0 : i32, i32
  }
  func.func @transform_4(%arg0: i32) -> (i32, i32) {
    %c0_i32 = arith.constant 0 : i32
    %c0_i32_0 = arith.constant 0 : i32
    %c0_i32_1 = arith.constant 0 : i32
    return %c0_i32, %c0_i32_0 : i32, i32
  }
  func.func @transform_5(%arg0: i32) -> (i32, i32) {
    %c0_i32 = arith.constant 0 : i32
    %c0_i32_0 = arith.constant 0 : i32
    %c0_i32_1 = arith.constant 0 : i32
    return %c0_i32, %c0_i32_0 : i32, i32
  }
  func.func @transform_6(%arg0: i32) -> (i32, i32) {
    %c0_i32 = arith.constant 0 : i32
    %c0_i32_0 = arith.constant 0 : i32
    %c0_i32_1 = arith.constant 0 : i32
    return %c0_i32, %c0_i32_0 : i32, i32
  }
}

module attributes {stable_mosaic.version = 11 : i64} {
  func.func @kernel(%arg0: i32, %arg1: memref<16x216xbf16, #tpu.memory_space<vmem>>, %arg2: memref<16x3xf32, #tpu.memory_space<vmem>>, %arg3: memref<16x144xbf16, #tpu.memory_space<vmem>>, %arg4: memref<16x3xf32, #tpu.memory_space<vmem>>, %arg5: memref<9x512xbf16, #tpu.memory_space<vmem>>, %arg6: memref<216x512xbf16, #tpu.memory_space<vmem>>, %arg7: memref<16x512xbf16, #tpu.memory_space<vmem>>) attributes {dimension_semantics = [#tpu.dimension_semantics<arbitrary>], iteration_bounds = array<i64: 1>, scalar_prefetch = 0 : i64, scratch_operands = 0 : i64, tpu.core_type = #tpu.core_type<tc>, window_params = [{pipeline_mode = #tpu.pipeline_mode<synchronous>, transform_indices = @transform_0, window_bounds = array<i64: 16, 216>}, {pipeline_mode = #tpu.pipeline_mode<synchronous>, transform_indices = @transform_1, window_bounds = array<i64: 16, 3>}, {pipeline_mode = #tpu.pipeline_mode<synchronous>, transform_indices = @transform_2, window_bounds = array<i64: 16, 144>}, {pipeline_mode = #tpu.pipeline_mode<synchronous>, transform_indices = @transform_3, window_bounds = array<i64: 16, 3>}, {pipeline_mode = #tpu.pipeline_mode<synchronous>, transform_indices = @transform_4, window_bounds = array<i64: 9, 512>}, {pipeline_mode = #tpu.pipeline_mode<synchronous>, transform_indices = @transform_5, window_bounds = array<i64: 216, 512>}, {pipeline_mode = #tpu.pipeline_mode<synchronous>, transform_indices = @transform_6, window_bounds = array<i64: 16, 512>}]} {
    %c0 = arith.constant 0 : index
    %c0_0 = arith.constant 0 : index
    %0 = vector.load %arg1[%c0, %c0_0] : memref<16x216xbf16, #tpu.memory_space<vmem>>, vector<16x216xbf16>
    %c0_1 = arith.constant 0 : index
    %c0_2 = arith.constant 0 : index
    %1 = vector.load %arg6[%c0_1, %c0_2] : memref<216x512xbf16, #tpu.memory_space<vmem>>, vector<216x512xbf16>
    %cst = arith.constant dense<0.000000e+00> : vector<16x512xf32>
    %2 = tpu.matmul %0, %1, %cst {dimension_numbers = #tpu.dot_dimension_numbers<[1], [0], [0], [1], [0, 0, 1, 1], [], []>} : vector<16x216xbf16>, vector<216x512xbf16>, vector<16x512xf32> -> vector<16x512xf32>
    %c0_3 = arith.constant 0 : index
    %c0_4 = arith.constant 0 : index
    %3 = vector.load %arg2[%c0_3, %c0_4] : memref<16x3xf32, #tpu.memory_space<vmem>>, vector<16x1xf32>
    %4 = vector.broadcast %3 : vector<16x1xf32> to vector<16x512xf32>
    %5 = arith.addf %2, %4 : vector<16x512xf32>
    %cst_5 = arith.constant 0.000000e+00 : f32
    %6 = vector.broadcast %cst_5 : f32 to vector<16x512xf32>
    %7 = arith.cmpf ogt, %5, %6 : vector<16x512xf32>
    %cst_6 = arith.constant 0.000000e+00 : f32
    %8 = vector.broadcast %cst_6 : f32 to vector<16x512xf32>
    %9 = arith.minimumf %5, %8 : vector<16x512xf32>
    %10 = math.exp %9 : vector<16x512xf32>
    %cst_7 = arith.constant 1.000000e+00 : f32
    %11 = vector.broadcast %cst_7 : f32 to vector<16x512xf32>
    %12 = arith.subf %10, %11 : vector<16x512xf32>
    %13 = arith.select %7, %5, %12 : vector<16x512xi1>, vector<16x512xf32>
    %c0_8 = arith.constant 0 : index
    %c1 = arith.constant 1 : index
    %14 = vector.load %arg2[%c0_8, %c1] : memref<16x3xf32, #tpu.memory_space<vmem>>, vector<16x1xf32>
    %15 = vector.broadcast %14 : vector<16x1xf32> to vector<16x512xf32>
    %16 = arith.mulf %13, %15 : vector<16x512xf32>
    %c0_9 = arith.constant 0 : index
    %c2 = arith.constant 2 : index
    %17 = vector.load %arg2[%c0_9, %c2] : memref<16x3xf32, #tpu.memory_space<vmem>>, vector<16x1xf32>
    %18 = vector.broadcast %17 : vector<16x1xf32> to vector<16x512xf32>
    %19 = arith.addf %16, %18 : vector<16x512xf32>
    %20 = arith.truncf %19 : vector<16x512xf32> to vector<16x512xbf16>
    %21 = vector.extract_strided_slice %20 {offsets = [0, 495], sizes = [16, 17], strides = [1, 1]} : vector<16x512xbf16> to vector<16x17xbf16>
    %22 = vector.extract_strided_slice %20 {offsets = [0, 0], sizes = [16, 495], strides = [1, 1]} : vector<16x512xbf16> to vector<16x495xbf16>
    %23 = tpu.concatenate %21, %22 in 1 : vector<16x17xbf16>, vector<16x495xbf16> -> vector<16x512xbf16>
    %c0_10 = arith.constant 0 : index
    %c0_11 = arith.constant 0 : index
    %24 = vector.load %arg5[%c0_10, %c0_11] : memref<9x512xbf16, #tpu.memory_space<vmem>>, vector<1x512xbf16>
    %25 = vector.broadcast %24 : vector<1x512xbf16> to vector<16x512xbf16>
    %26 = arith.mulf %23, %25 : vector<16x512xbf16>
    %27 = vector.extract_strided_slice %20 {offsets = [0, 496], sizes = [16, 16], strides = [1, 1]} : vector<16x512xbf16> to vector<16x16xbf16>
    %28 = vector.extract_strided_slice %20 {offsets = [0, 0], sizes = [16, 496], strides = [1, 1]} : vector<16x512xbf16> to vector<16x496xbf16>
    %29 = tpu.concatenate %27, %28 in 1 : vector<16x16xbf16>, vector<16x496xbf16> -> vector<16x512xbf16>
    %c1_12 = arith.constant 1 : index
    %c0_13 = arith.constant 0 : index
    %30 = vector.load %arg5[%c1_12, %c0_13] : memref<9x512xbf16, #tpu.memory_space<vmem>>, vector<1x512xbf16>
    %31 = vector.broadcast %30 : vector<1x512xbf16> to vector<16x512xbf16>
    %32 = arith.mulf %29, %31 : vector<16x512xbf16>
    %33 = vector.extract_strided_slice %20 {offsets = [0, 497], sizes = [16, 15], strides = [1, 1]} : vector<16x512xbf16> to vector<16x15xbf16>
    %34 = vector.extract_strided_slice %20 {offsets = [0, 0], sizes = [16, 497], strides = [1, 1]} : vector<16x512xbf16> to vector<16x497xbf16>
    %35 = tpu.concatenate %33, %34 in 1 : vector<16x15xbf16>, vector<16x497xbf16> -> vector<16x512xbf16>
    %c2_14 = arith.constant 2 : index
    %c0_15 = arith.constant 0 : index
    %36 = vector.load %arg5[%c2_14, %c0_15] : memref<9x512xbf16, #tpu.memory_space<vmem>>, vector<1x512xbf16>
    %37 = vector.broadcast %36 : vector<1x512xbf16> to vector<16x512xbf16>
    %38 = arith.mulf %35, %37 : vector<16x512xbf16>
    %39 = vector.extract_strided_slice %20 {offsets = [0, 511], sizes = [16, 1], strides = [1, 1]} : vector<16x512xbf16> to vector<16x1xbf16>
    %40 = vector.extract_strided_slice %20 {offsets = [0, 0], sizes = [16, 511], strides = [1, 1]} : vector<16x512xbf16> to vector<16x511xbf16>
    %41 = tpu.concatenate %39, %40 in 1 : vector<16x1xbf16>, vector<16x511xbf16> -> vector<16x512xbf16>
    %c3 = arith.constant 3 : index
    %c0_16 = arith.constant 0 : index
    %42 = vector.load %arg5[%c3, %c0_16] : memref<9x512xbf16, #tpu.memory_space<vmem>>, vector<1x512xbf16>
    %43 = vector.broadcast %42 : vector<1x512xbf16> to vector<16x512xbf16>
    %44 = arith.mulf %41, %43 : vector<16x512xbf16>
    %45 = vector.extract_strided_slice %20 {offsets = [0, 1], sizes = [16, 511], strides = [1, 1]} : vector<16x512xbf16> to vector<16x511xbf16>
    %46 = vector.extract_strided_slice %20 {offsets = [0, 0], sizes = [16, 1], strides = [1, 1]} : vector<16x512xbf16> to vector<16x1xbf16>
    %47 = tpu.concatenate %45, %46 in 1 : vector<16x511xbf16>, vector<16x1xbf16> -> vector<16x512xbf16>
    %c5 = arith.constant 5 : index
    %c0_17 = arith.constant 0 : index
    %48 = vector.load %arg5[%c5, %c0_17] : memref<9x512xbf16, #tpu.memory_space<vmem>>, vector<1x512xbf16>
    %49 = vector.broadcast %48 : vector<1x512xbf16> to vector<16x512xbf16>
    %50 = arith.mulf %47, %49 : vector<16x512xbf16>
    %51 = vector.extract_strided_slice %20 {offsets = [0, 15], sizes = [16, 497], strides = [1, 1]} : vector<16x512xbf16> to vector<16x497xbf16>
    %52 = vector.extract_strided_slice %20 {offsets = [0, 0], sizes = [16, 15], strides = [1, 1]} : vector<16x512xbf16> to vector<16x15xbf16>
    %53 = tpu.concatenate %51, %52 in 1 : vector<16x497xbf16>, vector<16x15xbf16> -> vector<16x512xbf16>
    %c6 = arith.constant 6 : index
    %c0_18 = arith.constant 0 : index
    %54 = vector.load %arg5[%c6, %c0_18] : memref<9x512xbf16, #tpu.memory_space<vmem>>, vector<1x512xbf16>
    %55 = vector.broadcast %54 : vector<1x512xbf16> to vector<16x512xbf16>
    %56 = arith.mulf %53, %55 : vector<16x512xbf16>
    %57 = vector.extract_strided_slice %20 {offsets = [0, 16], sizes = [16, 496], strides = [1, 1]} : vector<16x512xbf16> to vector<16x496xbf16>
    %58 = vector.extract_strided_slice %20 {offsets = [0, 0], sizes = [16, 16], strides = [1, 1]} : vector<16x512xbf16> to vector<16x16xbf16>
    %59 = tpu.concatenate %57, %58 in 1 : vector<16x496xbf16>, vector<16x16xbf16> -> vector<16x512xbf16>
    %c7 = arith.constant 7 : index
    %c0_19 = arith.constant 0 : index
    %60 = vector.load %arg5[%c7, %c0_19] : memref<9x512xbf16, #tpu.memory_space<vmem>>, vector<1x512xbf16>
    %61 = vector.broadcast %60 : vector<1x512xbf16> to vector<16x512xbf16>
    %62 = arith.mulf %59, %61 : vector<16x512xbf16>
    %63 = vector.extract_strided_slice %20 {offsets = [0, 17], sizes = [16, 495], strides = [1, 1]} : vector<16x512xbf16> to vector<16x495xbf16>
    %64 = vector.extract_strided_slice %20 {offsets = [0, 0], sizes = [16, 17], strides = [1, 1]} : vector<16x512xbf16> to vector<16x17xbf16>
    %65 = tpu.concatenate %63, %64 in 1 : vector<16x495xbf16>, vector<16x17xbf16> -> vector<16x512xbf16>
    %c8 = arith.constant 8 : index
    %c0_20 = arith.constant 0 : index
    %66 = vector.load %arg5[%c8, %c0_20] : memref<9x512xbf16, #tpu.memory_space<vmem>>, vector<1x512xbf16>
    %67 = vector.broadcast %66 : vector<1x512xbf16> to vector<16x512xbf16>
    %68 = arith.mulf %65, %67 : vector<16x512xbf16>
    %69 = tpu.concatenate %26, %32, %38, %44, %20, %50, %56, %62, %68 in 0 : vector<16x512xbf16>, vector<16x512xbf16>, vector<16x512xbf16>, vector<16x512xbf16>, vector<16x512xbf16>, vector<16x512xbf16>, vector<16x512xbf16>, vector<16x512xbf16>, vector<16x512xbf16> -> vector<144x512xbf16>
    %c0_21 = arith.constant 0 : index
    %c0_22 = arith.constant 0 : index
    %70 = vector.load %arg3[%c0_21, %c0_22] : memref<16x144xbf16, #tpu.memory_space<vmem>>, vector<16x144xbf16>
    %cst_23 = arith.constant dense<0.000000e+00> : vector<16x512xf32>
    %71 = tpu.matmul %70, %69, %cst_23 {dimension_numbers = #tpu.dot_dimension_numbers<[1], [0], [0], [1], [0, 0, 1, 1], [], []>} : vector<16x144xbf16>, vector<144x512xbf16>, vector<16x512xf32> -> vector<16x512xf32>
    %c0_24 = arith.constant 0 : index
    %c0_25 = arith.constant 0 : index
    %72 = vector.load %arg4[%c0_24, %c0_25] : memref<16x3xf32, #tpu.memory_space<vmem>>, vector<16x1xf32>
    %73 = vector.broadcast %72 : vector<16x1xf32> to vector<16x512xf32>
    %74 = arith.addf %71, %73 : vector<16x512xf32>
    %cst_26 = arith.constant 0.000000e+00 : f32
    %75 = vector.broadcast %cst_26 : f32 to vector<16x512xf32>
    %76 = arith.cmpf ogt, %74, %75 : vector<16x512xf32>
    %cst_27 = arith.constant 0.000000e+00 : f32
    %77 = vector.broadcast %cst_27 : f32 to vector<16x512xf32>
    %78 = arith.minimumf %74, %77 : vector<16x512xf32>
    %79 = math.exp %78 : vector<16x512xf32>
    %cst_28 = arith.constant 1.000000e+00 : f32
    %80 = vector.broadcast %cst_28 : f32 to vector<16x512xf32>
    %81 = arith.subf %79, %80 : vector<16x512xf32>
    %82 = arith.select %76, %74, %81 : vector<16x512xi1>, vector<16x512xf32>
    %c0_29 = arith.constant 0 : index
    %c1_30 = arith.constant 1 : index
    %83 = vector.load %arg4[%c0_29, %c1_30] : memref<16x3xf32, #tpu.memory_space<vmem>>, vector<16x1xf32>
    %84 = vector.broadcast %83 : vector<16x1xf32> to vector<16x512xf32>
    %85 = arith.mulf %82, %84 : vector<16x512xf32>
    %c0_31 = arith.constant 0 : index
    %c2_32 = arith.constant 2 : index
    %86 = vector.load %arg4[%c0_31, %c2_32] : memref<16x3xf32, #tpu.memory_space<vmem>>, vector<16x1xf32>
    %87 = vector.broadcast %86 : vector<16x1xf32> to vector<16x512xf32>
    %88 = arith.addf %85, %87 : vector<16x512xf32>
    %89 = arith.truncf %88 : vector<16x512xf32> to vector<16x512xbf16>
    %c0_33 = arith.constant 0 : index
    %c0_34 = arith.constant 0 : index
    %90 = vector.load %arg7[%c0_33, %c0_34] : memref<16x512xbf16, #tpu.memory_space<vmem>>, vector<16x512xbf16>
    tpu.vector_store %arg7[%c0_33, %c0_34], %89 {strides = array<i32>} : memref<16x512xbf16, #tpu.memory_space<vmem>>, vector<16x512xbf16>,
    return
  }
  func.func @transform_0(%arg0: i32) -> (i32, i32) {
    %c0_i32 = arith.constant 0 : i32
    %c0_i32_0 = arith.constant 0 : i32
    %c0_i32_1 = arith.constant 0 : i32
    return %c0_i32, %c0_i32_0 : i32, i32
  }
  func.func @transform_1(%arg0: i32) -> (i32, i32) {
    %c0_i32 = arith.constant 0 : i32
    %c0_i32_0 = arith.constant 0 : i32
    %c0_i32_1 = arith.constant 0 : i32
    return %c0_i32, %c0_i32_0 : i32, i32
  }
  func.func @transform_2(%arg0: i32) -> (i32, i32) {
    %c0_i32 = arith.constant 0 : i32
    %c0_i32_0 = arith.constant 0 : i32
    %c0_i32_1 = arith.constant 0 : i32
    return %c0_i32, %c0_i32_0 : i32, i32
  }
  func.func @transform_3(%arg0: i32) -> (i32, i32) {
    %c0_i32 = arith.constant 0 : i32
    %c0_i32_0 = arith.constant 0 : i32
    %c0_i32_1 = arith.constant 0 : i32
    return %c0_i32, %c0_i32_0 : i32, i32
  }
  func.func @transform_4(%arg0: i32) -> (i32, i32) {
    %c0_i32 = arith.constant 0 : i32
    %c0_i32_0 = arith.constant 0 : i32
    %c0_i32_1 = arith.constant 0 : i32
    return %c0_i32, %c0_i32_0 : i32, i32
  }
  func.func @transform_5(%arg0: i32) -> (i32, i32) {
    %c0_i32 = arith.constant 0 : i32
    %c0_i32_0 = arith.constant 0 : i32
    %c0_i32_1 = arith.constant 0 : i32
    return %c0_i32, %c0_i32_0 : i32, i32
  }
  func.func @transform_6(%arg0: i32) -> (i32, i32) {
    %c0_i32 = arith.constant 0 : i32
    %c0_i32_0 = arith.constant 0 : i32
    %c0_i32_1 = arith.constant 0 : i32
    return %c0_i32, %c0_i32_0 : i32, i32
  }
}

module attributes {stable_mosaic.version = 11 : i64} {
  func.func @kernel(%arg0: i32, %arg1: i32, %arg2: memref<16x72xbf16, #tpu.memory_space<vmem>>, %arg3: memref<72x256xbf16, #tpu.memory_space<vmem>>, %arg4: memref<16x3xf32, #tpu.memory_space<vmem>>, %arg5: memref<16x256xf32, #tpu.memory_space<vmem>>) attributes {dimension_semantics = [#tpu.dimension_semantics<parallel>, #tpu.dimension_semantics<arbitrary>], iteration_bounds = array<i64: 2, 1>, scalar_prefetch = 0 : i64, scratch_operands = 0 : i64, tpu.core_type = #tpu.core_type<tc>, window_params = [{transform_indices = @transform_0, window_bounds = array<i64: 16, 72>}, {transform_indices = @transform_1, window_bounds = array<i64: 72, 256>}, {pipeline_mode = #tpu.pipeline_mode<synchronous>, transform_indices = @transform_2, window_bounds = array<i64: 16, 3>}, {transform_indices = @transform_3, window_bounds = array<i64: 16, 256>}]} {
    %c0 = arith.constant 0 : index
    %c0_0 = arith.constant 0 : index
    %0 = vector.load %arg2[%c0, %c0_0] : memref<16x72xbf16, #tpu.memory_space<vmem>>, vector<16x72xbf16>
    %c0_1 = arith.constant 0 : index
    %c0_2 = arith.constant 0 : index
    %1 = vector.load %arg3[%c0_1, %c0_2] : memref<72x256xbf16, #tpu.memory_space<vmem>>, vector<72x256xbf16>
    %cst = arith.constant dense<0.000000e+00> : vector<16x256xf32>
    %2 = tpu.matmul %0, %1, %cst {dimension_numbers = #tpu.dot_dimension_numbers<[1], [0], [0], [1], [0, 0, 1, 1], [], []>} : vector<16x72xbf16>, vector<72x256xbf16>, vector<16x256xf32> -> vector<16x256xf32>
    %c0_3 = arith.constant 0 : index
    %c0_4 = arith.constant 0 : index
    %3 = vector.load %arg4[%c0_3, %c0_4] : memref<16x3xf32, #tpu.memory_space<vmem>>, vector<16x1xf32>
    %4 = vector.broadcast %3 : vector<16x1xf32> to vector<16x256xf32>
    %5 = arith.addf %2, %4 : vector<16x256xf32>
    %c0_5 = arith.constant 0 : index
    %c0_6 = arith.constant 0 : index
    %6 = vector.load %arg5[%c0_5, %c0_6] : memref<16x256xf32, #tpu.memory_space<vmem>>, vector<16x256xf32>
    tpu.vector_store %arg5[%c0_5, %c0_6], %5 {strides = array<i32>} : memref<16x256xf32, #tpu.memory_space<vmem>>, vector<16x256xf32>,
    return
  }
  func.func @transform_0(%arg0: i32, %arg1: i32) -> (i32, i32) {
    %c0_i32 = arith.constant 0 : i32
    %c0_i32_0 = arith.constant 0 : i32
    return %c0_i32, %arg1 : i32, i32
  }
  func.func @transform_1(%arg0: i32, %arg1: i32) -> (i32, i32) {
    %c0_i32 = arith.constant 0 : i32
    return %arg1, %arg0 : i32, i32
  }
  func.func @transform_2(%arg0: i32, %arg1: i32) -> (i32, i32) {
    %c0_i32 = arith.constant 0 : i32
    %c0_i32_0 = arith.constant 0 : i32
    %c0_i32_1 = arith.constant 0 : i32
    return %c0_i32, %c0_i32_0 : i32, i32
  }
  func.func @transform_3(%arg0: i32, %arg1: i32) -> (i32, i32) {
    %c0_i32 = arith.constant 0 : i32
    %c0_i32_0 = arith.constant 0 : i32
    return %c0_i32, %arg0 : i32, i32
  }
}

</mosaic_0001>

<bundles_post_ra>
// kernel: tile.285
= control target key start
LH: loop header
LB: loop body
LE: loop exit
PB: predicated region body
PF: predicated region fallthrough
CT: control target
= control target key end

     0   :  { %vm19_vm0 = vcmask 130048   ;;  %vm25_vm1 = vcmask 261248   ;;  %v39_v6 = vmov 0   ;;  %s56_s0 = inlined_call_operand.vmem [shape: pred[2,16], index: 0, kind: input, shape index: {}]   ;;  %s57_s1 = inlined_call_operand.vmem [shape: pred[1,32], index: 1, kind: output, shape index: {}]  }
   0x1   :  { %v12_v0 = vld [vmem:[%s56_s0] sm:$0x1]  ;;  %s38_s0 = smov 16  }
   0x2   :  { %v13_v1 = vunpack.c.0.s8 %v12_v0 }
   0x4   :  { %17 = vst [vmem:[#allocation1] sm:$0xf] %v13_v1 }
   0xb   :  { %v22_v2 = vld [vmem:[#allocation1 + $0x1] sm:$0x1]   ;;  %v18_v3 = vld [vmem:[#allocation1] sm:$0x1]  }
   0xc   :  { %23 = vrot.lane.b32.xlu0 %v22_v2, %s38_s0  ;;  %20 = vst.msk [vmem:[#allocation0] sm:$0x1] %vm19_vm0, %v18_v3  }
  0x7e   :  { %v24_v4 = vpop.permute.xlu0 %23  }
  0x7f   :  { %26 = vst.msk [vmem:[#allocation0] sm:$0x1] %vm25_vm1, %v24_v4  }
  0x86   :  { %v31_v5 = vld [vmem:[#allocation0] sm:$0xf] }
  0x87   :  { %v33_v7 = vpack.c.b16 %v39_v6, %v31_v5 }
  0x89   :  { %v34_v8 = vpack.c.b8 %v39_v6, %v33_v7 }
  0x8b   :  { %35 = vst [vmem:[%s57_s1] sm:$0x1] %v34_v8 }

// kernel: tile.272
= control target key start
LH: loop header
LB: loop body
LE: loop exit
PB: predicated region body
PF: predicated region fallthrough
CT: control target
= control target key end

     0   :  { %v13_v2 = vmov 0   ;;  %s30_s0 = inlined_call_operand.vmem [shape: pred[16], index: 0, kind: input, shape index: {}]   ;;  %s31_s1 = inlined_call_operand.vmem [shape: pred[2,16], index: 1, kind: output, shape index: {}]  }
   0x1   :  { %v4_v0 = vld [vmem:[%s30_s0] ss:$0 sm:$0xff] }
   0x2   :  { %v7_v1 = vand.u32 255, %v4_v0 }
   0x4   :  { %v8_v3 = vpack.c.b16 %v13_v2, %v7_v1 }
   0x6   :  { %v9_v4 = vpack.c.b8 %v13_v2, %v8_v3 }
   0x8   :  { %11 = vst [vmem:[%s31_s1] sm:$0x1] %v9_v4 }

// kernel: tile.308
= control target key start
LH: loop header
LB: loop body
LE: loop exit
PB: predicated region body
PF: predicated region fallthrough
CT: control target
= control target key end

     0   :  { %v13_v2 = vmov 0   ;;  %s30_s0 = inlined_call_operand.vmem [shape: pred[64], index: 0, kind: input, shape index: {}]   ;;  %s31_s1 = inlined_call_operand.vmem [shape: pred[2,64], index: 1, kind: output, shape index: {}]  }
   0x1   :  { %v4_v0 = vld [vmem:[%s30_s0] ss:$0 sm:$0xff] }
   0x2   :  { %v7_v1 = vand.u32 255, %v4_v0 }
   0x4   :  { %v8_v3 = vpack.c.b16 %v13_v2, %v7_v1 }
   0x6   :  { %v9_v4 = vpack.c.b8 %v13_v2, %v8_v3 }
   0x8   :  { %11 = vst [vmem:[%s31_s1] sm:$0x1] %v9_v4 }

// kernel: tile.321
= control target key start
LH: loop header
LB: loop body
LE: loop exit
PB: predicated region body
PF: predicated region fallthrough
CT: control target
= control target key end

     0   :  { %vm19_vm0 = vcmask 523264   ;;  %vm25_vm1 = vcmask 1048064   ;;  %v39_v6 = vmov 0   ;;  %s56_s0 = inlined_call_operand.vmem [shape: pred[2,64], index: 0, kind: input, shape index: {}]   ;;  %s57_s1 = inlined_call_operand.vmem [shape: pred[1,128], index: 1, kind: output, shape index: {}]  }
   0x1   :  { %v12_v0 = vld [vmem:[%s56_s0] sm:$0x1]  ;;  %s38_s0 = smov 64  }
   0x2   :  { %v13_v1 = vunpack.c.0.s8 %v12_v0 }
   0x4   :  { %17 = vst [vmem:[#allocation1] sm:$0xf] %v13_v1 }
   0xb   :  { %v22_v2 = vld [vmem:[#allocation1 + $0x1] sm:$0x1]   ;;  %v18_v3 = vld [vmem:[#allocation1] sm:$0x1]  }
   0xc   :  { %23 = vrot.lane.b32.xlu0 %v22_v2, %s38_s0  ;;  %20 = vst.msk [vmem:[#allocation0] sm:$0x1] %vm19_vm0, %v18_v3  }
  0x7e   :  { %v24_v4 = vpop.permute.xlu0 %23  }
  0x7f   :  { %26 = vst.msk [vmem:[#allocation0] sm:$0x1] %vm25_vm1, %v24_v4  }
  0x86   :  { %v31_v5 = vld [vmem:[#allocation0] sm:$0xf] }
  0x87   :  { %v33_v7 = vpack.c.b16 %v39_v6, %v31_v5 }
  0x89   :  { %v34_v8 = vpack.c.b8 %v39_v6, %v33_v7 }
  0x8b   :  { %35 = vst [vmem:[%s57_s1] sm:$0x1] %v34_v8 }

// kernel: unet_forward.8
= control target key start
LH: loop header
LB: loop body
LE: loop exit
PB: predicated region body
PF: predicated region fallthrough
CT: control target
= control target key end

     0   :  { %v1155_v1 = vmov 0   ;;  %v1156_v3 = vmov 1   ;;  %vm107_vm0 = vcmask 1041408   ;;  %vm103_vm1 = vcmask 293888   ;;  %s1160_s22 = smov 113   ;;  %s1161_s23 = smov 16   ;;  %s1462_s5 = inlined_call_operand.vmem [shape: bf16[36,512], index: 5, kind: input, shape index: {}]   ;;  %s1463_s1 = inlined_call_operand.vmem [shape: f32[16,3], index: 1, kind: input, shape index: {}]   ;;  %s1464_s0 = inlined_call_operand.vmem [shape: bf16[16,36], index: 0, kind: input, shape index: {}]   ;;  %s1465_s2 = inlined_call_operand.vmem [shape: bf16[16,144], index: 2, kind: input, shape index: {}]   ;;  %s1466_s3 = inlined_call_operand.vmem [shape: f32[16,3], index: 3, kind: input, shape index: {}]   ;;  %s1467_s4 = inlined_call_operand.vmem [shape: bf16[9,512], index: 4, kind: input, shape index: {}]   ;;  %s1468_s6 = inlined_call_operand.vmem [shape: bf16[16,512], index: 6, kind: output, shape index: {}]  }
   0x1   :  { %v1083_v0 = vld [vmem:[%s1462_s5 + $0x4] ss:$16 sps:$4 sm:$0xff]   ;;  %152 = vmatprep.mubr.bf16.mxu0 %v1155_v1  ;;  %195 = vmatprep.mubr.bf16.mxu1 %v1155_v1  ;;  %v1085_v2 = vld [vmem:[%s1462_s5 + $0xc] ss:$16 sps:$4 sm:$0xff]   ;;  %v1087_v4 = vld [vmem:[%s1462_s5] ss:$16 sps:$4 sm:$0xff]  }
   0x2   :  { %1074 = vset.pattern.permute.xlu0 %v1155_v1  ;;  %1075 = vset.pattern.permute.xlu1 %v1156_v3  ;;  %v1088_v5 = vld [vmem:[%s1462_s5 + $0x8] ss:$16 sps:$4 sm:$0xff]   ;;  %v1089_v6 = vld [vmem:[%s1462_s5 + $0x24] ss:$16 sps:$4 sm:$0xff]   ;;  %v1091_v7 = vld [vmem:[%s1462_s5 + $0x2c] ss:$16 sps:$4 sm:$0xff]  }
   0x3   :  { %120 = vmatprep.subr.bf16.mxu0 %v1083_v0  ;;  %163 = vmatprep.subr.bf16.mxu1 %v1085_v2  ;;  %v1093_v8 = vld [vmem:[%s1462_s5 + $0x20] ss:$16 sps:$4 sm:$0xff]   ;;  %v1094_v9 = vld [vmem:[%s1462_s5 + $0x28] ss:$16 sps:$4 sm:$0xff]   ;;  %v1157_v21 = vmov 2   ;;  %s1162_s24 = smov 15  }
   0x4   :  { %121 = vmatpush1.bf16.msra.mxu0 %v1087_v4  ;;  %164 = vmatpush1.bf16.msra.mxu1 %v1088_v5  ;;  %v34_v10 = vld [vmem:[%s1462_s5 + $0x40] sm:$0x33]  ;;  %v35_v11 = vld [vmem:[%s1462_s5 + $0x48] sm:$0x33]  ;;  %s1163_s25 = smov 1   ;;  %s1164_s26 = smov 112  }
   0x5   :  { %122 = vmatprep.subr.bf16.mxu0 %v1089_v6  ;;  %165 = vmatprep.subr.bf16.mxu1 %v1091_v7  ;;  %v1008_v12 = vcombine.high %v34_v10, %v34_v10  ;;  %v1010_v13 = vcombine.high %v35_v11, %v35_v11  ;;  %v1007_v14 = vcombine.low %v34_v10, %v34_v10  ;;  %v36_v16 = vld [vmem:[%s1463_s1] sm:$0xff]  ;;  %v37_v20 = vld [vmem:[%s1463_s1 + $0x8] sm:$0xff]  ;;  %s1159_s1 = smov 17   ;;  %vm366_vm10 = vcmask 130048   ;;  %s1165_s29 = smov 111  }
   0x6   :  { %v1009_v15 = vcombine.low %v35_v11, %v35_v11  ;;  %40 = vperm.xlu0 %1074, %v36_v16   ;;  %255 = vperm.xlu1 %1075, %v36_v16   ;;  %v1099_v19 = vld [vmem:[%s1464_s0] sm:$0xff]   ;;  %s1158_s0 = smov 127   ;;  %vm302_vm11 = vcmask 138240   ;;  %vm418_vm12 = vcmask 121856   ;;  %vm482_vm13 = vcmask 7168  }
   0x7   :  { %v109_v17 = vsel %vm107_vm0, %v1007_v14, 0  ;;  %vm534_vm14 = vcmask 1039360   ;;  %vm602_vm15 = vcmask 924672  }
   0x8   :  { %123 = vmatpush1.bf16.msra.mxu0 %v1093_v8  ;;  %166 = vmatpush1.bf16.msra.mxu1 %v1094_v9  ;;  %v115_v18 = vsel %vm107_vm0, %v1009_v15, 0 }
   0x9   :  { %1011 = vmatprep.subr.msk.bf16.mxu0 %vm107_vm0, %v1008_v12  ;;  %1013 = vmatprep.subr.msk.bf16.mxu1 %vm107_vm0, %v1010_v13  ;;  %vm666_vm0 = vcmask 916480  }
   0xa   :  { %45 = vperm.xlu0 %1074, %v37_v20   ;;  %259 = vperm.xlu1 %1075, %v37_v20  }
   0xc   :  { %125 = vmatpush1.bf16.msra.mxu0 %v109_v17  ;;  %168 = vmatpush1.bf16.msra.mxu1 %v115_v18 }
   0xe   :  { %1076 = vset.pattern.permute.xlu0 %v1157_v21  ;;  %1077 = vset.pattern.permute.xlu1 %v1157_v21 }
   0xf   :  { %1012 = vmatmul.mubr.msk.bf16.vlgmr.msra.gmra.mrb[0].mxu0 %vm103_vm1, %v1099_v19  ;;  %1014 = vmatmul.mubr.msk.bf16.vlgmr.msra.gmra.mrb[0].mxu1 %vm103_vm1, %v1099_v19  ;;  %vm718_vm1 = vcmask 908288  }
  0x10   :  { %271 = vperm.xlu0 %1076, %v36_v16   ;;  %275 = vperm.xlu1 %1077, %v37_v20  }
  0x14   :  { %1078 = vset.pattern.permute.xlu1 %v1155_v1  ;;  %1079 = vset.pattern.permute.xlu0 %v1155_v1 }
  0x85   :  { %v41_v22 = vpop.permute.xlu0 %40  ;;  %v256_v56 = vpop.permute.xlu1 %255 }
  0x89   :  { %v46_v37 = vpop.permute.xlu0 %45  ;;  %v260_v1 = vpop.permute.xlu1 %259 }
  0x8f   :  { %v272_v17 = vpop.permute.xlu0 %271  ;;  %v276_v18 = vpop.permute.xlu1 %275 }
  0xe2   :  { %v154_v23 = vpop.f32.mrb[0].mxu0  ;;  %v197_v24 = vpop.f32.mrb[0].mxu1 }
  0xe3   :  { %v155_v25 = vadd.f32 %v154_v23, %v41_v22  ;;  %v198_v26 = vadd.f32 %v197_v24, %v41_v22  ;;  %v156_v27 = vpop.f32.mrb[1].mxu0  ;;  %v199_v28 = vpop.f32.mrb[1].mxu1 }
  0xe4   :  { %v157_v29 = vadd.f32 %v156_v27, %v41_v22  ;;  %v200_v30 = vadd.f32 %v199_v28, %v41_v22  ;;  %v158_v31 = vpop.f32.mrb[2].mxu0  ;;  %v201_v32 = vpop.f32.mrb[2].mxu1 }
  0xe5   :  { %v214_v33 = vmin.f32 %v155_v25, 0.0  ;;  %v216_v34 = vmin.f32 %v198_v26, 0.0  ;;  %v160_v35 = vpop.f32.mrb[3].mxu0  ;;  %v203_v36 = vpop.f32.mrb[3].mxu1  ;;  %v159_v42 = vadd.f32 %v158_v31, %v46_v37  ;;  %v202_v43 = vadd.f32 %v201_v32, %v46_v37 }
  0xe6   :  { %v215_v38 = vmin.f32 %v157_v29, 0.0  ;;  %v217_v39 = vmin.f32 %v200_v30, 0.0  ;;  %v161_v46 = vadd.f32 %v160_v35, %v46_v37  ;;  %v204_v47 = vadd.f32 %v203_v36, %v46_v37 }
  0xe7   :  { %v222_v40 = vmul.f32 1.442695, %v214_v33  ;;  %v226_v41 = vmul.f32 1.442695, %v216_v34  ;;  %v218_v48 = vmin.f32 %v159_v42, 0.0  ;;  %v220_v49 = vmin.f32 %v202_v43, 0.0 }
  0xe8   :  { %v224_v44 = vmul.f32 1.442695, %v215_v38  ;;  %v228_v45 = vmul.f32 1.442695, %v217_v39  ;;  %v219_v50 = vmin.f32 %v161_v46, 0.0  ;;  %v221_v52 = vmin.f32 %v204_v47, 0.0 }
  0xe9   :  { %1123 = vpow2.f32 %v222_v40  ;;  %v230_v51 = vmul.f32 1.442695, %v218_v48  ;;  %v234_v53 = vmul.f32 1.442695, %v220_v49  ;;  %vm206_vm2 = vcmp.gt.f32.partialorder %v155_v25, 0.0 }
  0xea   :  { %1125 = vpow2.f32 %v226_v41  ;;  %v232_v54 = vmul.f32 1.442695, %v219_v50  ;;  %v236_v55 = vmul.f32 1.442695, %v221_v52  ;;  %vm208_vm3 = vcmp.gt.f32.partialorder %v198_v26, 0.0 }
  0xeb   :  { %1127 = vpow2.f32 %v224_v44  ;;  %vm207_vm4 = vcmp.gt.f32.partialorder %v157_v29, 0.0  ;;  %vm209_vm5 = vcmp.gt.f32.partialorder %v200_v30, 0.0  ;;  %vm210_vm6 = vcmp.gt.f32.partialorder %v159_v42, 0.0  ;;  %v777_v44 = vld [vmem:[%s1466_s3 + $0x8] sm:$0xff]  ;;  %v314_v52 = vld [vmem:[%s1467_s4] sm:$0x11] }
  0xec   :  { %1129 = vpow2.f32 %v228_v45  ;;  %vm212_vm7 = vcmp.gt.f32.partialorder %v202_v43, 0.0  ;;  %vm211_vm8 = vcmp.gt.f32.partialorder %v161_v46, 0.0  ;;  %vm213_vm9 = vcmp.gt.f32.partialorder %v204_v47, 0.0 }
  0xed   :  { %1131 = vpow2.f32 %v230_v51  ;;  %v329_v45 = vlaneseq }
  0xee   :  { %1133 = vpow2.f32 %v234_v53 }
  0xef   :  { %1135 = vpow2.f32 %v232_v54  ;;  %v1306_v50 = vshrl.u32 %v329_v45, 7  ;;  %v1024_v54 = vcombine.high %v314_v52, %v314_v52 }
  0xf0   :  { %1137 = vpow2.f32 %v236_v55 }
  0xf3   :  { %v1124_v57 = vpop.eup %1123 }
  0xf4   :  { %v1126_v58 = vpop.eup %1125  ;;  %v1015_v59 = vadd.f32 -1.0, %v1124_v57 }
  0xf5   :  { %v1128_v60 = vpop.eup %1127  ;;  %v1017_v61 = vadd.f32 -1.0, %v1126_v58 }
  0xf6   :  { %v1130_v62 = vpop.eup %1129  ;;  %v246_v63 = vsel %vm206_vm2, %v155_v25, %v1015_v59  ;;  %v1016_v0 = vadd.f32 -1.0, %v1128_v60  ;;  %v334_v60 = vpack.i.b16 %v1024_v54, %v1024_v54 }
  0xf7   :  { %v1132_v2 = vpop.eup %1131  ;;  %v248_v4 = vsel %vm208_vm3, %v198_v26, %v1017_v61  ;;  %v1018_v5 = vadd.f32 -1.0, %v1130_v62  ;;  %v262_v12 = vmul.f32 %v256_v56, %v246_v63 }
  0xf8   :  { %v1134_v6 = vpop.eup %1133  ;;  %v247_v7 = vsel %vm207_vm4, %v157_v29, %v1016_v0  ;;  %v1019_v8 = vadd.f32 -1.0, %v1132_v2  ;;  %v264_v16 = vmul.f32 %v256_v56, %v248_v4  ;;  %v385_v4 = vshrl.u32 %v1024_v54, 16 }
  0xf9   :  { %v1136_v9 = vpop.eup %1135  ;;  %v249_v10 = vsel %vm209_vm5, %v200_v30, %v1018_v5  ;;  %v1021_v11 = vadd.f32 -1.0, %v1134_v6  ;;  %v263_v22 = vmul.f32 %v256_v56, %v247_v7  ;;  %v278_v29 = vadd.f32 %v272_v17, %v262_v12  ;;  %v431_v12 = vld [vmem:[%s1467_s4 + $0x8] sm:$0x22] }
  0xfa   :  { %v1138_v13 = vpop.eup %1137  ;;  %v250_v14 = vsel %vm210_vm6, %v159_v42, %v1019_v8  ;;  %v1020_v15 = vadd.f32 -1.0, %v1136_v9  ;;  %v265_v25 = vmul.f32 %v256_v56, %v249_v10  ;;  %v280_v32 = vadd.f32 %v272_v17, %v264_v16  ;;  %v1120_v42 = vld [vmem:[%s1465_s2 + $0x4] ss:$8 sps:$4 sm:$0xff]  }
  0xfb   :  { %v252_v19 = vsel %vm212_vm7, %v202_v43, %v1021_v11  ;;  %v1022_v20 = vadd.f32 -1.0, %v1138_v13  ;;  %v266_v23 = vmul.f32 %v260_v1, %v250_v14  ;;  %v279_v34 = vadd.f32 %v272_v17, %v263_v22  ;;  %1045 = vmatprep.mubr.msk.bf16.mxu0 %vm366_vm10, %v1120_v42  ;;  %1046 = vmatprep.mubr.msk.bf16.mxu1 %vm366_vm10, %v1120_v42  ;;  %v776_v43 = vld [vmem:[%s1466_s3] sm:$0xff] }
  0xfc   :  { %v251_v24 = vsel %vm211_vm8, %v161_v46, %v1020_v15  ;;  %v268_v26 = vmul.f32 %v260_v1, %v252_v19  ;;  %v281_v37 = vadd.f32 %v272_v17, %v265_v25  ;;  %v315_v46 = vld [vmem:[%s1467_s4 + $0x8] sm:$0x11]  ;;  %v1023_v56 = vcombine.low %v314_v52, %v314_v52  ;;  %v546_v52 = vld [vmem:[%s1467_s4] sm:$0x44] }
  0xfd   :  { %v253_v27 = vsel %vm213_vm9, %v204_v47, %v1022_v20  ;;  %v267_v28 = vmul.f32 %v260_v1, %v251_v24  ;;  %v282_v30 = vadd.f32 %v276_v18, %v266_v23  ;;  %v1026_v49 = vcombine.high %v315_v46, %v315_v46 }
  0xfe   :  { %v269_v31 = vmul.f32 %v260_v1, %v253_v27  ;;  %v284_v33 = vadd.f32 %v276_v18, %v268_v26  ;;  %v1025_v55 = vcombine.low %v315_v46, %v315_v46  ;;  %v327_v63 = vpack.i.b16 %v1023_v56, %v1023_v56 }
  0xff   :  { %v283_v35 = vadd.f32 %v276_v18, %v267_v28  ;;  %v1247_v36 = vpack.c.bf16 %v282_v30, %v278_v29  ;;  %v348_v53 = vpack.i.b16 %v1026_v49, %v1026_v49  ;;  %v399_v62 = vshrl.u32 %v1026_v49, 16  ;;  %v430_v29 = vld [vmem:[%s1467_s4] sm:$0x22] }
 0x100   :  { %v285_v38 = vadd.f32 %v276_v18, %v269_v31  ;;  %v1249_v39 = vpack.c.bf16 %v284_v33, %v280_v32  ;;  %v341_v61 = vpack.i.b16 %v1025_v55, %v1025_v55  ;;  %v392_v5 = vshrl.u32 %v1025_v55, 16 }
 0x101   :  { %v1251_v40 = vpack.c.bf16 %v283_v35, %v279_v34  ;;  %526 = vrot.lane.b32.xlu1 %v1247_v36, %s1158_s0  ;;  %296 = vrot.lane.b32.xlu0 %v1247_v36, %s1159_s1  ;;  %v400_v9 = vpack.i.b16 %v399_v62, %v399_v62  ;;  %v378_v11 = vshrl.u32 %v1023_v56, 16  ;;  %v386_v18 = vpack.i.b16 %v385_v4, %v385_v4 }
 0x102   :  { %v1255_v41 = vpack.c.bf16 %v285_v38, %v281_v37  ;;  %v393_v19 = vpack.i.b16 %v392_v5, %v392_v5  ;;  %v1030_v24 = vcombine.high %v431_v12, %v431_v12  ;;  %v1028_v33 = vcombine.high %v430_v29, %v430_v29 }
 0x103   :  { %v379_v26 = vpack.i.b16 %v378_v11, %v378_v11  ;;  %v1339_v35 = vsub.s32 1, %v1306_v50  ;;  %v1029_v38 = vcombine.low %v431_v12, %v431_v12 }
 0x104   :  { %v464_v37 = vpack.i.b16 %v1030_v24, %v1030_v24 }
 0x105   :  { %530 = vrot.lane.b32.xlu1 %v1249_v39, %s1158_s0  ;;  %300 = vrot.lane.b32.xlu0 %v1249_v39, %s1159_s1 }
 0x106   :  { %v469_v56 = vrot.slane %v464_v37, %v1339_v35 }
 0x109   :  { %594 = vrot.lane.b32.xlu1 %v1247_v36, %s1160_s22  ;;  %360 = vrot.lane.b32.xlu0 %v1247_v36, %s1161_s23 }
 0x10d   :  { %291 = vrot.lane.b32.xlu1 %v1255_v41, %s1159_s1  ;;  %364 = vrot.lane.b32.xlu0 %v1249_v39, %s1161_s23 }
 0x111   :  { %298 = vrot.lane.b32.xlu1 %v1251_v40, %s1159_s1  ;;  %412 = vrot.lane.b32.xlu0 %v1247_v36, %s1162_s24 }
 0x115   :  { %358 = vrot.lane.b32.xlu1 %v1255_v41, %s1161_s23  ;;  %416 = vrot.lane.b32.xlu0 %v1249_v39, %s1162_s24 }
 0x119   :  { %362 = vrot.lane.b32.xlu1 %v1251_v40, %s1161_s23  ;;  %476 = vrot.lane.b32.xlu0 %v1247_v36, %s1163_s25 }
 0x11d   :  { %410 = vrot.lane.b32.xlu1 %v1255_v41, %s1162_s24  ;;  %480 = vrot.lane.b32.xlu0 %v1249_v39, %s1163_s25 }
 0x121   :  { %414 = vrot.lane.b32.xlu1 %v1251_v40, %s1162_s24  ;;  %528 = vrot.lane.b32.xlu0 %v1251_v40, %s1158_s0 }
 0x125   :  { %474 = vrot.lane.b32.xlu1 %v1255_v41, %s1163_s25  ;;  %532 = vrot.lane.b32.xlu0 %v1255_v41, %s1158_s0 }
 0x129   :  { %478 = vrot.lane.b32.xlu1 %v1251_v40, %s1163_s25  ;;  %596 = vrot.lane.b32.xlu0 %v1251_v40, %s1160_s22 }
 0x12d   :  { %598 = vrot.lane.b32.xlu1 %v1249_v39, %s1160_s22  ;;  %600 = vrot.lane.b32.xlu0 %v1255_v41, %s1160_s22 }
 0x131   :  { %658 = vrot.lane.b32.xlu1 %v1247_v36, %s1164_s26  ;;  %660 = vrot.lane.b32.xlu0 %v1251_v40, %s1164_s26 }
 0x135   :  { %662 = vrot.lane.b32.xlu1 %v1249_v39, %s1164_s26  ;;  %664 = vrot.lane.b32.xlu0 %v1255_v41, %s1164_s26 }
 0x139   :  { %710 = vrot.lane.b32.xlu1 %v1247_v36, %s1165_s29  ;;  %712 = vrot.lane.b32.xlu0 %v1251_v40, %s1165_s29 }
 0x13d   :  { %714 = vrot.lane.b32.xlu1 %v1249_v39, %s1165_s29  ;;  %716 = vrot.lane.b32.xlu0 %v1255_v41, %s1165_s29 }
 0x141   :  { %780 = vperm.xlu1 %1078, %v776_v43   ;;  %785 = vperm.xlu0 %1079, %v777_v44  }
 0x145   :  { %1080 = vset.pattern.permute.xlu1 %v1156_v3  ;;  %1081 = vset.pattern.permute.xlu0 %v1157_v21 }
 0x146   :  { %935 = vperm.xlu1 %1080, %v776_v43   ;;  %951 = vperm.xlu0 %1081, %v776_v43   ;;  %v1027_v43 = vcombine.low %v430_v29, %v430_v29 }
 0x148   :  { %v494_v11 = vshrl.u32 %v1027_v43, 16 }
 0x14a   :  { %939 = vperm.xlu1 %1080, %v777_v44  }
 0x14e   :  { %1082 = vset.pattern.permute.xlu1 %v1157_v21  ;;  %v1314_v21 = vsub.s32 0, %v1306_v50 }
 0x14f   :  { %955 = vperm.xlu1 %1082, %v777_v44  }
 0x150   :  { %v353_v59 = vrot.slane %v348_v53, %v1314_v21  ;;  %v339_v7 = vrot.slane %v334_v60, %v1314_v21  ;;  %v346_v8 = vrot.slane %v341_v61, %v1314_v21  ;;  %v332_v10 = vrot.slane %v327_v63, %v1314_v21 }
 0x151   :  { %v405_v23 = vrot.slane %v400_v9, %v1314_v21  ;;  %v391_v31 = vrot.slane %v386_v18, %v1314_v21  ;;  %v398_v32 = vrot.slane %v393_v19, %v1314_v21  ;;  %v384_v42 = vrot.slane %v379_v26, %v1314_v21 }
 0x152   :  { %v515_v53 = vshrl.u32 %v1030_v24, 16  ;;  %v443_v61 = vpack.i.b16 %v1027_v43, %v1027_v43 }
 0x154   :  { %v516_v4 = vpack.i.b16 %v515_v53, %v515_v53  ;;  %v448_v9 = vrot.slane %v443_v61, %v1339_v35 }
 0x173   :  { %v1304_v47 = vpop.permute.xlu1 %526  ;;  %v297_v48 = vpop.permute.xlu0 %296 }
 0x177   :  { %v1308_v3 = vpop.permute.xlu1 %530  ;;  %v301_v51 = vpop.permute.xlu0 %300 }
 0x17b   :  { %v1316_v57 = vpop.permute.xlu1 %594  ;;  %v361_v58 = vpop.permute.xlu0 %360 }
 0x17f   :  { %v292_v0 = vpop.permute.xlu1 %291  ;;  %v365_v1 = vpop.permute.xlu0 %364 }
 0x180   :  { %v305_v2 = vsel %vm302_vm11, %v301_v51, %v292_v0  ;;  %v312_v13 = vsel %vm302_vm11, %v292_v0, %v297_v48  ;;  %v547_v0 = vld [vmem:[%s1467_s4 + $0x8] sm:$0x44] }
 0x181   :  { %v357_v6 = vmul.bf16 %v353_v59, %v305_v2  ;;  %v354_v25 = vmul.bf16 %v332_v10, %v312_v13  ;;  %v457_v59 = vpack.i.b16 %v1029_v38, %v1029_v38  ;;  %v1032_v10 = vcombine.high %v546_v52, %v546_v52 }
 0x182   :  { %v1034_v12 = vcombine.high %v547_v0, %v547_v0  ;;  %v1033_v18 = vcombine.low %v547_v0, %v547_v0 }
 0x183   :  { %v299_v14 = vpop.permute.xlu1 %298  ;;  %843 = vmatprep.subr.bf16.mxu1 %v357_v6  ;;  %v1327_v15 = vpop.permute.xlu0 %412  ;;  %v462_v6 = vrot.slane %v457_v59, %v1339_v35 }
 0x184   :  { %v303_v16 = vsel %vm302_vm11, %v297_v48, %v299_v14  ;;  %v304_v17 = vsel %vm302_vm11, %v299_v14, %v301_v51  ;;  %v450_v51 = vpack.i.b16 %v1028_v33, %v1028_v33 }
 0x185   :  { %v355_v20 = vmul.bf16 %v339_v7, %v303_v16  ;;  %v356_v22 = vmul.bf16 %v346_v8, %v304_v17  ;;  %v501_v7 = vshrl.u32 %v1028_v33, 16  ;;  %v508_v8 = vshrl.u32 %v1029_v38, 16 }
 0x186   :  { %v455_v2 = vrot.slane %v450_v51, %v1339_v35  ;;  %v575_v33 = vshrl.u32 %v1033_v18, 16 }
 0x187   :  { %v359_v27 = vpop.permute.xlu1 %358  ;;  %800 = vmatprep.subr.bf16.mxu0 %v355_v20  ;;  %844 = vmatpush1.bf16.msra.mxu1 %v356_v22  ;;  %v417_v28 = vpop.permute.xlu0 %416  ;;  %v521_v22 = vrot.slane %v516_v4, %v1339_v35  ;;  %v502_v26 = vpack.i.b16 %v501_v7, %v501_v7 }
 0x188   :  { %v369_v30 = vsel %vm366_vm10, %v365_v1, %v359_v27  ;;  %801 = vmatpush1.bf16.msra.mxu0 %v354_v25  ;;  %v376_v44 = vsel %vm366_vm10, %v359_v27, %v361_v58  ;;  %v509_v27 = vpack.i.b16 %v508_v8, %v508_v8  ;;  %v576_v59 = vpack.i.b16 %v575_v33, %v575_v33 }
 0x189   :  { %v409_v34 = vmul.bf16 %v405_v23, %v369_v30  ;;  %v406_v60 = vmul.bf16 %v384_v42, %v376_v44  ;;  %v614_v23 = vld [vmem:[%s1467_s4] sm:$0x88]  ;;  %v567_v30 = vshrl.u32 %v1032_v10, 16  ;;  %v564_v42 = vsub.s32 2, %v1306_v50 }
 0x18a   :  { %v1374_v37 = vcombine.low %v614_v23, %v614_v23  ;;  %v1036_v44 = vcombine.high %v614_v23, %v614_v23 }
 0x18b   :  { %v363_v45 = vpop.permute.xlu1 %362  ;;  %845 = vmatprep.subr.bf16.mxu1 %v409_v34  ;;  %v1343_v46 = vpop.permute.xlu0 %476 }
 0x18c   :  { %v367_v48 = vsel %vm366_vm10, %v361_v58, %v363_v45  ;;  %v368_v49 = vsel %vm366_vm10, %v363_v45, %v365_v1  ;;  %v1031_v58 = vcombine.low %v546_v52, %v546_v52  ;;  %v568_v52 = vpack.i.b16 %v567_v30, %v567_v30 }
 0x18d   :  { %v407_v54 = vmul.bf16 %v391_v31, %v367_v48  ;;  %v408_v55 = vmul.bf16 %v398_v32, %v368_v49  ;;  %v495_v31 = vpack.i.b16 %v494_v11, %v494_v11  ;;  %v583_v32 = vshrl.u32 %v1034_v12, 16 }
 0x18e   :  { %v559_v16 = vshrl.u32 %v1031_v58, 16  ;;  %v507_v48 = vrot.slane %v502_v26, %v1339_v35  ;;  %v514_v49 = vrot.slane %v509_v27, %v1339_v35  ;;  %v627_v61 = vpack.i.b16 %v1374_v37, %v1374_v37 }
 0x18f   :  { %v411_v62 = vpop.permute.xlu1 %410  ;;  %802 = vmatprep.subr.bf16.mxu0 %v407_v54  ;;  %846 = vmatpush1.bf16.msra.mxu1 %v408_v55  ;;  %v1351_v63 = vpop.permute.xlu0 %480  ;;  %v500_v53 = vrot.slane %v495_v31, %v1339_v35  ;;  %v584_v54 = vpack.i.b16 %v583_v32, %v583_v32  ;;  %v1391_v35 = vsub.s32 3, %v1306_v50  ;;  %v685_v10 = vshrl.u32 %v1036_v44, 16 }
 0x190   :  { %v421_v1 = vsel %vm418_vm12, %v417_v28, %v411_v62  ;;  %803 = vmatpush1.bf16.msra.mxu0 %v406_v60  ;;  %v428_v13 = vsel %vm418_vm12, %v411_v62, %v1327_v15  ;;  %v560_v38 = vpack.i.b16 %v559_v16, %v559_v16  ;;  %v573_v12 = vrot.slane %v568_v52, %v564_v42 }
 0x191   :  { %v473_v5 = vmul.bf16 %v469_v56, %v421_v1  ;;  %v470_v29 = vmul.bf16 %v448_v9, %v428_v13  ;;  %v634_v1 = vpack.i.b16 %v1036_v44, %v1036_v44  ;;  %v589_v8 = vrot.slane %v584_v54, %v564_v42 }
 0x192   :  { %v565_v11 = vrot.slane %v560_v38, %v564_v42  ;;  %v581_v16 = vrot.slane %v576_v59, %v564_v42  ;;  %v678_v18 = vshrl.u32 %v1374_v37, 16  ;;  %v686_v27 = vpack.i.b16 %v685_v10, %v685_v10 }
 0x193   :  { %v415_v14 = vpop.permute.xlu1 %414  ;;  %847 = vmatprep.subr.bf16.mxu1 %v473_v5  ;;  %v1362_v17 = vpop.permute.xlu0 %528 }
 0x194   :  { %v419_v19 = vsel %vm418_vm12, %v1327_v15, %v415_v14  ;;  %v420_v20 = vsel %vm418_vm12, %v415_v14, %v417_v28  ;;  %v615_v15 = vld [vmem:[%s1467_s4 + $0x8] sm:$0x88]  ;;  %v536_v14 = vsel %vm534_vm14, %v1362_v17, %v1308_v3  ;;  %v679_v33 = vpack.i.b16 %v678_v18, %v678_v18 }
 0x195   :  { %v471_v24 = vmul.bf16 %v455_v2, %v419_v19  ;;  %v472_v25 = vmul.bf16 %v462_v6, %v420_v20  ;;  %v1037_v51 = vcombine.low %v615_v15, %v615_v15  ;;  %v1038_v55 = vcombine.high %v615_v15, %v615_v15  ;;  %v730_v15 = vld [vmem:[%s1467_s4 + $0x10] sm:$0x11] }
 0x196   :  { %v632_v19 = vrot.slane %v627_v61, %v1391_v35  ;;  %v639_v20 = vrot.slane %v634_v1, %v1391_v35  ;;  %v591_v30 = vmul.bf16 %v573_v12, %v536_v14  ;;  %v1039_v44 = vcombine.low %v730_v15, %v730_v15 }
 0x197   :  { %v475_v28 = vpop.permute.xlu1 %474  ;;  %804 = vmatprep.subr.bf16.mxu0 %v471_v24  ;;  %848 = vmatpush1.bf16.msra.mxu1 %v472_v25  ;;  %v533_v34 = vpop.permute.xlu0 %532  ;;  %v641_v5 = vpack.i.b16 %v1037_v51, %v1037_v51  ;;  %v699_v6 = vshrl.u32 %v1038_v55, 16  ;;  %v648_v9 = vpack.i.b16 %v1038_v55, %v1038_v55  ;;  %v692_v50 = vshrl.u32 %v1037_v51, 16 }
 0x198   :  { %v485_v43 = vsel %vm482_vm13, %v1351_v63, %v475_v28  ;;  %805 = vmatpush1.bf16.msra.mxu0 %v470_v29  ;;  %v492_v56 = vsel %vm482_vm13, %v475_v28, %v1343_v46  ;;  %v537_v24 = vsel %vm534_vm14, %v1308_v3, %v533_v34  ;;  %v535_v29 = vsel %vm534_vm14, %v1304_v47, %v1362_v17 }
 0x199   :  { %v525_v45 = vmul.bf16 %v521_v22, %v485_v43  ;;  %v522_v7 = vmul.bf16 %v500_v53, %v492_v56  ;;  %v646_v22 = vrot.slane %v641_v5, %v1391_v35  ;;  %v700_v23 = vpack.i.b16 %v699_v6, %v699_v6 }
 0x19a   :  { %v653_v26 = vrot.slane %v648_v9, %v1391_v35  ;;  %v693_v32 = vpack.i.b16 %v692_v50, %v692_v50  ;;  %v592_v17 = vmul.bf16 %v581_v16, %v537_v24  ;;  %v590_v38 = vmul.bf16 %v565_v11, %v535_v29 }
 0x19b   :  { %v479_v60 = vpop.permute.xlu1 %478  ;;  %849 = vmatprep.subr.bf16.mxu1 %v525_v45  ;;  %v597_v62 = vpop.permute.xlu0 %596 }
 0x19c   :  { %v483_v58 = vsel %vm482_vm13, %v1343_v46, %v479_v60  ;;  %v484_v0 = vsel %vm482_vm13, %v479_v60, %v1351_v63  ;;  %v544_v46 = vsel %vm534_vm14, %v533_v34, %v1304_v47  ;;  %v1040_v47 = vcombine.high %v730_v15, %v730_v15 }
 0x19d   :  { %v523_v2 = vmul.bf16 %v507_v48, %v483_v58  ;;  %v524_v4 = vmul.bf16 %v514_v49, %v484_v0  ;;  %v593_v25 = vmul.bf16 %v589_v8, %v544_v46  ;;  %v705_v34 = vrot.slane %v700_v23, %v1391_v35 }
 0x19e   :  { %v603_v45 = vsel %vm602_vm15, %v1316_v57, %v597_v62  ;;  %v691_v49 = vrot.slane %v686_v27, %v1391_v35  ;;  %v698_v51 = vrot.slane %v693_v32, %v1391_v35  ;;  %v750_v55 = vpack.i.b16 %v1040_v47, %v1040_v47 }
 0x19f   :  { %v599_v13 = vpop.permute.xlu1 %598  ;;  %806 = vmatprep.subr.bf16.mxu0 %v523_v2  ;;  %850 = vmatpush1.bf16.msra.mxu1 %v524_v4  ;;  %v601_v63 = vpop.permute.xlu0 %600  ;;  %v654_v61 = vmul.bf16 %v632_v19, %v603_v45  ;;  %v743_v0 = vpack.i.b16 %v1039_v44, %v1039_v44 }
 0x1a0   :  { %807 = vmatpush1.bf16.msra.mxu0 %v522_v7  ;;  %851 = vmatprep.subr.bf16.mxu1 %v1255_v41  ;;  %v731_v41 = vld [vmem:[%s1467_s4 + $0x18] sm:$0x11]  ;;  %v604_v28 = vsel %vm602_vm15, %v597_v62, %v599_v13  ;;  %v605_v42 = vsel %vm602_vm15, %v599_v13, %v601_v63  ;;  %v684_v62 = vrot.slane %v679_v33, %v1391_v35 }
 0x1a1   :  { %808 = vmatprep.subr.bf16.mxu0 %v1251_v40  ;;  %v612_v40 = vsel %vm602_vm15, %v601_v63, %v1316_v57  ;;  %v1041_v37 = vcombine.low %v731_v41, %v731_v41  ;;  %v655_v48 = vmul.bf16 %v639_v20, %v604_v28  ;;  %v656_v56 = vmul.bf16 %v646_v22, %v605_v42 }
 0x1a2   :  { %v657_v43 = vmul.bf16 %v653_v26, %v612_v40  ;;  %v755_v7 = vrot.slane %v750_v55, %v1314_v21  ;;  %v748_v10 = vrot.slane %v743_v0, %v1314_v21 }
 0x1a3   :  { %v659_v31 = vpop.permute.xlu1 %658  ;;  %852 = vmatpush1.bf16.msra.mxu1 %v1249_v39  ;;  %v661_v3 = vpop.permute.xlu0 %660  ;;  %v1042_v39 = vcombine.high %v731_v41, %v731_v41  ;;  %v757_v60 = vpack.i.b16 %v1041_v37, %v1041_v37 }
 0x1a4   :  { %809 = vmatpush1.bf16.msra.mxu0 %v1247_v36  ;;  %853 = vmatprep.subr.bf16.mxu1 %v593_v25  ;;  %v667_v1 = vsel %vm666_vm0, %v659_v31, %v661_v3 }
 0x1a5   :  { %810 = vmatprep.subr.bf16.mxu0 %v591_v30  ;;  %v764_v57 = vpack.i.b16 %v1042_v39, %v1042_v39  ;;  %v762_v8 = vrot.slane %v757_v60, %v1314_v21  ;;  %v706_v9 = vmul.bf16 %v684_v62, %v667_v1 }
 0x1a7   :  { %v663_v36 = vpop.permute.xlu1 %662  ;;  %854 = vmatpush1.bf16.msra.mxu1 %v592_v17  ;;  %v665_v52 = vpop.permute.xlu0 %664  ;;  %v769_v35 = vrot.slane %v764_v57, %v1314_v21  ;;  %v1122_v21 = vld [vmem:[%s1465_s2] ss:$8 sps:$4 sm:$0xff]  }
 0x1a8   :  { %v668_v53 = vsel %vm666_vm0, %v661_v3, %v663_v36  ;;  %v676_v54 = vsel %vm666_vm0, %v665_v52, %v659_v31  ;;  %811 = vmatpush1.bf16.msra.mxu0 %v590_v38  ;;  %855 = vmatprep.subr.bf16.mxu1 %v657_v43  ;;  %v669_v58 = vsel %vm666_vm0, %v663_v36, %v665_v52 }
 0x1a9   :  { %v709_v59 = vmul.bf16 %v705_v34, %v676_v54  ;;  %812 = vmatprep.subr.bf16.mxu0 %v655_v48  ;;  %v707_v2 = vmul.bf16 %v691_v49, %v668_v53  ;;  %v708_v6 = vmul.bf16 %v698_v51, %v669_v58 }
 0x1ab   :  { %v711_v4 = vpop.permute.xlu1 %710  ;;  %856 = vmatpush1.bf16.msra.mxu1 %v656_v56  ;;  %v713_v5 = vpop.permute.xlu0 %712 }
 0x1ac   :  { %813 = vmatpush1.bf16.msra.mxu0 %v654_v61  ;;  %857 = vmatprep.subr.bf16.mxu1 %v709_v59  ;;  %v719_v11 = vsel %vm718_vm1, %v711_v4, %v713_v5 }
 0x1ad   :  { %814 = vmatprep.subr.bf16.mxu0 %v707_v2  ;;  %v770_v19 = vmul.bf16 %v748_v10, %v719_v11 }
 0x1af   :  { %v715_v12 = vpop.permute.xlu1 %714  ;;  %858 = vmatpush1.bf16.msra.mxu1 %v708_v6  ;;  %v717_v46 = vpop.permute.xlu0 %716 }
 0x1b0   :  { %v720_v13 = vsel %vm718_vm1, %v713_v5, %v715_v12  ;;  %v721_v63 = vsel %vm718_vm1, %v715_v12, %v717_v46  ;;  %v728_v50 = vsel %vm718_vm1, %v717_v46, %v711_v4  ;;  %815 = vmatpush1.bf16.msra.mxu0 %v706_v9 }
 0x1b1   :  { %v771_v14 = vmul.bf16 %v755_v7, %v720_v13  ;;  %v772_v16 = vmul.bf16 %v762_v8, %v721_v63  ;;  %v773_v18 = vmul.bf16 %v769_v35, %v728_v50 }
 0x1b3   :  { %816 = vmatprep.subr.bf16.mxu0 %v771_v14  ;;  %859 = vmatprep.subr.bf16.mxu1 %v773_v18 }
 0x1b4   :  { %817 = vmatpush1.bf16.msra.mxu0 %v770_v19  ;;  %860 = vmatpush1.bf16.msra.mxu1 %v772_v16 }
 0x1b7   :  { %833 = vmatmul.mubr.bf16.vlgmr.msra.gmra.mrb[4].mxu0 %v1122_v21  ;;  %876 = vmatmul.mubr.bf16.vlgmr.msra.gmra.mrb[4].mxu1 %v1122_v21 }
 0x1c0   :  { %v781_v20 = vpop.permute.xlu1 %780  ;;  %v786_v22 = vpop.permute.xlu0 %785 }
 0x1c5   :  { %v936_v55 = vpop.permute.xlu1 %935  ;;  %v952_v2 = vpop.permute.xlu0 %951 }
 0x1c9   :  { %v940_v1 = vpop.permute.xlu1 %939 }
 0x1ce   :  { %v956_v19 = vpop.permute.xlu1 %955 }
 0x28a   :  { %v834_v23 = vpop.f32.mrb[4].mxu0  ;;  %v877_v24 = vpop.f32.mrb[4].mxu1 }
 0x28b   :  { %v835_v25 = vadd.f32 %v834_v23, %v781_v20  ;;  %v878_v26 = vadd.f32 %v877_v24, %v781_v20  ;;  %v836_v27 = vpop.f32.mrb[5].mxu0  ;;  %v879_v41 = vpop.f32.mrb[5].mxu1 }
 0x28c   :  { %v837_v29 = vadd.f32 %v836_v27, %v781_v20  ;;  %v880_v30 = vadd.f32 %v879_v41, %v781_v20  ;;  %v838_v40 = vpop.f32.mrb[6].mxu0  ;;  %v881_v31 = vpop.f32.mrb[6].mxu1 }
 0x28d   :  { %v894_v3 = vmin.f32 %v835_v25, 0.0  ;;  %v896_v32 = vmin.f32 %v878_v26, 0.0  ;;  %v840_v15 = vpop.f32.mrb[7].mxu0  ;;  %v883_v28 = vpop.f32.mrb[7].mxu1  ;;  %v839_v37 = vadd.f32 %v838_v40, %v786_v22  ;;  %v882_v39 = vadd.f32 %v881_v31, %v786_v22 }
 0x28e   :  { %v895_v33 = vmin.f32 %v837_v29, 0.0  ;;  %v897_v47 = vmin.f32 %v880_v30, 0.0  ;;  %v841_v43 = vadd.f32 %v840_v15, %v786_v22  ;;  %v1443_v44 = vadd.f32 %v883_v28, %v786_v22 }
 0x28f   :  { %v902_v17 = vmul.f32 1.442695, %v894_v3  ;;  %v906_v34 = vmul.f32 1.442695, %v896_v32  ;;  %v898_v45 = vmin.f32 %v839_v37, 0.0  ;;  %v900_v48 = vmin.f32 %v882_v39, 0.0 }
 0x290   :  { %v904_v38 = vmul.f32 1.442695, %v895_v33  ;;  %v908_v42 = vmul.f32 1.442695, %v897_v47  ;;  %v899_v49 = vmin.f32 %v841_v43, 0.0  ;;  %v901_v52 = vmin.f32 %v1443_v44, 0.0 }
 0x291   :  { %1139 = vpow2.f32 %v902_v17  ;;  %v910_v36 = vmul.f32 1.442695, %v898_v45  ;;  %v914_v51 = vmul.f32 1.442695, %v900_v48  ;;  %vm886_vm2 = vcmp.gt.f32.partialorder %v835_v25, 0.0 }
 0x292   :  { %1141 = vpow2.f32 %v906_v34  ;;  %v912_v53 = vmul.f32 1.442695, %v899_v49  ;;  %v916_v54 = vmul.f32 1.442695, %v901_v52  ;;  %vm888_vm3 = vcmp.gt.f32.partialorder %v878_v26, 0.0 }
 0x293   :  { %1143 = vpow2.f32 %v904_v38  ;;  %vm887_vm4 = vcmp.gt.f32.partialorder %v837_v29, 0.0  ;;  %vm889_vm5 = vcmp.gt.f32.partialorder %v880_v30, 0.0  ;;  %vm890_vm6 = vcmp.gt.f32.partialorder %v839_v37, 0.0 }
 0x294   :  { %1145 = vpow2.f32 %v908_v42  ;;  %vm891_vm7 = vcmp.gt.f32.partialorder %v841_v43, 0.0  ;;  %vm892_vm8 = vcmp.gt.f32.partialorder %v882_v39, 0.0  ;;  %vm893_vm9 = vcmp.gt.f32.partialorder %v1443_v44, 0.0 }
 0x295   :  { %1147 = vpow2.f32 %v910_v36 }
 0x296   :  { %1149 = vpow2.f32 %v914_v51 }
 0x297   :  { %1151 = vpow2.f32 %v912_v53 }
 0x298   :  { %1153 = vpow2.f32 %v916_v54 }
 0x29b   :  { %v1140_v56 = vpop.eup %1139 }
 0x29c   :  { %v1142_v59 = vpop.eup %1141  ;;  %v1047_v60 = vadd.f32 -1.0, %v1140_v56 }
 0x29d   :  { %v1144_v57 = vpop.eup %1143  ;;  %v1049_v61 = vadd.f32 -1.0, %v1142_v59 }
 0x29e   :  { %v1146_v62 = vpop.eup %1145  ;;  %v926_v58 = vsel %vm886_vm2, %v835_v25, %v1047_v60  ;;  %v1048_v0 = vadd.f32 -1.0, %v1144_v57 }
 0x29f   :  { %v1148_v4 = vpop.eup %1147  ;;  %v928_v5 = vsel %vm888_vm3, %v878_v26, %v1049_v61  ;;  %v1050_v6 = vadd.f32 -1.0, %v1146_v62  ;;  %v942_v7 = vmul.f32 %v936_v55, %v926_v58 }
 0x2a0   :  { %v1150_v8 = vpop.eup %1149  ;;  %v927_v35 = vsel %vm887_vm4, %v837_v29, %v1048_v0  ;;  %v944_v9 = vmul.f32 %v936_v55, %v928_v5  ;;  %v1051_v10 = vadd.f32 -1.0, %v1148_v4 }
 0x2a1   :  { %v1152_v11 = vpop.eup %1151  ;;  %v929_v12 = vsel %vm889_vm5, %v880_v30, %v1050_v6  ;;  %v943_v46 = vmul.f32 %v936_v55, %v927_v35  ;;  %v958_v13 = vadd.f32 %v952_v2, %v942_v7  ;;  %v1053_v63 = vadd.f32 -1.0, %v1150_v8 }
 0x2a2   :  { %v1154_v50 = vpop.eup %1153  ;;  %v1052_v14 = vadd.f32 -1.0, %v1152_v11  ;;  %v945_v16 = vmul.f32 %v936_v55, %v929_v12  ;;  %v960_v18 = vadd.f32 %v952_v2, %v944_v9  ;;  %v930_v21 = vsel %vm890_vm6, %v839_v37, %v1051_v10 }
 0x2a3   :  { %v1054_v20 = vadd.f32 -1.0, %v1154_v50  ;;  %v959_v22 = vadd.f32 %v952_v2, %v943_v46  ;;  %v932_v23 = vsel %vm892_vm8, %v882_v39, %v1053_v63  ;;  %v946_v24 = vmul.f32 %v940_v1, %v930_v21 }
 0x2a4   :  { %v931_v25 = vsel %vm891_vm7, %v841_v43, %v1052_v14  ;;  %v961_v26 = vadd.f32 %v952_v2, %v945_v16  ;;  %v948_v27 = vmul.f32 %v940_v1, %v932_v23 }
 0x2a5   :  { %v933_v41 = vsel %vm893_vm9, %v1443_v44, %v1054_v20  ;;  %v1059_v29 = vpack.c.bf16 %v959_v22, %v958_v13  ;;  %v947_v30 = vmul.f32 %v940_v1, %v931_v25  ;;  %v962_v40 = vadd.f32 %v956_v19, %v946_v24 }
 0x2a6   :  { %v1060_v31 = vpack.c.bf16 %v961_v26, %v960_v18  ;;  %v949_v3 = vmul.f32 %v940_v1, %v933_v41  ;;  %v964_v32 = vadd.f32 %v956_v19, %v948_v27 }
 0x2a7   :  { %990 = vst [vmem:[%s1468_s6] sm:$0xff] %v1059_v29  ;;  %v963_v15 = vadd.f32 %v956_v19, %v947_v30 }
 0x2a8   :  { %991 = vst [vmem:[%s1468_s6 + $0x8] sm:$0xff] %v1060_v31  ;;  %v965_v28 = vadd.f32 %v956_v19, %v949_v3 }
 0x2a9   :  { %v1061_v33 = vpack.c.bf16 %v963_v15, %v962_v40 }
 0x2aa   :  { %v1062_v47 = vpack.c.bf16 %v965_v28, %v964_v32 }
 0x2ab   :  { %992 = vst [vmem:[%s1468_s6 + $0x10] sm:$0xff] %v1061_v33 }
 0x2ac   :  { %993 = vst [vmem:[%s1468_s6 + $0x18] sm:$0xff] %v1062_v47 }

// kernel: unet_forward.9
= control target key start
LH: loop header
LB: loop body
LE: loop exit
PB: predicated region body
PF: predicated region fallthrough
CT: control target
= control target key end

     0   :  { %v460_v0 = vmov 0.0   ;;  %vm461_vm0 = vmmov 0   ;;  %v462_v2 = vmov 0   ;;  %v463_v4 = vmov 1   ;;  %s467_s12 = smov 1   ;;  %s468_s13 = smov 7   ;;  %s591_s5 = inlined_call_operand.vmem [shape: bf16[72,128], index: 5, kind: input, shape index: {}]   ;;  %s592_s1 = inlined_call_operand.vmem [shape: f32[16,3], index: 1, kind: input, shape index: {}]   ;;  %s593_s0 = inlined_call_operand.vmem [shape: bf16[16,72], index: 0, kind: input, shape index: {}]   ;;  %s594_s2 = inlined_call_operand.vmem [shape: bf16[16,144], index: 2, kind: input, shape index: {}]   ;;  %s595_s3 = inlined_call_operand.vmem [shape: f32[16,3], index: 3, kind: input, shape index: {}]   ;;  %s596_s4 = inlined_call_operand.vmem [shape: bf16[9,128], index: 4, kind: input, shape index: {}]   ;;  %s597_s6 = inlined_call_operand.vmem [shape: bf16[16,128], index: 6, kind: output, shape index: {}]  }
   0x1   :  { %407 = vmatprep.subr.bf16.mxu0 %v460_v0  ;;  %v443_v1 = vld [vmem:[%s591_s5] sm:$0xff]   ;;  %417 = vmatprep.mubr.msk.bf16.mxu0 %vm461_vm0, %v460_v0  ;;  %v444_v3 = vld [vmem:[%s591_s5 + $0x8] sm:$0xff]   ;;  %v445_v6 = vld [vmem:[%s591_s5 + $0x10] sm:$0xff]   ;;  %vm83_vm1 = vcmask 1043456   ;;  %v464_v10 = vmov 2   ;;  %vm79_vm2 = vcmask 588800   ;;  %v170_v43 = vlaneseq }
   0x2   :  { %434 = vset.pattern.permute.xlu0 %v462_v2  ;;  %291 = vmatprep.subr.bf16.mxu1 %v462_v2  ;;  %v35_v5 = vld [vmem:[%s592_s1] sm:$0xff]  ;;  %v36_v7 = vld [vmem:[%s592_s1 + $0x8] sm:$0xff]  ;;  %v446_v8 = vld [vmem:[%s591_s5 + $0x18] sm:$0xff]   ;;  %s469_s14 = smov 121   ;;  %s470_s15 = smov 127   ;;  %vm287_vm5 = vcmask 130048  }
   0x3   :  { %408 = vmatpush3.bf16.msra.mxu0 %v443_v1  ;;  %435 = vset.pattern.permute.xlu1 %v463_v4  ;;  %v447_v9 = vld [vmem:[%s591_s5 + $0x20] ss:$0 sps:$4 sm:$0xff]   ;;  %s466_s5 = smov 9   ;;  %s471_s16 = smov 119   ;;  %v451_v40 = vld [vmem:[%s594_s2 + $0x4] ss:$8 sps:$4 sm:$0xff]  }
   0x4   :  { %409 = vmatprep.subr.bf16.mxu0 %v460_v0  ;;  %39 = vperm.xlu0 %434, %v35_v5   ;;  %v85_v11 = vsel %vm83_vm1, %v447_v9, 0  ;;  %v448_v12 = vld [vmem:[%s593_s0] sm:$0xff]   ;;  %s465_s0 = smov 8   ;;  %s472_s17 = smov 120   ;;  %v267_v42 = vld [vmem:[%s595_s3 + $0x8] sm:$0xff]  ;;  %v171_v45 = vshrl.u32 %v170_v43, 7 }
   0x5   :  { %141 = vperm.xlu1 %435, %v35_v5   ;;  %389 = vmatprep.mubr.msk.bf16.mxu1 %vm287_vm5, %v451_v40  ;;  %v266_v41 = vld [vmem:[%s595_s3] sm:$0xff] }
   0x6   :  { %v166_v44 = vld [vmem:[%s596_s4] sm:$0x1]  ;;  %v172_v47 = vsub.s32 0, %v171_v45  ;;  %v191_v51 = vld [vmem:[%s596_s4] sm:$0x2]  ;;  %v197_v55 = vsub.s32 1, %v171_v45 }
   0x7   :  { %410 = vmatpush3.bf16.msra.mxu0 %v444_v3  ;;  %v179_v46 = vshrl.u32 %v166_v44, 16  ;;  %v168_v48 = vpack.i.b16 %v166_v44, %v166_v44  ;;  %v204_v56 = vshrl.u32 %v191_v51, 16  ;;  %v193_v57 = vpack.i.b16 %v191_v51, %v191_v51  ;;  %v216_v63 = vld [vmem:[%s596_s4] sm:$0x4] }
   0x8   :  { %411 = vmatprep.subr.bf16.mxu0 %v460_v0  ;;  %44 = vperm.xlu0 %434, %v36_v7   ;;  %v218_v3 = vshrl.u32 %v216_v63, 16 }
   0x9   :  { %145 = vperm.xlu1 %435, %v36_v7   ;;  %v180_v49 = vpack.i.b16 %v179_v46, %v179_v46  ;;  %v173_v50 = vrot.slane %v168_v48, %v172_v47  ;;  %v205_v60 = vpack.i.b16 %v204_v56, %v204_v56  ;;  %v198_v61 = vrot.slane %v193_v57, %v197_v55 }
   0xb   :  { %412 = vmatpush3.bf16.msra.mxu0 %v445_v6  ;;  %v185_v52 = vrot.slane %v180_v49, %v172_v47  ;;  %v219_v6 = vpack.i.b16 %v218_v3, %v218_v3 }
   0xc   :  { %413 = vmatprep.subr.bf16.mxu0 %v460_v0  ;;  %436 = vset.pattern.permute.xlu0 %v464_v10 }
   0xd   :  { %151 = vperm.xlu0 %436, %v35_v5   ;;  %437 = vset.pattern.permute.xlu1 %v464_v10 }
   0xe   :  { %155 = vperm.xlu1 %437, %v36_v7   ;;  %v223_v7 = vsub.s32 2, %v171_v45 }
   0xf   :  { %414 = vmatpush3.bf16.msra.mxu0 %v446_v8  ;;  %v230_v8 = vld [vmem:[%s596_s4] sm:$0x8] }
  0x10   :  { %415 = vmatprep.subr.bf16.mxu0 %v460_v0  ;;  %v210_v0 = vrot.slane %v205_v60, %v197_v55  ;;  %v232_v9 = vpack.i.b16 %v230_v8, %v230_v8 }
  0x11   :  { %439 = vset.pattern.permute.xlu0 %v462_v2 }
  0x12   :  { %438 = vset.pattern.permute.xlu1 %v462_v2 }
  0x13   :  { %416 = vmatpush3.bf16.msra.mxu0 %v85_v11  ;;  %v224_v11 = vrot.slane %v219_v6, %v223_v7 }
  0x16   :  { %418 = vmatmul.mubr.msk.bf16.vlgmr.msra.gmra.mrb[0].mxu0 %vm79_vm2, %v448_v12  ;;  %v243_v12 = vshrl.u32 %v230_v8, 16 }
  0x83   :  { %v40_v13 = vpop.permute.xlu0 %39 }
  0x84   :  { %v142_v25 = vpop.permute.xlu1 %141 }
  0x87   :  { %v45_v17 = vpop.permute.xlu0 %44 }
  0x88   :  { %v146_v28 = vpop.permute.xlu1 %145 }
  0x8c   :  { %v152_v34 = vpop.permute.xlu0 %151 }
  0x8d   :  { %v156_v35 = vpop.permute.xlu1 %155 }
  0xe9   :  { %v121_v14 = vpop.f32.mrb[0].mxu0 }
  0xea   :  { %v122_v15 = vadd.f32 %v121_v14, %v40_v13  ;;  %v419_v16 = vpop.f32.mrb[1].mxu0 }
  0xeb   :  { %v124_v18 = vpop.f32.mrb[2].mxu0  ;;  %v244_v16 = vpack.i.b16 %v243_v12, %v243_v12 }
  0xec   :  { %v130_v19 = vmin.f32 %v122_v15, 0.0  ;;  %v125_v20 = vadd.f32 %v124_v18, %v45_v17  ;;  %v420_v21 = vpop.f32.mrb[3].mxu0  ;;  %vm128_vm3 = vcmp.gt.f32.partialorder %v122_v15, 0.0  ;;  %v255_v18 = vld [vmem:[%s596_s4 + $0x4] sm:$0x1] }
  0xee   :  { %v132_v22 = vmul.f32 1.442695, %v130_v19  ;;  %v131_v23 = vmin.f32 %v125_v20, 0.0  ;;  %vm129_vm4 = vcmp.gt.f32.partialorder %v125_v20, 0.0 }
  0xf0   :  { %452 = vpow2.f32 %v132_v22  ;;  %v134_v24 = vmul.f32 1.442695, %v131_v23 }
  0xf2   :  { %454 = vpow2.f32 %v134_v24 }
  0xfa   :  { %v453_v26 = vpop.eup %452 }
  0xfb   :  { %v385_v27 = vadd.f32 -1.0, %v453_v26 }
  0xfc   :  { %v455_v29 = vpop.eup %454 }
  0xfd   :  { %v138_v30 = vsel %vm128_vm3, %v122_v15, %v385_v27  ;;  %v386_v31 = vadd.f32 -1.0, %v455_v29  ;;  %v449_v27 = vld [vmem:[%s594_s2] ss:$8 sps:$4 sm:$0xff]  }
  0xfe   :  { %v148_v32 = vmul.f32 %v142_v25, %v138_v30 }
  0xff   :  { %v139_v33 = vsel %vm129_vm4, %v125_v20, %v386_v31  ;;  %v257_v20 = vpack.i.b16 %v255_v18, %v255_v18 }
 0x100   :  { %v149_v36 = vmul.f32 %v146_v28, %v139_v33  ;;  %v158_v37 = vadd.f32 %v152_v34, %v148_v32 }
 0x101   :  { %v262_v23 = vrot.slane %v257_v20, %v172_v47 }
 0x102   :  { %v159_v38 = vadd.f32 %v156_v35, %v149_v36 }
 0x104   :  { %v539_v39 = vpack.c.bf16 %v159_v38, %v158_v37 }
 0x106   :  { %175 = vrot.lane.b32.xlu0 %v539_v39, %s465_s0  ;;  %162 = vrot.lane.b32.xlu1 %v539_v39, %s466_s5 }
 0x10a   :  { %200 = vrot.lane.b32.xlu0 %v539_v39, %s467_s12  ;;  %187 = vrot.lane.b32.xlu1 %v539_v39, %s468_s13 }
 0x10e   :  { %226 = vrot.lane.b32.xlu0 %v539_v39, %s469_s14  ;;  %212 = vrot.lane.b32.xlu1 %v539_v39, %s470_s15 }
 0x112   :  { %251 = vrot.lane.b32.xlu0 %v539_v39, %s471_s16  ;;  %239 = vrot.lane.b32.xlu1 %v539_v39, %s472_s17 }
 0x116   :  { %270 = vperm.xlu1 %438, %v266_v41   ;;  %275 = vperm.xlu0 %439, %v267_v42  }
 0x11a   :  { %440 = vset.pattern.permute.xlu1 %v463_v4  ;;  %441 = vset.pattern.permute.xlu0 %v464_v10 }
 0x11b   :  { %345 = vperm.xlu1 %440, %v266_v41   ;;  %355 = vperm.xlu0 %441, %v266_v41  }
 0x11f   :  { %349 = vperm.xlu1 %440, %v267_v42  }
 0x123   :  { %442 = vset.pattern.permute.xlu1 %v464_v10  ;;  %v236_v10 = vsub.s32 3, %v171_v45 }
 0x124   :  { %359 = vperm.xlu1 %442, %v267_v42  }
 0x125   :  { %v237_v14 = vrot.slane %v232_v9, %v236_v10  ;;  %v249_v21 = vrot.slane %v244_v16, %v236_v10 }
 0x178   :  { %v163_v53 = vpop.permute.xlu1 %162  ;;  %v176_v58 = vpop.permute.xlu0 %175 }
 0x179   :  { %v174_v54 = vmul.bf16 %v173_v50, %v163_v53  ;;  %v186_v59 = vmul.bf16 %v185_v52, %v176_v58 }
 0x17b   :  { %292 = vmatpush1.bf16.msra.mxu1 %v174_v54 }
 0x17c   :  { %293 = vmatprep.subr.bf16.mxu1 %v462_v2  ;;  %v188_v62 = vpop.permute.xlu1 %187  ;;  %v201_v4 = vpop.permute.xlu0 %200 }
 0x17d   :  { %v199_v1 = vmul.bf16 %v198_v61, %v188_v62  ;;  %v211_v5 = vmul.bf16 %v210_v0, %v201_v4 }
 0x17f   :  { %294 = vmatpush1.bf16.msra.mxu1 %v186_v59 }
 0x180   :  { %295 = vmatprep.subr.bf16.mxu1 %v462_v2  ;;  %v213_v13 = vpop.permute.xlu1 %212  ;;  %v227_v17 = vpop.permute.xlu0 %226 }
 0x181   :  { %v225_v15 = vmul.bf16 %v224_v11, %v213_v13  ;;  %v238_v19 = vmul.bf16 %v237_v14, %v227_v17 }
 0x183   :  { %296 = vmatpush1.bf16.msra.mxu1 %v199_v1 }
 0x184   :  { %297 = vmatprep.subr.bf16.mxu1 %v462_v2  ;;  %v240_v22 = vpop.permute.xlu1 %239  ;;  %v252_v25 = vpop.permute.xlu0 %251 }
 0x185   :  { %v250_v24 = vmul.bf16 %v249_v21, %v240_v22  ;;  %v263_v26 = vmul.bf16 %v262_v23, %v252_v25 }
 0x187   :  { %298 = vmatpush1.bf16.msra.mxu1 %v211_v5 }
 0x188   :  { %299 = vmatprep.subr.bf16.mxu1 %v462_v2 }
 0x18b   :  { %300 = vmatpush1.bf16.msra.mxu1 %v539_v39 }
 0x18c   :  { %301 = vmatprep.subr.bf16.mxu1 %v462_v2 }
 0x18f   :  { %302 = vmatpush1.bf16.msra.mxu1 %v225_v15 }
 0x190   :  { %303 = vmatprep.subr.bf16.mxu1 %v462_v2 }
 0x193   :  { %304 = vmatpush1.bf16.msra.mxu1 %v238_v19 }
 0x194   :  { %305 = vmatprep.subr.bf16.mxu1 %v462_v2 }
 0x195   :  { %v271_v28 = vpop.permute.xlu1 %270  ;;  %v276_v30 = vpop.permute.xlu0 %275 }
 0x197   :  { %306 = vmatpush1.bf16.msra.mxu1 %v250_v24 }
 0x198   :  { %307 = vmatprep.subr.bf16.mxu1 %v462_v2 }
 0x19a   :  { %v346_v39 = vpop.permute.xlu1 %345  ;;  %v356_v48 = vpop.permute.xlu0 %355 }
 0x19b   :  { %308 = vmatpush1.bf16.msra.mxu1 %v263_v26 }
 0x19e   :  { %324 = vmatmul.mubr.bf16.vlgmr.msra.gmra.mrb[0].mxu1 %v449_v27  ;;  %v350_v42 = vpop.permute.xlu1 %349 }
 0x1a3   :  { %v360_v49 = vpop.permute.xlu1 %359 }
 0x271   :  { %v325_v29 = vpop.f32.mrb[0].mxu1 }
 0x272   :  { %v326_v31 = vadd.f32 %v325_v29, %v271_v28  ;;  %v327_v32 = vpop.f32.mrb[1].mxu1 }
 0x273   :  { %v328_v33 = vpop.f32.mrb[2].mxu1 }
 0x274   :  { %v334_v34 = vmin.f32 %v326_v31, 0.0  ;;  %v329_v35 = vadd.f32 %v328_v33, %v276_v30  ;;  %v330_v36 = vpop.f32.mrb[3].mxu1  ;;  %vm332_vm6 = vcmp.gt.f32.partialorder %v326_v31, 0.0 }
 0x276   :  { %v336_v37 = vmul.f32 1.442695, %v334_v34  ;;  %v335_v38 = vmin.f32 %v329_v35, 0.0  ;;  %vm333_vm7 = vcmp.gt.f32.partialorder %v329_v35, 0.0 }
 0x278   :  { %456 = vpow2.f32 %v336_v37  ;;  %v338_v2 = vmul.f32 1.442695, %v335_v38 }
 0x27a   :  { %458 = vpow2.f32 %v338_v2 }
 0x282   :  { %v457_v40 = vpop.eup %456 }
 0x283   :  { %v390_v41 = vadd.f32 -1.0, %v457_v40 }
 0x284   :  { %v459_v43 = vpop.eup %458 }
 0x285   :  { %v342_v44 = vsel %vm332_vm6, %v326_v31, %v390_v41  ;;  %v391_v45 = vadd.f32 -1.0, %v459_v43 }
 0x286   :  { %v352_v46 = vmul.f32 %v346_v39, %v342_v44 }
 0x287   :  { %v343_v47 = vsel %vm333_vm7, %v329_v35, %v391_v45 }
 0x288   :  { %v353_v50 = vmul.f32 %v350_v42, %v343_v47  ;;  %v362_v51 = vadd.f32 %v356_v48, %v352_v46 }
 0x28a   :  { %v363_v52 = vadd.f32 %v360_v49, %v353_v50 }
 0x28c   :  { %v399_v53 = vpack.c.bf16 %v363_v52, %v362_v51 }
 0x28e   :  { %400 = vst [vmem:[%s597_s6] sm:$0xff] %v399_v53  }

// kernel: unet_forward.11
= control target key start
LH: loop header
LB: loop body
LE: loop exit
PB: predicated region body
PF: predicated region fallthrough
CT: control target
= control target key end

     0   :  { %v696_v1 = vmov 0   ;;  %vm496_vm0 = vcmask 257024   ;;  %s975_s1 = inlined_call_operand.vmem [shape: bf16[128,32], index: 1, kind: input, shape index: {}]   ;;  %s976_s0 = inlined_call_operand.vmem [shape: bf16[128,128], index: 0, kind: input, shape index: {}]   ;;  %s977_s2 = inlined_call_operand.vmem [shape: f32[128,3], index: 2, kind: input, shape index: {}]   ;;  %s978_s3 = inlined_call_operand.vmem [shape: bf16[128,32], index: 3, kind: output, shape index: {}]  }
   0x1   :  { %v648_v0 = vld [vmem:[%s975_s1] sm:$0xff]   ;;  %647 = vset.pattern.permute.xlu1 %v696_v1  ;;  %646 = vset.pattern.permute.xlu0 %v696_v1  ;;  %v649_v2 = vld [vmem:[%s975_s1 + $0x8] sm:$0xff]   ;;  %v650_v3 = vld [vmem:[%s975_s1 + $0x10] sm:$0xff]  }
   0x2   :  { %597 = vmatprep.subr.bf16.mxu0 %v648_v0  ;;  %629 = vmatprep.subr.bf16.mxu1 %v648_v0  ;;  %v651_v4 = vld [vmem:[%s975_s1 + $0x18] sm:$0xff]   ;;  %v656_v5 = vld [vmem:[%s976_s0] sm:$0xff]   ;;  %v653_v8 = vld [vmem:[%s975_s1 + $0x28] sm:$0xff]  }
   0x3   :  { %598 = vmatpush3.bf16.msra.mxu0 %v648_v0  ;;  %637 = vmatpush3.bf16.msra.mxu1 %v648_v0  ;;  %v657_v6 = vld [vmem:[%s976_s0 + $0x20] sm:$0xff]   ;;  %v49_v9 = vld [vmem:[%s977_s2 + $0x10] sm:$0xff]  ;;  %v50_v11 = vld [vmem:[%s977_s2 + $0x18] sm:$0xff] }
   0x4   :  { %599 = vmatprep.subr.bf16.mxu0 %v649_v2  ;;  %630 = vmatprep.subr.bf16.mxu1 %v649_v2  ;;  %v652_v7 = vld [vmem:[%s975_s1 + $0x20] sm:$0xff]   ;;  %v48_v12 = vld [vmem:[%s977_s2 + $0x8] sm:$0xff]  ;;  %v654_v13 = vld [vmem:[%s975_s1 + $0x30] sm:$0xff]  }
   0x5   :  { %613 = vmatprep.mubr.bf16.mxu0 %v656_v5  ;;  %621 = vmatprep.mubr.bf16.mxu1 %v657_v6  ;;  %v47_v10 = vld [vmem:[%s977_s2] sm:$0xff]  ;;  %v52_v14 = vld [vmem:[%s977_s2 + $0x28] sm:$0xff]  ;;  %v655_v16 = vld [vmem:[%s975_s1 + $0x38] sm:$0xff]  }
   0x6   :  { %75 = vperm.xlu1 %647, %v49_v9   ;;  %65 = vperm.xlu0 %646, %v47_v10   ;;  %v51_v15 = vld [vmem:[%s977_s2 + $0x20] sm:$0xff]  ;;  %v54_v17 = vld [vmem:[%s977_s2 + $0x38] sm:$0xff]  ;;  %v53_v18 = vld [vmem:[%s977_s2 + $0x30] sm:$0xff] }
   0x7   :  { %600 = vmatpush3.bf16.msra.mxu0 %v649_v2  ;;  %638 = vmatpush3.bf16.msra.mxu1 %v649_v2  ;;  %v658_v19 = vld [vmem:[%s976_s0 + $0x8] sm:$0xff]   ;;  %v55_v22 = vld [vmem:[%s977_s2 + $0x40] sm:$0xff]  ;;  %v660_v23 = vld [vmem:[%s976_s0 + $0x10] sm:$0xff]  }
   0x8   :  { %601 = vmatprep.subr.bf16.mxu0 %v650_v3  ;;  %631 = vmatprep.subr.bf16.mxu1 %v650_v3  ;;  %v659_v20 = vld [vmem:[%s976_s0 + $0x28] sm:$0xff]   ;;  %v661_v24 = vld [vmem:[%s976_s0 + $0x30] sm:$0xff]   ;;  %v58_v25 = vld [vmem:[%s977_s2 + $0x58] sm:$0xff] }
   0x9   :  { %v56_v21 = vld [vmem:[%s977_s2 + $0x48] sm:$0xff]  ;;  %v57_v26 = vld [vmem:[%s977_s2 + $0x50] sm:$0xff]  ;;  %v662_v27 = vld [vmem:[%s976_s0 + $0x18] sm:$0xff]  }
   0xa   :  { %80 = vperm.xlu1 %647, %v50_v11   ;;  %70 = vperm.xlu0 %646, %v48_v12   ;;  %v663_v28 = vld [vmem:[%s976_s0 + $0x38] sm:$0xff]   ;;  %v60_v29 = vld [vmem:[%s977_s2 + $0x68] sm:$0xff]  ;;  %v59_v30 = vld [vmem:[%s977_s2 + $0x60] sm:$0xff] }
   0xb   :  { %602 = vmatpush3.bf16.msra.mxu0 %v650_v3  ;;  %639 = vmatpush3.bf16.msra.mxu1 %v650_v3  ;;  %v62_v31 = vld [vmem:[%s977_s2 + $0x78] sm:$0xff]  ;;  %v61_v32 = vld [vmem:[%s977_s2 + $0x70] sm:$0xff] }
   0xc   :  { %603 = vmatprep.subr.bf16.mxu0 %v651_v4  ;;  %632 = vmatprep.subr.bf16.mxu1 %v651_v4 }
   0xe   :  { %90 = vperm.xlu1 %647, %v52_v14   ;;  %85 = vperm.xlu0 %646, %v51_v15  }
   0xf   :  { %604 = vmatpush3.bf16.msra.mxu0 %v651_v4  ;;  %640 = vmatpush3.bf16.msra.mxu1 %v651_v4 }
  0x10   :  { %605 = vmatprep.subr.bf16.mxu0 %v652_v7  ;;  %633 = vmatprep.subr.bf16.mxu1 %v652_v7 }
  0x12   :  { %100 = vperm.xlu1 %647, %v54_v17   ;;  %95 = vperm.xlu0 %646, %v53_v18  }
  0x13   :  { %606 = vmatpush3.bf16.msra.mxu0 %v652_v7  ;;  %641 = vmatpush3.bf16.msra.mxu1 %v652_v7 }
  0x14   :  { %607 = vmatprep.subr.bf16.mxu0 %v653_v8  ;;  %634 = vmatprep.subr.bf16.mxu1 %v653_v8 }
  0x16   :  { %110 = vperm.xlu1 %647, %v56_v21   ;;  %105 = vperm.xlu0 %646, %v55_v22  }
  0x17   :  { %608 = vmatpush3.bf16.msra.mxu0 %v653_v8  ;;  %642 = vmatpush3.bf16.msra.mxu1 %v653_v8 }
  0x18   :  { %609 = vmatprep.subr.bf16.mxu0 %v654_v13  ;;  %635 = vmatprep.subr.bf16.mxu1 %v654_v13 }
  0x1a   :  { %120 = vperm.xlu1 %647, %v58_v25   ;;  %115 = vperm.xlu0 %646, %v57_v26  }
  0x1b   :  { %610 = vmatpush3.bf16.msra.mxu0 %v654_v13  ;;  %643 = vmatpush3.bf16.msra.mxu1 %v654_v13 }
  0x1c   :  { %611 = vmatprep.subr.bf16.mxu0 %v655_v16  ;;  %636 = vmatprep.subr.bf16.mxu1 %v655_v16 }
  0x1e   :  { %130 = vperm.xlu1 %647, %v60_v29   ;;  %125 = vperm.xlu0 %646, %v59_v30  }
  0x1f   :  { %612 = vmatpush3.bf16.msra.mxu0 %v655_v16  ;;  %644 = vmatpush3.bf16.msra.mxu1 %v655_v16 }
  0x22   :  { %614 = vmatmul.mubr.bf16.vlgmr.msra.gmra.mrb[0].mxu0 %v658_v19  ;;  %622 = vmatmul.mubr.bf16.vlgmr.msra.gmra.mrb[0].mxu1 %v659_v20 }
  0x23   :  { %617 = vmatprep.mubr.bf16.mxu0 %v660_v23  ;;  %625 = vmatprep.mubr.bf16.mxu1 %v661_v24 }
  0x24   :  { %140 = vperm.xlu1 %647, %v62_v31   ;;  %135 = vperm.xlu0 %646, %v61_v32  }
  0x2a   :  { %618 = vmatmul.mubr.bf16.gmra.mrb[4].mxu0 %v662_v27  ;;  %626 = vmatmul.mubr.bf16.gmra.mrb[4].mxu1 %v663_v28 }
  0x85   :  { %v66_v33 = vpop.permute.xlu0 %65  ;;  %v76_v34 = vpop.permute.xlu1 %75 }
  0x89   :  { %v71_v35 = vpop.permute.xlu0 %70  ;;  %v81_v36 = vpop.permute.xlu1 %80 }
  0x8d   :  { %v86_v37 = vpop.permute.xlu0 %85  ;;  %v813_v38 = vpop.permute.xlu1 %90 }
  0x91   :  { %v96_v39 = vpop.permute.xlu0 %95  ;;  %v815_v40 = vpop.permute.xlu1 %100 }
  0x95   :  { %v106_v41 = vpop.permute.xlu0 %105  ;;  %v111_v42 = vpop.permute.xlu1 %110 }
  0x99   :  { %v116_v43 = vpop.permute.xlu0 %115  ;;  %v121_v44 = vpop.permute.xlu1 %120 }
  0x9d   :  { %v126_v45 = vpop.permute.xlu0 %125  ;;  %v131_v6 = vpop.permute.xlu1 %130 }
  0xa3   :  { %v136_v7 = vpop.permute.xlu0 %135  ;;  %v141_v30 = vpop.permute.xlu1 %140 }
  0xf5   :  { %v615_v46 = vpop.f32.mrb[0].mxu0  ;;  %v623_v47 = vpop.f32.mrb[0].mxu1 }
  0xf6   :  { %v817_v48 = vadd.f32 %v615_v46, %v76_v34  ;;  %v819_v49 = vadd.f32 %v623_v47, %v116_v43  ;;  %v273_v50 = vpop.f32.mrb[1].mxu0  ;;  %v305_v51 = vpop.f32.mrb[1].mxu1 }
  0xf7   :  { %v821_v52 = vadd.f32 %v273_v50, %v66_v33  ;;  %v823_v53 = vadd.f32 %v305_v51, %v106_v41  ;;  %v616_v54 = vpop.f32.mrb[2].mxu0  ;;  %v624_v55 = vpop.f32.mrb[2].mxu1 }
  0xf8   :  { %v354_v56 = vmin.f32 %v817_v48, 0.0  ;;  %v362_v57 = vmin.f32 %v819_v49, 0.0  ;;  %v276_v58 = vpop.f32.mrb[3].mxu0  ;;  %v308_v59 = vpop.f32.mrb[3].mxu1  ;;  %v829_v0 = vadd.f32 %v616_v54, %v81_v36  ;;  %v831_v1 = vadd.f32 %v624_v55, %v121_v44 }
  0xf9   :  { %v352_v60 = vmin.f32 %v821_v52, 0.0  ;;  %v360_v61 = vmin.f32 %v823_v53, 0.0  ;;  %v833_v4 = vadd.f32 %v276_v58, %v71_v35  ;;  %v835_v5 = vadd.f32 %v308_v59, %v111_v42 }
  0xfa   :  { %v372_v62 = vmul.f32 1.442695, %v354_v56  ;;  %v388_v63 = vmul.f32 1.442695, %v362_v57  ;;  %v355_v8 = vmin.f32 %v829_v0, 0.0  ;;  %v363_v9 = vmin.f32 %v831_v1, 0.0 }
  0xfb   :  { %v368_v2 = vmul.f32 1.442695, %v352_v60  ;;  %v384_v3 = vmul.f32 1.442695, %v360_v61  ;;  %v353_v10 = vmin.f32 %v833_v4, 0.0  ;;  %v361_v14 = vmin.f32 %v835_v5, 0.0 }
  0xfc   :  { %664 = vpow2.f32 %v372_v62  ;;  %v374_v13 = vmul.f32 1.442695, %v355_v8  ;;  %v390_v17 = vmul.f32 1.442695, %v363_v9  ;;  %vm338_vm1 = vcmp.gt.f32.partialorder %v817_v48, 0.0 }
  0xfd   :  { %666 = vpow2.f32 %v388_v63  ;;  %v619_v11 = vpop.f32.mrb[4].mxu0  ;;  %v627_v12 = vpop.f32.mrb[4].mxu1  ;;  %v370_v18 = vmul.f32 1.442695, %v353_v10  ;;  %v386_v22 = vmul.f32 1.442695, %v361_v14 }
  0xfe   :  { %668 = vpow2.f32 %v368_v2  ;;  %v289_v15 = vpop.f32.mrb[5].mxu0  ;;  %v321_v16 = vpop.f32.mrb[5].mxu1  ;;  %v841_v19 = vadd.f32 %v619_v11, %v96_v39  ;;  %v843_v23 = vadd.f32 %v627_v12, %v136_v7  ;;  %vm346_vm2 = vcmp.gt.f32.partialorder %v819_v49, 0.0 }
  0xff   :  { %670 = vpow2.f32 %v384_v3  ;;  %v620_v20 = vpop.f32.mrb[6].mxu0  ;;  %v628_v21 = vpop.f32.mrb[6].mxu1  ;;  %v845_v24 = vadd.f32 %v289_v15, %v86_v37  ;;  %v848_v28 = vadd.f32 %v321_v16, %v126_v45  ;;  %vm336_vm3 = vcmp.gt.f32.partialorder %v821_v52, 0.0 }
 0x100   :  { %672 = vpow2.f32 %v374_v13  ;;  %v292_v25 = vpop.f32.mrb[7].mxu0  ;;  %v324_v26 = vpop.f32.mrb[7].mxu1  ;;  %v358_v27 = vmin.f32 %v841_v19, 0.0  ;;  %v366_v29 = vmin.f32 %v843_v23, 0.0  ;;  %v857_v35 = vadd.f32 %v620_v20, %v815_v40 }
 0x101   :  { %674 = vpow2.f32 %v390_v17  ;;  %v356_v32 = vmin.f32 %v845_v24, 0.0  ;;  %v364_v34 = vmin.f32 %v848_v28, 0.0  ;;  %v859_v36 = vadd.f32 %v628_v21, %v141_v30 }
 0x102   :  { %676 = vpow2.f32 %v370_v18  ;;  %v380_v31 = vmul.f32 1.442695, %v358_v27  ;;  %v396_v33 = vmul.f32 1.442695, %v366_v29  ;;  %vm344_vm4 = vcmp.gt.f32.partialorder %v823_v53, 0.0 }
 0x103   :  { %678 = vpow2.f32 %v386_v22  ;;  %v376_v37 = vmul.f32 1.442695, %v356_v32  ;;  %v863_v39 = vadd.f32 %v292_v25, %v813_v38  ;;  %vm339_vm5 = vcmp.gt.f32.partialorder %v829_v0, 0.0 }
 0x104   :  { %680 = vpow2.f32 %v380_v31  ;;  %v392_v42 = vmul.f32 1.442695, %v364_v34  ;;  %v359_v43 = vmin.f32 %v857_v35, 0.0  ;;  %vm347_vm6 = vcmp.gt.f32.partialorder %v831_v1, 0.0 }
 0x105   :  { %682 = vpow2.f32 %v396_v33  ;;  %v367_v40 = vmin.f32 %v859_v36, 0.0  ;;  %v869_v38 = vadd.f32 %v324_v26, %v131_v6  ;;  %v357_v57 = vmin.f32 %v863_v39, 0.0 }
 0x106   :  { %v665_v41 = vpop.eup %664  ;;  %684 = vpow2.f32 %v376_v37  ;;  %v382_v50 = vmul.f32 1.442695, %v359_v43  ;;  %vm337_vm7 = vcmp.gt.f32.partialorder %v833_v4, 0.0  ;;  %vm345_vm8 = vcmp.gt.f32.partialorder %v835_v5, 0.0 }
 0x107   :  { %v667_v44 = vpop.eup %666  ;;  %v535_v45 = vadd.f32 -1.0, %v665_v41  ;;  %686 = vpow2.f32 %v392_v42  ;;  %v398_v56 = vmul.f32 1.442695, %v367_v40  ;;  %v378_v8 = vmul.f32 1.442695, %v357_v57 }
 0x108   :  { %v669_v46 = vpop.eup %668  ;;  %v543_v47 = vadd.f32 -1.0, %v667_v44  ;;  %688 = vpow2.f32 %v382_v50  ;;  %v365_v16 = vmin.f32 %v869_v38, 0.0  ;;  %vm342_vm9 = vcmp.gt.f32.partialorder %v841_v19, 0.0 }
 0x109   :  { %v671_v51 = vpop.eup %670  ;;  %v418_v54 = vsel %vm338_vm1, %v817_v48, %v535_v45  ;;  %v533_v55 = vadd.f32 -1.0, %v669_v46  ;;  %690 = vpow2.f32 %v398_v56  ;;  %vm350_vm10 = vcmp.gt.f32.partialorder %v843_v23, 0.0 }
 0x10a   :  { %v673_v58 = vpop.eup %672  ;;  %v567_v59 = vpack.c.bf16 %v418_v54, %v418_v54  ;;  %v426_v60 = vsel %vm346_vm2, %v819_v49, %v543_v47  ;;  %v541_v61 = vadd.f32 -1.0, %v671_v51  ;;  %692 = vpow2.f32 %v378_v8 }
 0x10b   :  { %v675_v62 = vpop.eup %674  ;;  %v575_v63 = vpack.c.bf16 %v426_v60, %v426_v60  ;;  %v416_v2 = vsel %vm336_vm3, %v821_v52, %v533_v55  ;;  %v536_v3 = vadd.f32 -1.0, %v673_v58  ;;  %v394_v25 = vmul.f32 1.442695, %v365_v16 }
 0x10c   :  { %v677_v48 = vpop.eup %676  ;;  %499 = vst.msk [vmem:[%s978_s3 + $0x8] sm:$0xf] %vm496_vm0, %v567_v59  ;;  %v565_v6 = vpack.c.bf16 %v416_v2, %v416_v2  ;;  %v424_v49 = vsel %vm344_vm4, %v823_v53, %v541_v61  ;;  %v544_v7 = vadd.f32 -1.0, %v675_v62  ;;  %vm340_vm11 = vcmp.gt.f32.partialorder %v845_v24, 0.0 }
 0x10d   :  { %v679_v9 = vpop.eup %678  ;;  %507 = vst.msk [vmem:[%s978_s3 + $0x28] sm:$0xf] %vm496_vm0, %v575_v63  ;;  %v573_v52 = vpack.c.bf16 %v424_v49, %v424_v49  ;;  %v419_v10 = vsel %vm339_vm5, %v829_v0, %v536_v3  ;;  %v534_v11 = vadd.f32 -1.0, %v677_v48  ;;  %694 = vpow2.f32 %v394_v25 }
 0x10e   :  { %497 = vst.msk [vmem:[%s978_s3] sm:$0xf] %vm496_vm0, %v565_v6  ;;  %v568_v53 = vpack.c.bf16 %v419_v10, %v419_v10  ;;  %v427_v12 = vsel %vm347_vm6, %v831_v1, %v544_v7  ;;  %v542_v13 = vadd.f32 -1.0, %v679_v9  ;;  %v681_v14 = vpop.eup %680  ;;  %vm348_vm12 = vcmp.gt.f32.partialorder %v848_v28, 0.0 }
 0x10f   :  { %505 = vst.msk [vmem:[%s978_s3 + $0x20] sm:$0xf] %vm496_vm0, %v573_v52  ;;  %v576_v0 = vpack.c.bf16 %v427_v12, %v427_v12  ;;  %v417_v15 = vsel %vm337_vm7, %v833_v4, %v534_v11  ;;  %v683_v17 = vpop.eup %682  ;;  %v539_v20 = vadd.f32 -1.0, %v681_v14  ;;  %vm343_vm13 = vcmp.gt.f32.partialorder %v857_v35, 0.0 }
 0x110   :  { %500 = vst.msk [vmem:[%s978_s3 + $0xc] sm:$0xf] %vm496_vm0, %v568_v53  ;;  %v566_v1 = vpack.c.bf16 %v417_v15, %v417_v15  ;;  %v425_v18 = vsel %vm345_vm8, %v835_v5, %v542_v13  ;;  %v685_v21 = vpop.eup %684  ;;  %v547_v22 = vadd.f32 -1.0, %v683_v17  ;;  %vm351_vm14 = vcmp.gt.f32.partialorder %v859_v36, 0.0 }
 0x111   :  { %508 = vst.msk [vmem:[%s978_s3 + $0x2c] sm:$0xf] %vm496_vm0, %v576_v0  ;;  %v574_v4 = vpack.c.bf16 %v425_v18, %v425_v18  ;;  %v687_v26 = vpop.eup %686  ;;  %v422_v5 = vsel %vm342_vm9, %v841_v19, %v539_v20  ;;  %v537_v27 = vadd.f32 -1.0, %v685_v21  ;;  %vm341_vm15 = vcmp.gt.f32.partialorder %v863_v39, 0.0 }
 0x112   :  { %498 = vst.msk [vmem:[%s978_s3 + $0x4] sm:$0xf] %vm496_vm0, %v566_v1  ;;  %v571_v29 = vpack.c.bf16 %v422_v5, %v422_v5  ;;  %v430_v30 = vsel %vm350_vm10, %v843_v23, %v547_v22  ;;  %v545_v31 = vadd.f32 -1.0, %v687_v26  ;;  %v689_v32 = vpop.eup %688  ;;  %vm349_vm1 = vcmp.gt.f32.partialorder %v869_v38, 0.0 }
 0x113   :  { %506 = vst.msk [vmem:[%s978_s3 + $0x24] sm:$0xf] %vm496_vm0, %v574_v4  ;;  %v579_v33 = vpack.c.bf16 %v430_v30, %v430_v30  ;;  %v420_v34 = vsel %vm340_vm11, %v845_v24, %v537_v27  ;;  %v691_v19 = vpop.eup %690  ;;  %v540_v42 = vadd.f32 -1.0, %v689_v32 }
 0x114   :  { %503 = vst.msk [vmem:[%s978_s3 + $0x18] sm:$0xf] %vm496_vm0, %v571_v29  ;;  %v569_v37 = vpack.c.bf16 %v420_v34, %v420_v34  ;;  %v428_v41 = vsel %vm348_vm12, %v848_v28, %v545_v31  ;;  %v548_v24 = vadd.f32 -1.0, %v691_v19  ;;  %v693_v28 = vpop.eup %692 }
 0x115   :  { %511 = vst.msk [vmem:[%s978_s3 + $0x38] sm:$0xf] %vm496_vm0, %v579_v33  ;;  %v577_v23 = vpack.c.bf16 %v428_v41, %v428_v41  ;;  %v423_v43 = vsel %vm343_vm13, %v857_v35, %v540_v42  ;;  %v538_v46 = vadd.f32 -1.0, %v693_v28 }
 0x116   :  { %501 = vst.msk [vmem:[%s978_s3 + $0x10] sm:$0xf] %vm496_vm0, %v569_v37  ;;  %v572_v44 = vpack.c.bf16 %v423_v43, %v423_v43  ;;  %v431_v45 = vsel %vm351_vm14, %v859_v36, %v548_v24 }
 0x117   :  { %509 = vst.msk [vmem:[%s978_s3 + $0x30] sm:$0xf] %vm496_vm0, %v577_v23  ;;  %v580_v40 = vpack.c.bf16 %v431_v45, %v431_v45  ;;  %v421_v35 = vsel %vm341_vm15, %v863_v39, %v538_v46  ;;  %v695_v50 = vpop.eup %694 }
 0x118   :  { %504 = vst.msk [vmem:[%s978_s3 + $0x1c] sm:$0xf] %vm496_vm0, %v572_v44  ;;  %v570_v47 = vpack.c.bf16 %v421_v35, %v421_v35  ;;  %v546_v36 = vadd.f32 -1.0, %v695_v50 }
 0x119   :  { %512 = vst.msk [vmem:[%s978_s3 + $0x3c] sm:$0xf] %vm496_vm0, %v580_v40 }
 0x11a   :  { %502 = vst.msk [vmem:[%s978_s3 + $0x14] sm:$0xf] %vm496_vm0, %v570_v47  ;;  %v429_v51 = vsel %vm349_vm1, %v869_v38, %v546_v36 }
 0x11b   :  { %v578_v54 = vpack.c.bf16 %v429_v51, %v429_v51 }
 0x11d   :  { %510 = vst.msk [vmem:[%s978_s3 + $0x34] sm:$0xf] %vm496_vm0, %v578_v54 }

// kernel: unet_forward.10
= control target key start
LH: loop header
LB: loop body
LE: loop exit
PB: predicated region body
PF: predicated region fallthrough
CT: control target
= control target key end

     0   :  { %v887_v0 = vmov 0   ;;  %vm142_vm0 = vcmask 130048   ;;  %v888_v12 = vmov 1   ;;  %v889_v14 = vmov 2   ;;  %s891_s29 = smov 101   ;;  %s892_s30 = smov 31   ;;  %s1128_s5 = inlined_call_operand.vmem [shape: bf16[144,32], index: 5, kind: input, shape index: {}]   ;;  %s1129_s0 = inlined_call_operand.vmem [shape: bf16[32,144], index: 0, kind: input, shape index: {}]   ;;  %s1130_s1 = inlined_call_operand.vmem [shape: f32[32,3], index: 1, kind: input, shape index: {}]   ;;  %s1131_s2 = inlined_call_operand.vmem [shape: bf16[32,288], index: 2, kind: input, shape index: {}]   ;;  %s1132_s3 = inlined_call_operand.vmem [shape: f32[32,3], index: 3, kind: input, shape index: {}]   ;;  %s1133_s4 = inlined_call_operand.vmem [shape: bf16[9,32], index: 4, kind: input, shape index: {}]   ;;  %s1134_s6 = inlined_call_operand.vmem [shape: bf16[32,32], index: 6, kind: output, shape index: {}]  }
   0x1   :  { %149 = vmatprep.subr.bf16.mxu0 %v887_v0  ;;  %v848_v1 = vld [vmem:[%s1128_s5] sm:$0xff]   ;;  %834 = vset.pattern.permute.xlu0 %v887_v0  ;;  %v849_v2 = vld [vmem:[%s1128_s5 + $0x8] sm:$0xff]   ;;  %v850_v3 = vld [vmem:[%s1128_s5 + $0x10] sm:$0xff]   ;;  %s893_s7 = smov 127   ;;  %s894_s8 = smov 4   ;;  %vm274_vm5 = vcmask 39936  }
   0x2   :  { %835 = vset.pattern.permute.xlu1 %v887_v0  ;;  %150 = vmatpush1.bf16.msra.mxu0 %v848_v1  ;;  %v851_v4 = vld [vmem:[%s1128_s5 + $0x18] sm:$0xff]   ;;  %v859_v5 = vld [vmem:[%s1129_s0 + $0x4] ss:$8 sps:$4 sm:$0xff]   ;;  %v48_v7 = vld [vmem:[%s1130_s1 + $0x10] sm:$0xff]  ;;  %s895_s9 = smov 100   ;;  %s896_s10 = smov 29  }
   0x3   :  { %151 = vmatprep.subr.bf16.mxu0 %v887_v0  ;;  %v46_v6 = vld [vmem:[%s1130_s1] sm:$0xff]  ;;  %749 = vmatprep.mubr.msk.bf16.mxu0 %vm142_vm0, %v859_v5  ;;  %v47_v8 = vld [vmem:[%s1130_s1 + $0x8] sm:$0xff]  ;;  %v49_v10 = vld [vmem:[%s1130_s1 + $0x18] sm:$0xff]  ;;  %s897_s11 = smov 125   ;;  %s898_s12 = smov 3   ;;  %vm380_vm6 = vcmask 252928  }
   0x4   :  { %52 = vperm.xlu0 %834, %v46_v6   ;;  %62 = vperm.xlu1 %835, %v48_v7   ;;  %v852_v9 = vld [vmem:[%s1128_s5 + $0x20] sm:$0xff]   ;;  %v853_v11 = vld [vmem:[%s1128_s5 + $0x28] sm:$0xff]   ;;  %v854_v13 = vld [vmem:[%s1128_s5 + $0x30] sm:$0xff]   ;;  %s899_s13 = smov 99   ;;  %s900_s14 = smov 28   ;;  %vm301_vm7 = vcmask 31744  }
   0x5   :  { %v855_v15 = vld [vmem:[%s1128_s5 + $0x38] sm:$0xff]   ;;  %v856_v16 = vld [vmem:[%s1128_s5 + $0x40] sm:$0xff]   ;;  %s901_s15 = smov 124   ;;  %s902_s16 = smov 1   ;;  %vm408_vm8 = vcmask 236544   ;;  %vm327_vm9 = vcmask 23552  }
   0x6   :  { %152 = vmatpush1.bf16.msra.mxu0 %v849_v2  ;;  %v857_v17 = vld [vmem:[%s1129_s0] ss:$8 sps:$4 sm:$0xff]   ;;  %v860_v18 = vld [vmem:[%s1129_s0 + $0x14] ss:$8 sps:$4 sm:$0xff]   ;;  %v862_v19 = vld [vmem:[%s1129_s0 + $0x10] ss:$8 sps:$4 sm:$0xff]  }
   0x7   :  { %153 = vmatprep.subr.bf16.mxu0 %v887_v0  ;;  %s890_s0 = smov 5   ;;  %s903_s17 = smov 97   ;;  %vm435_vm10 = vcmask 228352   ;;  %vm354_vm11 = vcmask 7168   ;;  %vm461_vm12 = vcmask 220160   ;;  %vm542_vm13 = vcmask 261120  }
   0x8   :  { %57 = vperm.xlu0 %834, %v47_v8   ;;  %67 = vperm.xlu1 %835, %v49_v10   ;;  %s904_s1 = smov 27   ;;  %s905_s20 = smov 123  }
   0xa   :  { %154 = vmatpush1.bf16.msra.mxu0 %v850_v3 }
   0xb   :  { %155 = vmatprep.subr.bf16.mxu0 %v887_v0 }
   0xc   :  { %836 = vset.pattern.permute.xlu0 %v888_v12  ;;  %837 = vset.pattern.permute.xlu1 %v888_v12 }
   0xd   :  { %223 = vperm.xlu0 %836, %v46_v6   ;;  %227 = vperm.xlu1 %837, %v47_v8  }
   0xe   :  { %156 = vmatpush1.bf16.msra.mxu0 %v851_v4 }
   0xf   :  { %157 = vmatprep.subr.bf16.mxu0 %v887_v0 }
  0x11   :  { %839 = vset.pattern.permute.xlu0 %v889_v14  ;;  %838 = vset.pattern.permute.xlu1 %v889_v14 }
  0x12   :  { %158 = vmatpush1.bf16.msra.mxu0 %v852_v9  ;;  %243 = vperm.xlu1 %838, %v46_v6  }
  0x13   :  { %159 = vmatprep.subr.bf16.mxu0 %v887_v0  ;;  %247 = vperm.xlu0 %839, %v47_v8  }
  0x16   :  { %160 = vmatpush1.bf16.msra.mxu0 %v853_v11  ;;  %840 = vset.pattern.permute.xlu1 %v888_v12  ;;  %v488_v11 = vld [vmem:[%s1132_s3] sm:$0xff] }
  0x17   :  { %161 = vmatprep.subr.bf16.mxu0 %v887_v0  ;;  %231 = vperm.xlu1 %840, %v48_v7  }
  0x18   :  { %251 = vperm.xlu0 %839, %v48_v7  }
  0x1a   :  { %162 = vmatpush1.bf16.msra.mxu0 %v854_v13  ;;  %v489_v13 = vld [vmem:[%s1132_s3 + $0x8] sm:$0xff] }
  0x1b   :  { %163 = vmatprep.subr.bf16.mxu0 %v887_v0  ;;  %235 = vperm.xlu1 %840, %v49_v10  }
  0x1c   :  { %842 = vset.pattern.permute.xlu0 %v887_v0 }
  0x1e   :  { %164 = vmatpush1.bf16.msra.mxu0 %v855_v15  ;;  %v490_v15 = vld [vmem:[%s1132_s3 + $0x10] sm:$0xff] }
  0x1f   :  { %165 = vmatprep.subr.bf16.mxu0 %v887_v0  ;;  %841 = vset.pattern.permute.xlu1 %v889_v14 }
  0x20   :  { %255 = vperm.xlu1 %841, %v49_v10   ;;  %v865_v10 = vld [vmem:[%s1131_s2 + $0x4] ss:$12 sps:$4 sm:$0xff]  }
  0x21   :  { %581 = vmatprep.mubr.bf16.mxu1 %v865_v10 }
  0x22   :  { %166 = vmatpush1.bf16.msra.mxu0 %v856_v16  ;;  %v491_v16 = vld [vmem:[%s1132_s3 + $0x18] sm:$0xff] }
  0x24   :  { %843 = vset.pattern.permute.xlu1 %v887_v0 }
  0x25   :  { %182 = vmatmul.mubr.bf16.vlgmr.msra.gmra.mrb[0].mxu0 %v857_v17  ;;  %v287_v17 = vlaneseq }
  0x26   :  { %750 = vmatprep.mubr.msk.bf16.mxu0 %vm142_vm0, %v860_v18 }
  0x27   :  { %v1054_v18 = vshrl.u32 %v287_v17, 7 }
  0x2d   :  { %190 = vmatmul.mubr.bf16.gmra.mrb[4].mxu0 %v862_v19  ;;  %v283_v19 = vld [vmem:[%s1133_s4] sm:$0x1] }
  0x83   :  { %v53_v20 = vpop.permute.xlu0 %52  ;;  %v63_v21 = vpop.permute.xlu1 %62 }
  0x87   :  { %v58_v23 = vpop.permute.xlu0 %57  ;;  %v68_v27 = vpop.permute.xlu1 %67 }
  0x8c   :  { %v228_v33 = vpop.permute.xlu1 %227  ;;  %v224_v47 = vpop.permute.xlu0 %223 }
  0x91   :  { %v244_v42 = vpop.permute.xlu1 %243 }
  0x92   :  { %v248_v56 = vpop.permute.xlu0 %247 }
  0x96   :  { %v232_v49 = vpop.permute.xlu1 %231 }
  0x97   :  { %v252_v6 = vpop.permute.xlu0 %251 }
  0x9a   :  { %v236_v57 = vpop.permute.xlu1 %235 }
  0x9f   :  { %v256_v4 = vpop.permute.xlu1 %255 }
  0xf8   :  { %v183_v22 = vpop.f32.mrb[0].mxu0 }
  0xf9   :  { %v184_v24 = vadd.f32 %v183_v22, %v53_v20  ;;  %v185_v25 = vpop.f32.mrb[1].mxu0  ;;  %v1060_v20 = vsub.s32 0, %v1054_v18 }
  0xfa   :  { %v186_v26 = vpop.f32.mrb[2].mxu0 }
  0xfb   :  { %v202_v28 = vmin.f32 %v184_v24, 0.0  ;;  %v187_v29 = vadd.f32 %v186_v26, %v58_v23  ;;  %v188_v30 = vpop.f32.mrb[3].mxu0  ;;  %vm198_vm1 = vcmp.gt.f32.partialorder %v184_v24, 0.0 }
  0xfd   :  { %v206_v31 = vmul.f32 1.442695, %v202_v28  ;;  %v203_v32 = vmin.f32 %v187_v29, 0.0  ;;  %vm199_vm2 = vcmp.gt.f32.partialorder %v187_v29, 0.0 }
  0xff   :  { %871 = vpow2.f32 %v206_v31  ;;  %v208_v34 = vmul.f32 1.442695, %v203_v32  ;;  %v389_v31 = vld [vmem:[%s1133_s4] sm:$0x4] }
 0x100   :  { %v191_v35 = vpop.f32.mrb[4].mxu0 }
 0x101   :  { %873 = vpow2.f32 %v208_v34  ;;  %v192_v36 = vadd.f32 %v191_v35, %v63_v21  ;;  %v193_v37 = vpop.f32.mrb[5].mxu0  ;;  %v391_v34 = vshrl.u32 %v389_v31, 16 }
 0x102   :  { %v194_v38 = vpop.f32.mrb[6].mxu0  ;;  %v310_v37 = vshrl.u32 %v283_v19, 16 }
 0x103   :  { %v204_v39 = vmin.f32 %v192_v36, 0.0  ;;  %v195_v40 = vadd.f32 %v194_v38, %v68_v27  ;;  %v196_v41 = vpop.f32.mrb[7].mxu0  ;;  %vm200_vm3 = vcmp.gt.f32.partialorder %v192_v36, 0.0  ;;  %v392_v38 = vpack.i.b16 %v391_v34, %v391_v34 }
 0x105   :  { %v210_v43 = vmul.f32 1.442695, %v204_v39  ;;  %v205_v44 = vmin.f32 %v195_v40, 0.0  ;;  %vm201_vm4 = vcmp.gt.f32.partialorder %v195_v40, 0.0  ;;  %v396_v39 = vsub.s32 2, %v1054_v18 }
 0x107   :  { %875 = vpow2.f32 %v210_v43  ;;  %v212_v45 = vmul.f32 1.442695, %v205_v44  ;;  %v397_v43 = vrot.slane %v392_v38, %v396_v39  ;;  %v863_v39 = vld [vmem:[%s1131_s2] ss:$12 sps:$4 sm:$0xff]  }
 0x109   :  { %v872_v46 = vpop.eup %871  ;;  %877 = vpow2.f32 %v212_v45  ;;  %v417_v45 = vld [vmem:[%s1133_s4] sm:$0x8] }
 0x10a   :  { %v751_v48 = vadd.f32 -1.0, %v872_v46 }
 0x10b   :  { %v874_v50 = vpop.eup %873 }
 0x10c   :  { %v752_v51 = vadd.f32 -1.0, %v874_v50  ;;  %v218_v52 = vsel %vm198_vm1, %v184_v24, %v751_v48 }
 0x10d   :  { %v238_v53 = vmul.f32 %v224_v47, %v218_v52 }
 0x10e   :  { %v219_v54 = vsel %vm199_vm2, %v187_v29, %v752_v51  ;;  %vm727_vm2 = vcmask 257024  }
 0x10f   :  { %v239_v55 = vmul.f32 %v228_v33, %v219_v54  ;;  %v258_v59 = vadd.f32 %v244_v42, %v238_v53  ;;  %v311_v42 = vpack.i.b16 %v310_v37, %v310_v37  ;;  %v419_v53 = vpack.i.b16 %v417_v45, %v417_v45 }
 0x110   :  { %v423_v54 = vsub.s32 3, %v1054_v18 }
 0x111   :  { %v876_v58 = vpop.eup %875  ;;  %v259_v60 = vadd.f32 %v248_v56, %v239_v55  ;;  %v336_v55 = vld [vmem:[%s1133_s4] sm:$0x2] }
 0x112   :  { %v753_v61 = vadd.f32 -1.0, %v876_v58 }
 0x113   :  { %v878_v62 = vpop.eup %877  ;;  %v262_v63 = vpack.c.bf16 %v259_v60, %v258_v59  ;;  %v338_v60 = vpack.i.b16 %v336_v55, %v336_v55 }
 0x114   :  { %v220_v0 = vsel %vm200_vm3, %v192_v36, %v753_v61  ;;  %v754_v1 = vadd.f32 -1.0, %v878_v62  ;;  %v342_v61 = vsub.s32 1, %v1054_v18 }
 0x115   :  { %v240_v2 = vmul.f32 %v232_v49, %v220_v0  ;;  %270 = vrot.lane.b32.xlu1 %v262_v63, %s890_s0  ;;  %266 = vrot.lane.b32.xlu0 %v262_v63, %s891_s29  ;;  %v316_v49 = vrot.slane %v311_v42, %v1060_v20  ;;  %v444_v0 = vshrl.u32 %v417_v45, 16  ;;  %v866_v42 = vld [vmem:[%s1131_s2 + $0x1c] ss:$12 sps:$4 sm:$0xff]  }
 0x116   :  { %v221_v3 = vsel %vm201_vm4, %v195_v40, %v754_v1  ;;  %775 = vmatprep.subr.bf16.mxu1 %v262_v63 }
 0x117   :  { %v241_v5 = vmul.f32 %v236_v57, %v221_v3  ;;  %v260_v7 = vadd.f32 %v252_v6, %v240_v2  ;;  %v363_v6 = vshrl.u32 %v336_v55, 16  ;;  %v445_v10 = vpack.i.b16 %v444_v0, %v444_v0 }
 0x119   :  { %v261_v8 = vadd.f32 %v256_v4, %v241_v5  ;;  %376 = vrot.lane.b32.xlu1 %v262_v63, %s892_s30  ;;  %372 = vrot.lane.b32.xlu0 %v262_v63, %s893_s7  ;;  %v343_v5 = vrot.slane %v338_v60, %v342_v61  ;;  %v364_v17 = vpack.i.b16 %v363_v6, %v363_v6 }
 0x11b   :  { %v1015_v9 = vpack.c.bf16 %v261_v8, %v260_v7 }
 0x11d   :  { %297 = vrot.lane.b32.xlu1 %v262_v63, %s894_s8  ;;  %293 = vrot.lane.b32.xlu0 %v262_v63, %s895_s9 }
 0x121   :  { %404 = vrot.lane.b32.xlu1 %v262_v63, %s896_s10  ;;  %400 = vrot.lane.b32.xlu0 %v262_v63, %s897_s11 }
 0x125   :  { %323 = vrot.lane.b32.xlu1 %v262_v63, %s898_s12  ;;  %319 = vrot.lane.b32.xlu0 %v262_v63, %s899_s13 }
 0x129   :  { %431 = vrot.lane.b32.xlu1 %v262_v63, %s900_s14  ;;  %427 = vrot.lane.b32.xlu0 %v262_v63, %s901_s15 }
 0x12d   :  { %350 = vrot.lane.b32.xlu1 %v262_v63, %s902_s16  ;;  %346 = vrot.lane.b32.xlu0 %v262_v63, %s903_s17 }
 0x131   :  { %272 = vrot.lane.b32.xlu1 %v1015_v9, %s890_s0  ;;  %268 = vrot.lane.b32.xlu0 %v1015_v9, %s891_s29 }
 0x135   :  { %378 = vrot.lane.b32.xlu1 %v1015_v9, %s892_s30  ;;  %374 = vrot.lane.b32.xlu0 %v1015_v9, %s893_s7 }
 0x139   :  { %299 = vrot.lane.b32.xlu1 %v1015_v9, %s894_s8  ;;  %295 = vrot.lane.b32.xlu0 %v1015_v9, %s895_s9 }
 0x13d   :  { %406 = vrot.lane.b32.xlu1 %v1015_v9, %s896_s10  ;;  %402 = vrot.lane.b32.xlu0 %v1015_v9, %s897_s11 }
 0x141   :  { %325 = vrot.lane.b32.xlu1 %v1015_v9, %s898_s12  ;;  %321 = vrot.lane.b32.xlu0 %v1015_v9, %s899_s13 }
 0x145   :  { %433 = vrot.lane.b32.xlu1 %v1015_v9, %s900_s14  ;;  %429 = vrot.lane.b32.xlu0 %v1015_v9, %s901_s15 }
 0x149   :  { %352 = vrot.lane.b32.xlu1 %v1015_v9, %s902_s16  ;;  %348 = vrot.lane.b32.xlu0 %v1015_v9, %s903_s17 }
 0x14d   :  { %457 = vrot.lane.b32.xlu1 %v262_v63, %s904_s1  ;;  %453 = vrot.lane.b32.xlu0 %v262_v63, %s905_s20  ;;  %v424_v63 = vrot.slane %v419_v53, %v423_v54 }
 0x151   :  { %459 = vrot.lane.b32.xlu1 %v1015_v9, %s904_s1  ;;  %455 = vrot.lane.b32.xlu0 %v1015_v9, %s905_s20 }
 0x155   :  { %494 = vperm.xlu0 %842, %v488_v11   ;;  %499 = vperm.xlu1 %843, %v489_v13  }
 0x159   :  { %504 = vperm.xlu1 %843, %v490_v15   ;;  %509 = vperm.xlu0 %842, %v491_v16  }
 0x15d   :  { %844 = vset.pattern.permute.xlu1 %v888_v12  ;;  %845 = vset.pattern.permute.xlu0 %v888_v12  ;;  %v285_v12 = vpack.i.b16 %v283_v19, %v283_v19  ;;  %v450_v19 = vrot.slane %v445_v10, %v423_v54 }
 0x15e   :  { %672 = vperm.xlu1 %844, %v488_v11   ;;  %676 = vperm.xlu0 %845, %v489_v13  }
 0x15f   :  { %v290_v21 = vrot.slane %v285_v12, %v1060_v20 }
 0x162   :  { %680 = vperm.xlu1 %844, %v490_v15   ;;  %846 = vset.pattern.permute.xlu0 %v889_v14 }
 0x163   :  { %692 = vperm.xlu0 %846, %v488_v11  }
 0x166   :  { %684 = vperm.xlu1 %844, %v491_v16  }
 0x167   :  { %704 = vperm.xlu0 %846, %v491_v16  }
 0x16a   :  { %847 = vset.pattern.permute.xlu1 %v889_v14 }
 0x16b   :  { %696 = vperm.xlu1 %847, %v489_v13  }
 0x16f   :  { %700 = vperm.xlu1 %847, %v490_v15  }
 0x187   :  { %v271_v22 = vpop.permute.xlu1 %270  ;;  %v267_v23 = vpop.permute.xlu0 %266 }
 0x188   :  { %v277_v14 = vsel %vm274_vm5, %v267_v23, %v271_v22 }
 0x189   :  { %v291_v24 = vmul.bf16 %v290_v21, %v277_v14  ;;  %v369_v14 = vrot.slane %v364_v17, %v342_v61 }
 0x18b   :  { %v377_v25 = vpop.permute.xlu1 %376  ;;  %v373_v26 = vpop.permute.xlu0 %372  ;;  %776 = vmatpush3.bf16.msra.mxu1 %v291_v24 }
 0x18c   :  { %777 = vmatprep.subr.bf16.mxu1 %v1015_v9  ;;  %v383_v44 = vsel %vm380_vm6, %v373_v26, %v377_v25 }
 0x18d   :  { %v398_v51 = vmul.bf16 %v397_v43, %v383_v44 }
 0x18f   :  { %v298_v27 = vpop.permute.xlu1 %297  ;;  %v294_v28 = vpop.permute.xlu0 %293 }
 0x190   :  { %v304_v52 = vsel %vm301_vm7, %v294_v28, %v298_v27  ;;  %v470_v27 = vld [vmem:[%s1133_s4 + $0x4] sm:$0x1] }
 0x191   :  { %v317_v59 = vmul.bf16 %v316_v49, %v304_v52 }
 0x193   :  { %v405_v29 = vpop.permute.xlu1 %404  ;;  %v401_v30 = vpop.permute.xlu0 %400 }
 0x194   :  { %v411_v1 = vsel %vm408_vm8, %v401_v30, %v405_v29 }
 0x195   :  { %v425_v8 = vmul.bf16 %v424_v63, %v411_v1 }
 0x197   :  { %v324_v32 = vpop.permute.xlu1 %323  ;;  %v320_v33 = vpop.permute.xlu0 %319 }
 0x198   :  { %v330_v9 = vsel %vm327_vm9, %v320_v33, %v324_v32  ;;  %v472_v33 = vpack.i.b16 %v470_v27, %v470_v27 }
 0x199   :  { %v344_v16 = vmul.bf16 %v343_v5, %v330_v9 }
 0x19a   :  { %v477_v38 = vrot.slane %v472_v33, %v1060_v20 }
 0x19b   :  { %v432_v35 = vpop.permute.xlu1 %431  ;;  %v428_v36 = vpop.permute.xlu0 %427 }
 0x19c   :  { %v438_v12 = vsel %vm435_vm10, %v428_v36, %v432_v35 }
 0x19d   :  { %v451_v25 = vmul.bf16 %v450_v19, %v438_v12 }
 0x19f   :  { %v1069_v40 = vpop.permute.xlu1 %350  ;;  %v1071_v41 = vpop.permute.xlu0 %346 }
 0x1a0   :  { %v357_v26 = vsel %vm354_vm11, %v1071_v41, %v1069_v40 }
 0x1a1   :  { %v370_v31 = vmul.bf16 %v369_v14, %v357_v26 }
 0x1a3   :  { %v273_v46 = vpop.permute.xlu1 %272  ;;  %v269_v47 = vpop.permute.xlu0 %268 }
 0x1a4   :  { %v281_v48 = vsel %vm274_vm5, %v269_v47, %v273_v46 }
 0x1a5   :  { %v292_v50 = vmul.bf16 %v290_v21, %v281_v48  ;;  %v868_v48 = vld [vmem:[%s1131_s2 + $0x18] ss:$12 sps:$4 sm:$0xff]  }
 0x1a7   :  { %v379_v56 = vpop.permute.xlu1 %378  ;;  %v375_v57 = vpop.permute.xlu0 %374  ;;  %778 = vmatpush3.bf16.msra.mxu1 %v292_v50  ;;  %v870_v50 = vld [vmem:[%s1131_s2 + $0x20] ss:$12 sps:$4 sm:$0xff]  }
 0x1a8   :  { %v387_v58 = vsel %vm380_vm6, %v375_v57, %v379_v56  ;;  %779 = vmatprep.subr.bf16.mxu1 %v398_v51 }
 0x1a9   :  { %v399_v62 = vmul.bf16 %v397_v43, %v387_v58 }
 0x1ab   :  { %v300_v2 = vpop.permute.xlu1 %299  ;;  %v296_v3 = vpop.permute.xlu0 %295  ;;  %780 = vmatpush3.bf16.msra.mxu1 %v317_v59 }
 0x1ac   :  { %v308_v4 = vsel %vm301_vm7, %v296_v3, %v300_v2  ;;  %781 = vmatprep.subr.bf16.mxu1 %v399_v62 }
 0x1ad   :  { %v318_v7 = vmul.bf16 %v316_v49, %v308_v4  ;;  %v869_v49 = vld [vmem:[%s1131_s2 + $0x8] ss:$12 sps:$4 sm:$0xff]  }
 0x1af   :  { %v407_v11 = vpop.permute.xlu1 %406  ;;  %v403_v13 = vpop.permute.xlu0 %402  ;;  %782 = vmatpush3.bf16.msra.mxu1 %v318_v7 }
 0x1b0   :  { %v415_v15 = vsel %vm408_vm8, %v403_v13, %v407_v11  ;;  %783 = vmatprep.subr.bf16.mxu1 %v425_v8 }
 0x1b1   :  { %v426_v18 = vmul.bf16 %v424_v63, %v415_v15 }
 0x1b3   :  { %v326_v21 = vpop.permute.xlu1 %325  ;;  %v322_v22 = vpop.permute.xlu0 %321  ;;  %784 = vmatpush3.bf16.msra.mxu1 %v344_v16 }
 0x1b4   :  { %v334_v23 = vsel %vm327_vm9, %v322_v22, %v326_v21  ;;  %785 = vmatprep.subr.bf16.mxu1 %v426_v18 }
 0x1b5   :  { %v345_v24 = vmul.bf16 %v343_v5, %v334_v23 }
 0x1b7   :  { %v434_v28 = vpop.permute.xlu1 %433  ;;  %v430_v29 = vpop.permute.xlu0 %429  ;;  %786 = vmatpush3.bf16.msra.mxu1 %v345_v24 }
 0x1b8   :  { %v442_v30 = vsel %vm435_vm10, %v430_v29, %v434_v28  ;;  %787 = vmatprep.subr.bf16.mxu1 %v451_v25 }
 0x1b9   :  { %v452_v32 = vmul.bf16 %v450_v19, %v442_v30 }
 0x1bb   :  { %v353_v34 = vpop.permute.xlu1 %352  ;;  %v349_v35 = vpop.permute.xlu0 %348  ;;  %788 = vmatpush3.bf16.msra.mxu1 %v370_v31 }
 0x1bc   :  { %v361_v36 = vsel %vm354_vm11, %v349_v35, %v353_v34  ;;  %789 = vmatprep.subr.bf16.mxu1 %v452_v32 }
 0x1bd   :  { %v371_v37 = vmul.bf16 %v369_v14, %v361_v36 }
 0x1bf   :  { %v458_v40 = vpop.permute.xlu1 %457  ;;  %v454_v41 = vpop.permute.xlu0 %453  ;;  %790 = vmatpush3.bf16.msra.mxu1 %v371_v37 }
 0x1c0   :  { %v464_v43 = vsel %vm461_vm12, %v454_v41, %v458_v40 }
 0x1c1   :  { %v478_v44 = vmul.bf16 %v477_v38, %v464_v43 }
 0x1c2   :  { %582 = vmatmul.mubr.bf16.vlgmr.msra.gmra.mrb[0].mxu1 %v863_v39 }
 0x1c3   :  { %v460_v45 = vpop.permute.xlu1 %459  ;;  %v456_v46 = vpop.permute.xlu0 %455  ;;  %807 = vmatprep.subr.bf16.mxu1 %v478_v44  ;;  %589 = vmatprep.mubr.bf16.mxu1 %v866_v42 }
 0x1c4   :  { %v468_v47 = vsel %vm461_vm12, %v456_v46, %v460_v45  ;;  %808 = vmatpush3.bf16.msra.mxu1 %v478_v44 }
 0x1c5   :  { %v479_v20 = vmul.bf16 %v477_v38, %v468_v47 }
 0x1c7   :  { %809 = vmatprep.subr.bf16.mxu1 %v479_v20 }
 0x1c8   :  { %810 = vmatpush3.bf16.msra.mxu1 %v479_v20 }
 0x1ca   :  { %590 = vmatmul.mubr.bf16.gmra.mrb[4].mxu1 %v868_v48 }
 0x1cb   :  { %811 = vmatprep.mubr.msk.bf16.mxu1 %vm542_vm13, %v869_v49 }
 0x1d2   :  { %812 = vmatmul.mubr.msk.bf16.vlgmr.msra.gmra.mrb[8].mxu1 %vm542_vm13, %v870_v50 }
 0x1d4   :  { %v500_v57 = vpop.permute.xlu1 %499  ;;  %v495_v61 = vpop.permute.xlu0 %494 }
 0x1d8   :  { %v505_v59 = vpop.permute.xlu1 %504  ;;  %v510_v2 = vpop.permute.xlu0 %509 }
 0x1dd   :  { %v673_v3 = vpop.permute.xlu1 %672  ;;  %v677_v27 = vpop.permute.xlu0 %676 }
 0x1e1   :  { %v681_v12 = vpop.permute.xlu1 %680 }
 0x1e2   :  { %v693_v32 = vpop.permute.xlu0 %692 }
 0x1e5   :  { %v685_v26 = vpop.permute.xlu1 %684 }
 0x1e6   :  { %v705_v48 = vpop.permute.xlu0 %704 }
 0x1ea   :  { %v697_v28 = vpop.permute.xlu1 %696 }
 0x1ee   :  { %v701_v38 = vpop.permute.xlu1 %700 }
 0x295   :  { %v791_v51 = vpop.f32.mrb[0].mxu1 }
 0x296   :  { %v792_v52 = vpop.f32.mrb[1].mxu1 }
 0x297   :  { %v793_v53 = vadd.f32 %v792_v52, %v791_v51  ;;  %v794_v54 = vpop.f32.mrb[2].mxu1 }
 0x298   :  { %v795_v55 = vpop.f32.mrb[3].mxu1 }
 0x299   :  { %v796_v56 = vadd.f32 %v795_v55, %v794_v54  ;;  %v584_v5 = vadd.f32 %v793_v53, %v495_v61 }
 0x29b   :  { %v587_v10 = vadd.f32 %v796_v56, %v500_v57 }
 0x29d   :  { %v797_v58 = vpop.f32.mrb[4].mxu1 }
 0x29e   :  { %v798_v60 = vpop.f32.mrb[5].mxu1 }
 0x29f   :  { %v799_v62 = vadd.f32 %v798_v60, %v797_v58  ;;  %v800_v63 = vpop.f32.mrb[6].mxu1 }
 0x2a0   :  { %v801_v0 = vpop.f32.mrb[7].mxu1 }
 0x2a1   :  { %v802_v1 = vadd.f32 %v801_v0, %v800_v63  ;;  %v592_v4 = vadd.f32 %v799_v62, %v505_v59 }
 0x2a3   :  { %v595_v7 = vadd.f32 %v802_v1, %v510_v2 }
 0x2a5   :  { %v813_v6 = vpop.f32.mrb[8].mxu1 }
 0x2a6   :  { %v641_v8 = vadd.f32 %v813_v6, %v592_v4  ;;  %v632_v9 = vpop.f32.mrb[9].mxu1 }
 0x2a7   :  { %v633_v11 = vadd.f32 %v632_v9, %v584_v5  ;;  %v814_v13 = vpop.f32.mrb[10].mxu1 }
 0x2a8   :  { %v653_v15 = vmin.f32 %v641_v8, 0.0  ;;  %v644_v16 = vadd.f32 %v814_v13, %v595_v7  ;;  %v635_v17 = vpop.f32.mrb[11].mxu1  ;;  %vm649_vm14 = vcmp.gt.f32.partialorder %v641_v8, 0.0 }
 0x2a9   :  { %v651_v18 = vmin.f32 %v633_v11, 0.0  ;;  %v636_v19 = vadd.f32 %v635_v17, %v587_v10  ;;  %vm647_vm15 = vcmp.gt.f32.partialorder %v633_v11, 0.0 }
 0x2aa   :  { %v659_v21 = vmul.f32 1.442695, %v653_v15  ;;  %v654_v22 = vmin.f32 %v644_v16, 0.0  ;;  %vm650_vm0 = vcmp.gt.f32.partialorder %v644_v16, 0.0 }
 0x2ab   :  { %v655_v23 = vmul.f32 1.442695, %v651_v18  ;;  %v652_v14 = vmin.f32 %v636_v19, 0.0  ;;  %vm648_vm1 = vcmp.gt.f32.partialorder %v636_v19, 0.0 }
 0x2ac   :  { %879 = vpow2.f32 %v659_v21  ;;  %v661_v24 = vmul.f32 1.442695, %v654_v22 }
 0x2ad   :  { %881 = vpow2.f32 %v655_v23  ;;  %v657_v25 = vmul.f32 1.442695, %v652_v14 }
 0x2ae   :  { %883 = vpow2.f32 %v661_v24 }
 0x2af   :  { %885 = vpow2.f32 %v657_v25 }
 0x2b6   :  { %v880_v29 = vpop.eup %879 }
 0x2b7   :  { %v882_v30 = vpop.eup %881  ;;  %v765_v31 = vadd.f32 -1.0, %v880_v29 }
 0x2b8   :  { %v884_v33 = vpop.eup %883  ;;  %v763_v34 = vadd.f32 -1.0, %v882_v30 }
 0x2b9   :  { %v886_v35 = vpop.eup %885  ;;  %v669_v36 = vsel %vm649_vm14, %v641_v8, %v765_v31  ;;  %v766_v37 = vadd.f32 -1.0, %v884_v33 }
 0x2ba   :  { %v667_v39 = vsel %vm647_vm15, %v633_v11, %v763_v34  ;;  %v689_v40 = vmul.f32 %v681_v12, %v669_v36  ;;  %v764_v41 = vadd.f32 -1.0, %v886_v35 }
 0x2bb   :  { %v687_v42 = vmul.f32 %v673_v3, %v667_v39  ;;  %v670_v43 = vsel %vm650_vm0, %v644_v16, %v766_v37 }
 0x2bc   :  { %v690_v44 = vmul.f32 %v685_v26, %v670_v43  ;;  %v668_v45 = vsel %vm648_vm1, %v636_v19, %v764_v41  ;;  %v709_v46 = vadd.f32 %v701_v38, %v689_v40 }
 0x2bd   :  { %v688_v47 = vmul.f32 %v677_v27, %v668_v45  ;;  %v707_v20 = vadd.f32 %v693_v32, %v687_v42 }
 0x2be   :  { %v773_v49 = vpack.c.bf16 %v709_v46, %v709_v46  ;;  %v710_v50 = vadd.f32 %v705_v48, %v690_v44 }
 0x2bf   :  { %v708_v51 = vadd.f32 %v697_v28, %v688_v47  ;;  %v771_v52 = vpack.c.bf16 %v707_v20, %v707_v20 }
 0x2c0   :  { %730 = vst.msk [vmem:[%s1134_s6 + $0x8] sm:$0xf] %vm727_vm2, %v773_v49  ;;  %v774_v53 = vpack.c.bf16 %v710_v50, %v710_v50 }
 0x2c1   :  { %v772_v54 = vpack.c.bf16 %v708_v51, %v708_v51  ;;  %728 = vst.msk [vmem:[%s1134_s6] sm:$0xf] %vm727_vm2, %v771_v52 }
 0x2c2   :  { %731 = vst.msk [vmem:[%s1134_s6 + $0xc] sm:$0xf] %vm727_vm2, %v774_v53 }
 0x2c3   :  { %729 = vst.msk [vmem:[%s1134_s6 + $0x4] sm:$0xf] %vm727_vm2, %v772_v54 }

// kernel: unet_forward.13
= control target key start
LH: loop header
LB: loop body
LE: loop exit
PB: predicated region body
PF: predicated region fallthrough
CT: control target
= control target key end

     0   :  { %v411_v1 = vmov 0   ;;  %vm123_vm0 = vcmask 523264   ;;  %s517_s1 = inlined_call_operand.vmem [shape: bf16[64,128], index: 1, kind: input, shape index: {}]   ;;  %s518_s0 = inlined_call_operand.vmem [shape: bf16[64,64], index: 0, kind: input, shape index: {}]   ;;  %s519_s2 = inlined_call_operand.vmem [shape: f32[64,3], index: 2, kind: input, shape index: {}]   ;;  %s520_s3 = inlined_call_operand.vmem [shape: bf16[64,128], index: 3, kind: output, shape index: {}]  }
   0x1   :  { %v387_v0 = vld [vmem:[%s517_s1] sm:$0xff]   ;;  %386 = vset.pattern.permute.xlu1 %v411_v1  ;;  %385 = vset.pattern.permute.xlu0 %v411_v1  ;;  %v388_v2 = vld [vmem:[%s517_s1 + $0x8] sm:$0xff]   ;;  %v389_v3 = vld [vmem:[%s517_s1 + $0x10] sm:$0xff]  }
   0x2   :  { %360 = vmatprep.subr.bf16.mxu0 %v387_v0  ;;  %376 = vmatprep.subr.bf16.mxu1 %v387_v0  ;;  %v391_v4 = vld [vmem:[%s518_s0] sm:$0xff]   ;;  %v392_v5 = vld [vmem:[%s518_s0 + $0x10] sm:$0xff]   ;;  %v390_v6 = vld [vmem:[%s517_s1 + $0x18] sm:$0xff]  }
   0x3   :  { %361 = vmatpush3.bf16.msra.mxu0 %v387_v0  ;;  %380 = vmatpush3.bf16.msra.mxu1 %v387_v0  ;;  %v33_v7 = vld [vmem:[%s519_s2 + $0x10] sm:$0xff]  ;;  %v31_v8 = vld [vmem:[%s519_s2] sm:$0xff]  ;;  %v34_v9 = vld [vmem:[%s519_s2 + $0x18] sm:$0xff] }
   0x4   :  { %362 = vmatprep.subr.bf16.mxu0 %v388_v2  ;;  %377 = vmatprep.subr.bf16.mxu1 %v388_v2  ;;  %v32_v10 = vld [vmem:[%s519_s2 + $0x8] sm:$0xff]  ;;  %v394_v12 = vld [vmem:[%s518_s0 + $0x18] sm:$0xff]   ;;  %v35_v14 = vld [vmem:[%s519_s2 + $0x20] sm:$0xff] }
   0x5   :  { %368 = vmatprep.mubr.msk.bf16.mxu0 %vm123_vm0, %v391_v4  ;;  %372 = vmatprep.mubr.msk.bf16.mxu1 %vm123_vm0, %v392_v5  ;;  %v393_v11 = vld [vmem:[%s518_s0 + $0x8] sm:$0xff]   ;;  %v38_v15 = vld [vmem:[%s519_s2 + $0x38] sm:$0xff]  ;;  %v37_v16 = vld [vmem:[%s519_s2 + $0x30] sm:$0xff] }
   0x6   :  { %51 = vperm.xlu1 %386, %v33_v7   ;;  %41 = vperm.xlu0 %385, %v31_v8   ;;  %v36_v13 = vld [vmem:[%s519_s2 + $0x28] sm:$0xff] }
   0x7   :  { %363 = vmatpush3.bf16.msra.mxu0 %v388_v2  ;;  %381 = vmatpush3.bf16.msra.mxu1 %v388_v2 }
   0x8   :  { %364 = vmatprep.subr.bf16.mxu0 %v389_v3  ;;  %378 = vmatprep.subr.bf16.mxu1 %v389_v3 }
   0xa   :  { %56 = vperm.xlu1 %386, %v34_v9   ;;  %46 = vperm.xlu0 %385, %v32_v10  }
   0xb   :  { %365 = vmatpush3.bf16.msra.mxu0 %v389_v3  ;;  %382 = vmatpush3.bf16.msra.mxu1 %v389_v3 }
   0xc   :  { %366 = vmatprep.subr.bf16.mxu0 %v390_v6  ;;  %379 = vmatprep.subr.bf16.mxu1 %v390_v6 }
   0xe   :  { %66 = vperm.xlu1 %386, %v36_v13   ;;  %61 = vperm.xlu0 %385, %v35_v14  }
   0xf   :  { %367 = vmatpush3.bf16.msra.mxu0 %v390_v6  ;;  %383 = vmatpush3.bf16.msra.mxu1 %v390_v6 }
  0x12   :  { %369 = vmatmul.mubr.msk.bf16.vlgmr.msra.gmra.mrb[0].mxu0 %vm123_vm0, %v393_v11  ;;  %373 = vmatmul.mubr.msk.bf16.vlgmr.msra.gmra.mrb[0].mxu1 %vm123_vm0, %v394_v12 }
  0x13   :  { %76 = vperm.xlu1 %386, %v38_v15   ;;  %71 = vperm.xlu0 %385, %v37_v16  }
  0x85   :  { %v42_v17 = vpop.permute.xlu0 %41  ;;  %v52_v18 = vpop.permute.xlu1 %51 }
  0x89   :  { %v47_v19 = vpop.permute.xlu0 %46  ;;  %v57_v20 = vpop.permute.xlu1 %56 }
  0x8d   :  { %v62_v21 = vpop.permute.xlu0 %61  ;;  %v67_v22 = vpop.permute.xlu1 %66 }
  0x92   :  { %v72_v23 = vpop.permute.xlu0 %71  ;;  %v77_v38 = vpop.permute.xlu1 %76 }
  0xe5   :  { %v370_v24 = vpop.f32.mrb[0].mxu0  ;;  %v374_v25 = vpop.f32.mrb[0].mxu1 }
  0xe6   :  { %v179_v26 = vadd.f32 %v370_v24, %v52_v18  ;;  %v484_v27 = vadd.f32 %v374_v25, %v72_v23  ;;  %v170_v28 = vpop.f32.mrb[1].mxu0  ;;  %v186_v29 = vpop.f32.mrb[1].mxu1 }
  0xe7   :  { %v486_v30 = vadd.f32 %v170_v28, %v42_v17  ;;  %v488_v31 = vadd.f32 %v186_v29, %v62_v21  ;;  %v371_v32 = vpop.f32.mrb[2].mxu0  ;;  %v375_v33 = vpop.f32.mrb[2].mxu1 }
  0xe8   :  { %v211_v34 = vmin.f32 %v179_v26, 0.0  ;;  %v215_v35 = vmin.f32 %v484_v27, 0.0  ;;  %v173_v36 = vpop.f32.mrb[3].mxu0  ;;  %v189_v37 = vpop.f32.mrb[3].mxu1  ;;  %v182_v43 = vadd.f32 %v371_v32, %v57_v20  ;;  %v198_v44 = vadd.f32 %v375_v33, %v77_v38 }
  0xe9   :  { %v209_v39 = vmin.f32 %v486_v30, 0.0  ;;  %v213_v40 = vmin.f32 %v488_v31, 0.0  ;;  %v174_v47 = vadd.f32 %v173_v36, %v47_v19  ;;  %v190_v48 = vadd.f32 %v189_v37, %v67_v22 }
  0xea   :  { %v221_v41 = vmul.f32 1.442695, %v211_v34  ;;  %v229_v42 = vmul.f32 1.442695, %v215_v35  ;;  %v212_v49 = vmin.f32 %v182_v43, 0.0  ;;  %v216_v50 = vmin.f32 %v198_v44, 0.0 }
  0xeb   :  { %v217_v45 = vmul.f32 1.442695, %v209_v39  ;;  %v225_v46 = vmul.f32 1.442695, %v213_v40  ;;  %v210_v51 = vmin.f32 %v174_v47, 0.0  ;;  %v214_v53 = vmin.f32 %v190_v48, 0.0 }
  0xec   :  { %395 = vpow2.f32 %v221_v41  ;;  %v223_v52 = vmul.f32 1.442695, %v212_v49  ;;  %v231_v54 = vmul.f32 1.442695, %v216_v50  ;;  %vm203_vm1 = vcmp.gt.f32.partialorder %v179_v26, 0.0 }
  0xed   :  { %397 = vpow2.f32 %v229_v42  ;;  %v219_v55 = vmul.f32 1.442695, %v210_v51  ;;  %v227_v56 = vmul.f32 1.442695, %v214_v53  ;;  %vm207_vm2 = vcmp.gt.f32.partialorder %v484_v27, 0.0 }
  0xee   :  { %399 = vpow2.f32 %v217_v45  ;;  %vm201_vm3 = vcmp.gt.f32.partialorder %v486_v30, 0.0  ;;  %vm205_vm4 = vcmp.gt.f32.partialorder %v488_v31, 0.0  ;;  %vm204_vm5 = vcmp.gt.f32.partialorder %v182_v43, 0.0 }
  0xef   :  { %401 = vpow2.f32 %v225_v46  ;;  %vm208_vm6 = vcmp.gt.f32.partialorder %v198_v44, 0.0  ;;  %vm202_vm7 = vcmp.gt.f32.partialorder %v174_v47, 0.0  ;;  %vm206_vm8 = vcmp.gt.f32.partialorder %v190_v48, 0.0 }
  0xf0   :  { %403 = vpow2.f32 %v223_v52 }
  0xf1   :  { %405 = vpow2.f32 %v231_v54 }
  0xf2   :  { %407 = vpow2.f32 %v219_v55 }
  0xf3   :  { %409 = vpow2.f32 %v227_v56 }
  0xf6   :  { %v396_v57 = vpop.eup %395 }
  0xf7   :  { %v398_v58 = vpop.eup %397  ;;  %v307_v61 = vadd.f32 -1.0, %v396_v57 }
  0xf8   :  { %v400_v59 = vpop.eup %399  ;;  %v311_v63 = vadd.f32 -1.0, %v398_v58 }
  0xf9   :  { %v402_v60 = vpop.eup %401  ;;  %v305_v1 = vadd.f32 -1.0, %v400_v59  ;;  %v243_v7 = vsel %vm203_vm1, %v179_v26, %v307_v61 }
  0xfa   :  { %v404_v62 = vpop.eup %403  ;;  %v309_v4 = vadd.f32 -1.0, %v402_v60  ;;  %v247_v10 = vsel %vm207_vm2, %v484_v27, %v311_v63 }
  0xfb   :  { %v406_v0 = vpop.eup %405  ;;  %v308_v2 = vadd.f32 -1.0, %v404_v62  ;;  %v241_v14 = vsel %vm201_vm3, %v486_v30, %v305_v1 }
  0xfc   :  { %v408_v3 = vpop.eup %407  ;;  %v312_v5 = vadd.f32 -1.0, %v406_v0  ;;  %v245_v17 = vsel %vm205_vm4, %v488_v31, %v309_v4 }
  0xfd   :  { %v410_v6 = vpop.eup %409  ;;  %v244_v8 = vsel %vm204_vm5, %v182_v43, %v308_v2  ;;  %v306_v9 = vadd.f32 -1.0, %v408_v3 }
  0xfe   :  { %v337_v11 = vpack.c.bf16 %v244_v8, %v243_v7  ;;  %v248_v12 = vsel %vm208_vm6, %v198_v44, %v312_v5  ;;  %v310_v13 = vadd.f32 -1.0, %v410_v6 }
  0xff   :  { %v347_v15 = vpack.c.bf16 %v248_v12, %v247_v10  ;;  %v242_v16 = vsel %vm202_vm7, %v174_v47, %v306_v9 }
 0x100   :  { %349 = vst [vmem:[%s520_s3 + $0x8] sm:$0xff] %v337_v11   ;;  %v332_v18 = vpack.c.bf16 %v242_v16, %v241_v14  ;;  %v246_v19 = vsel %vm206_vm8, %v190_v48, %v310_v13 }
 0x101   :  { %351 = vst [vmem:[%s520_s3 + $0x18] sm:$0xff] %v347_v15   ;;  %v342_v20 = vpack.c.bf16 %v246_v19, %v245_v17 }
 0x102   :  { %333 = vst [vmem:[%s520_s3] sm:$0xff] %v332_v18  }
 0x103   :  { %350 = vst [vmem:[%s520_s3 + $0x10] sm:$0xff] %v342_v20  }

// kernel: unet_forward.12
= control target key start
LH: loop header
LB: loop body
LE: loop exit
PB: predicated region body
PF: predicated region fallthrough
CT: control target
= control target key end

     0   :  { %v745_v0 = vmov 0   ;;  %v746_v3 = vmov 1   ;;  %vm275_vm0 = vcmask 392192   ;;  %v747_v34 = vmov 2   ;;  %s750_s14 = smov 1   ;;  %s751_s15 = smov 7   ;;  %s960_s5 = inlined_call_operand.vmem [shape: bf16[432,128], index: 5, kind: input, shape index: {}]   ;;  %s961_s0 = inlined_call_operand.vmem [shape: bf16[16,432], index: 0, kind: input, shape index: {}]   ;;  %s962_s1 = inlined_call_operand.vmem [shape: f32[16,3], index: 1, kind: input, shape index: {}]   ;;  %s963_s2 = inlined_call_operand.vmem [shape: bf16[16,144], index: 2, kind: input, shape index: {}]   ;;  %s964_s3 = inlined_call_operand.vmem [shape: f32[16,3], index: 3, kind: input, shape index: {}]   ;;  %s965_s4 = inlined_call_operand.vmem [shape: bf16[9,128], index: 4, kind: input, shape index: {}]   ;;  %s966_s6 = inlined_call_operand.vmem [shape: bf16[16,128], index: 6, kind: output, shape index: {}]  }
   0x1   :  { %320 = vmatprep.subr.bf16.mxu1 %v745_v0  ;;  %v701_v1 = vld [vmem:[%s960_s5 + $0x80] sm:$0xff]   ;;  %692 = vset.pattern.permute.xlu0 %v745_v0  ;;  %v704_v5 = vld [vmem:[%s960_s5 + $0x88] sm:$0xff]   ;;  %v707_v8 = vld [vmem:[%s960_s5 + $0x90] sm:$0xff]   ;;  %s752_s16 = smov 121   ;;  %s753_s17 = smov 127   ;;  %vm520_vm3 = vcmask 130048  }
   0x2   :  { %v702_v2 = vld [vmem:[%s960_s5 + $0x40] sm:$0xff]   ;;  %693 = vset.pattern.permute.xlu1 %v746_v3  ;;  %321 = vmatpush1.bf16.msra.mxu1 %v701_v1  ;;  %v705_v6 = vld [vmem:[%s960_s5 + $0x48] sm:$0xff]   ;;  %v708_v9 = vld [vmem:[%s960_s5 + $0x50] sm:$0xff]   ;;  %s754_s18 = smov 119   ;;  %s755_s19 = smov 120  }
   0x3   :  { %v703_v4 = vld [vmem:[%s960_s5] sm:$0xff]   ;;  %659 = vmatprep.subr.bf16.mxu0 %v702_v2  ;;  %322 = vmatprep.subr.bf16.mxu1 %v745_v0  ;;  %v706_v7 = vld [vmem:[%s960_s5 + $0x8] sm:$0xff]   ;;  %v709_v10 = vld [vmem:[%s960_s5 + $0x10] sm:$0xff]  }
   0x4   :  { %660 = vmatpush3.bf16.msra.mxu0 %v703_v4  ;;  %v710_v11 = vld [vmem:[%s960_s5 + $0x98] sm:$0xff]   ;;  %v714_v14 = vld [vmem:[%s960_s5 + $0x60] sm:$0xff]   ;;  %v717_v17 = vld [vmem:[%s960_s5 + $0x68] sm:$0xff]  }
   0x5   :  { %661 = vmatprep.subr.bf16.mxu0 %v705_v6  ;;  %v711_v12 = vld [vmem:[%s960_s5 + $0x58] sm:$0xff]   ;;  %v713_v15 = vld [vmem:[%s960_s5 + $0xa0] sm:$0xff]   ;;  %v716_v18 = vld [vmem:[%s960_s5 + $0xa8] sm:$0xff]  }
   0x6   :  { %323 = vmatpush1.bf16.msra.mxu1 %v704_v5  ;;  %v712_v13 = vld [vmem:[%s960_s5 + $0x18] sm:$0xff]   ;;  %v715_v16 = vld [vmem:[%s960_s5 + $0x20] sm:$0xff]   ;;  %v718_v19 = vld [vmem:[%s960_s5 + $0x28] sm:$0xff]  }
   0x7   :  { %324 = vmatprep.subr.bf16.mxu1 %v745_v0  ;;  %v720_v20 = vld [vmem:[%s960_s5 + $0x70] sm:$0xff]   ;;  %v722_v23 = vld [vmem:[%s960_s5 + $0xb8] sm:$0xff]   ;;  %v82_v28 = vld [vmem:[%s962_s1] sm:$0xff] }
   0x8   :  { %662 = vmatpush3.bf16.msra.mxu0 %v706_v7  ;;  %v719_v21 = vld [vmem:[%s960_s5 + $0xb0] sm:$0xff]   ;;  %v723_v24 = vld [vmem:[%s960_s5 + $0x78] sm:$0xff]   ;;  %v725_v29 = vld [vmem:[%s960_s5 + $0xc0] sm:$0xff]   ;;  %86 = vperm.xlu0 %692, %v82_v28  }
   0x9   :  { %663 = vmatprep.subr.bf16.mxu0 %v708_v9  ;;  %v721_v22 = vld [vmem:[%s960_s5 + $0x30] sm:$0xff]   ;;  %v724_v26 = vld [vmem:[%s960_s5 + $0x38] sm:$0xff]   ;;  %v83_v31 = vld [vmem:[%s962_s1 + $0x8] sm:$0xff]  ;;  %374 = vperm.xlu1 %693, %v82_v28  }
   0xa   :  { %325 = vmatpush1.bf16.msra.mxu1 %v707_v8  ;;  %v728_v25 = vld [vmem:[%s961_s0 + $0x4] ss:$16 sps:$4 sm:$0xff]   ;;  %v733_v27 = vld [vmem:[%s961_s0 + $0xc] ss:$16 sps:$4 sm:$0xff]   ;;  %v726_v30 = vld [vmem:[%s961_s0] ss:$16 sps:$4 sm:$0xff]  }
   0xb   :  { %326 = vmatprep.subr.bf16.mxu1 %v745_v0  ;;  %311 = vmatprep.mubr.bf16.mxu0 %v728_v25  ;;  %v729_v32 = vld [vmem:[%s960_s5 + $0xc8] sm:$0xff]   ;;  %v730_v33 = vld [vmem:[%s960_s5 + $0xd0] sm:$0xff]   ;;  %s749_s5 = smov 9  }
   0xc   :  { %664 = vmatpush3.bf16.msra.mxu0 %v709_v10  ;;  %642 = vmatprep.mubr.msk.bf16.mxu1 %vm275_vm0, %v733_v27  ;;  %v731_v35 = vld [vmem:[%s961_s0 + $0x8] ss:$16 sps:$4 sm:$0xff]   ;;  %s748_s0 = smov 8   ;;  %v734_v9 = vld [vmem:[%s963_s2 + $0x4] ss:$8 sps:$4 sm:$0xff]  }
   0xd   :  { %665 = vmatprep.subr.bf16.mxu0 %v711_v12  ;;  %91 = vperm.xlu0 %692, %v83_v31   ;;  %v499_v10 = vld [vmem:[%s964_s3] sm:$0xff]  ;;  %v403_v12 = vlaneseq }
   0xe   :  { %327 = vmatpush1.bf16.msra.mxu1 %v710_v11  ;;  %378 = vperm.xlu1 %693, %v83_v31   ;;  %v500_v11 = vld [vmem:[%s964_s3 + $0x8] sm:$0xff] }
   0xf   :  { %328 = vmatprep.subr.bf16.mxu1 %v745_v0 }
  0x10   :  { %666 = vmatpush3.bf16.msra.mxu0 %v712_v13  ;;  %v399_v13 = vld [vmem:[%s965_s4] sm:$0x1] }
  0x11   :  { %667 = vmatprep.subr.bf16.mxu0 %v714_v14  ;;  %694 = vset.pattern.permute.xlu0 %v747_v34  ;;  %v404_v14 = vshrl.u32 %v403_v12, 7 }
  0x12   :  { %329 = vmatpush1.bf16.msra.mxu1 %v713_v15  ;;  %384 = vperm.xlu0 %694, %v82_v28   ;;  %v412_v15 = vshrl.u32 %v399_v13, 16 }
  0x13   :  { %330 = vmatprep.subr.bf16.mxu1 %v745_v0  ;;  %695 = vset.pattern.permute.xlu1 %v747_v34 }
  0x14   :  { %668 = vmatpush3.bf16.msra.mxu0 %v715_v16  ;;  %388 = vperm.xlu1 %695, %v83_v31   ;;  %v405_v16 = vsub.s32 0, %v404_v14  ;;  %v449_v31 = vld [vmem:[%s965_s4] sm:$0x4] }
  0x15   :  { %669 = vmatprep.subr.bf16.mxu0 %v717_v17  ;;  %v401_v17 = vpack.i.b16 %v399_v13, %v399_v13 }
  0x16   :  { %331 = vmatpush1.bf16.msra.mxu1 %v716_v18  ;;  %697 = vset.pattern.permute.xlu0 %v745_v0  ;;  %v413_v18 = vpack.i.b16 %v412_v15, %v412_v15 }
  0x17   :  { %332 = vmatprep.subr.bf16.mxu1 %v745_v0 }
  0x18   :  { %670 = vmatpush3.bf16.msra.mxu0 %v718_v19  ;;  %696 = vset.pattern.permute.xlu1 %v745_v0  ;;  %v406_v19 = vrot.slane %v401_v17, %v405_v16 }
  0x19   :  { %671 = vmatprep.subr.bf16.mxu0 %v720_v20  ;;  %v418_v20 = vrot.slane %v413_v18, %v405_v16 }
  0x1a   :  { %333 = vmatpush1.bf16.msra.mxu1 %v719_v21 }
  0x1b   :  { %334 = vmatprep.subr.bf16.mxu1 %v745_v0 }
  0x1c   :  { %672 = vmatpush3.bf16.msra.mxu0 %v721_v22 }
  0x1d   :  { %673 = vmatprep.subr.bf16.mxu0 %v723_v24 }
  0x1e   :  { %335 = vmatpush1.bf16.msra.mxu1 %v722_v23  ;;  %v430_v23 = vsub.s32 1, %v404_v14 }
  0x1f   :  { %336 = vmatprep.subr.bf16.mxu1 %v745_v0 }
  0x20   :  { %674 = vmatpush3.bf16.msra.mxu0 %v724_v26 }
  0x21   :  { %524 = vmatprep.subr.bf16.mxu0 %v745_v0 }
  0x22   :  { %337 = vmatpush1.bf16.msra.mxu1 %v725_v29 }
  0x23   :  { %312 = vmatmul.mubr.bf16.vlgmr.msra.gmra.mrb[0].mxu0 %v726_v30  ;;  %338 = vmatprep.subr.bf16.mxu1 %v745_v0 }
  0x24   :  { %647 = vmatprep.mubr.msk.bf16.mxu0 %vm520_vm3, %v734_v9 }
  0x26   :  { %339 = vmatpush1.bf16.msra.mxu1 %v729_v32 }
  0x27   :  { %340 = vmatprep.subr.bf16.mxu1 %v745_v0 }
  0x2a   :  { %341 = vmatpush1.bf16.msra.mxu1 %v730_v33 }
  0x2d   :  { %353 = vmatmul.mubr.bf16.vlgmr.msra.gmra.mrb[0].mxu1 %v731_v35 }
  0x87   :  { %v87_v38 = vpop.permute.xlu0 %86 }
  0x88   :  { %v375_v56 = vpop.permute.xlu1 %374 }
  0x8c   :  { %v92_v43 = vpop.permute.xlu0 %91 }
  0x8d   :  { %v379_v59 = vpop.permute.xlu1 %378 }
  0x91   :  { %v385_v2 = vpop.permute.xlu0 %384 }
  0x93   :  { %v389_v4 = vpop.permute.xlu1 %388 }
  0xf6   :  { %v675_v36 = vpop.f32.mrb[0].mxu0 }
  0xf7   :  { %v676_v37 = vpop.f32.mrb[1].mxu0 }
  0xf8   :  { %v677_v39 = vadd.f32 %v676_v37, %v675_v36  ;;  %v678_v40 = vpop.f32.mrb[2].mxu0 }
  0xf9   :  { %v679_v41 = vpop.f32.mrb[3].mxu0 }
  0xfa   :  { %v680_v42 = vadd.f32 %v679_v41, %v678_v40  ;;  %v314_v44 = vadd.f32 %v677_v39, %v87_v38  ;;  %v456_v38 = vsub.s32 2, %v404_v14  ;;  %v463_v39 = vld [vmem:[%s965_s4] sm:$0x8]  ;;  %v469_v41 = vsub.s32 3, %v404_v14 }
  0xfb   :  { %v465_v40 = vpack.i.b16 %v463_v39, %v463_v39 }
  0xfc   :  { %v317_v46 = vadd.f32 %v680_v42, %v92_v43  ;;  %v476_v43 = vshrl.u32 %v463_v39, 16 }
 0x100   :  { %v354_v45 = vpop.f32.mrb[0].mxu1 }
 0x101   :  { %v355_v47 = vadd.f32 %v354_v45, %v314_v44  ;;  %v356_v48 = vpop.f32.mrb[1].mxu1  ;;  %v470_v45 = vrot.slane %v465_v40, %v469_v41 }
 0x102   :  { %v357_v49 = vpop.f32.mrb[2].mxu1 }
 0x103   :  { %v363_v50 = vmin.f32 %v355_v47, 0.0  ;;  %v358_v51 = vadd.f32 %v357_v49, %v317_v46  ;;  %v359_v52 = vpop.f32.mrb[3].mxu1  ;;  %vm361_vm1 = vcmp.gt.f32.partialorder %v355_v47, 0.0  ;;  %v488_v49 = vld [vmem:[%s965_s4 + $0x4] sm:$0x1] }
 0x105   :  { %v365_v53 = vmul.f32 1.442695, %v363_v50  ;;  %v364_v54 = vmin.f32 %v358_v51, 0.0  ;;  %vm362_vm2 = vcmp.gt.f32.partialorder %v358_v51, 0.0 }
 0x107   :  { %737 = vpow2.f32 %v365_v53  ;;  %v367_v55 = vmul.f32 1.442695, %v364_v54 }
 0x109   :  { %739 = vpow2.f32 %v367_v55 }
 0x111   :  { %v738_v57 = vpop.eup %737 }
 0x112   :  { %v643_v58 = vadd.f32 -1.0, %v738_v57 }
 0x113   :  { %v740_v60 = vpop.eup %739 }
 0x114   :  { %v371_v61 = vsel %vm361_vm1, %v355_v47, %v643_v58  ;;  %v644_v62 = vadd.f32 -1.0, %v740_v60  ;;  %v477_v47 = vpack.i.b16 %v476_v43, %v476_v43  ;;  %v736_v58 = vld [vmem:[%s963_s2] ss:$8 sps:$4 sm:$0xff]  }
 0x115   :  { %v381_v63 = vmul.f32 %v375_v56, %v371_v61 }
 0x116   :  { %v372_v1 = vsel %vm362_vm2, %v358_v51, %v644_v62  ;;  %v490_v51 = vpack.i.b16 %v488_v49, %v488_v49  ;;  %v482_v52 = vrot.slane %v477_v47, %v469_v41 }
 0x117   :  { %v382_v5 = vmul.f32 %v379_v59, %v372_v1  ;;  %v391_v6 = vadd.f32 %v385_v2, %v381_v63 }
 0x118   :  { %v495_v54 = vrot.slane %v490_v51, %v405_v16 }
 0x119   :  { %v392_v7 = vadd.f32 %v389_v4, %v382_v5 }
 0x11b   :  { %v908_v8 = vpack.c.bf16 %v392_v7, %v391_v6 }
 0x11d   :  { %408 = vrot.lane.b32.xlu0 %v908_v8, %s748_s0  ;;  %395 = vrot.lane.b32.xlu1 %v908_v8, %s749_s5 }
 0x121   :  { %433 = vrot.lane.b32.xlu0 %v908_v8, %s750_s14  ;;  %420 = vrot.lane.b32.xlu1 %v908_v8, %s751_s15 }
 0x125   :  { %459 = vrot.lane.b32.xlu0 %v908_v8, %s752_s16  ;;  %445 = vrot.lane.b32.xlu1 %v908_v8, %s753_s17 }
 0x129   :  { %484 = vrot.lane.b32.xlu0 %v908_v8, %s754_s18  ;;  %472 = vrot.lane.b32.xlu1 %v908_v8, %s755_s19 }
 0x12d   :  { %503 = vperm.xlu1 %696, %v499_v10   ;;  %508 = vperm.xlu0 %697, %v500_v11  }
 0x131   :  { %698 = vset.pattern.permute.xlu1 %v746_v3  ;;  %699 = vset.pattern.permute.xlu0 %v747_v34  ;;  %v424_v3 = vld [vmem:[%s965_s4] sm:$0x2] }
 0x132   :  { %578 = vperm.xlu1 %698, %v499_v10   ;;  %588 = vperm.xlu0 %699, %v499_v10   ;;  %v437_v24 = vshrl.u32 %v424_v3, 16  ;;  %v426_v25 = vpack.i.b16 %v424_v3, %v424_v3 }
 0x134   :  { %v438_v28 = vpack.i.b16 %v437_v24, %v437_v24  ;;  %v431_v29 = vrot.slane %v426_v25, %v430_v23 }
 0x136   :  { %582 = vperm.xlu1 %698, %v500_v11   ;;  %v443_v32 = vrot.slane %v438_v28, %v430_v23 }
 0x13a   :  { %700 = vset.pattern.permute.xlu1 %v747_v34  ;;  %v451_v34 = vshrl.u32 %v449_v31, 16 }
 0x13b   :  { %592 = vperm.xlu1 %700, %v500_v11  }
 0x13c   :  { %v452_v37 = vpack.i.b16 %v451_v34, %v451_v34 }
 0x13e   :  { %v457_v42 = vrot.slane %v452_v37, %v456_v38 }
 0x18f   :  { %v396_v21 = vpop.permute.xlu1 %395  ;;  %v409_v26 = vpop.permute.xlu0 %408 }
 0x190   :  { %v407_v22 = vmul.bf16 %v406_v19, %v396_v21  ;;  %v419_v27 = vmul.bf16 %v418_v20, %v409_v26 }
 0x192   :  { %525 = vmatpush1.bf16.msra.mxu0 %v407_v22 }
 0x193   :  { %526 = vmatprep.subr.bf16.mxu0 %v745_v0  ;;  %v421_v30 = vpop.permute.xlu1 %420  ;;  %v434_v35 = vpop.permute.xlu0 %433 }
 0x194   :  { %v432_v33 = vmul.bf16 %v431_v29, %v421_v30  ;;  %v444_v36 = vmul.bf16 %v443_v32, %v434_v35 }
 0x196   :  { %527 = vmatpush1.bf16.msra.mxu0 %v419_v27 }
 0x197   :  { %528 = vmatprep.subr.bf16.mxu0 %v745_v0  ;;  %v446_v44 = vpop.permute.xlu1 %445  ;;  %v460_v48 = vpop.permute.xlu0 %459 }
 0x198   :  { %v458_v46 = vmul.bf16 %v457_v42, %v446_v44  ;;  %v471_v50 = vmul.bf16 %v470_v45, %v460_v48 }
 0x19a   :  { %529 = vmatpush1.bf16.msra.mxu0 %v432_v33 }
 0x19b   :  { %530 = vmatprep.subr.bf16.mxu0 %v745_v0  ;;  %v473_v53 = vpop.permute.xlu1 %472  ;;  %v485_v56 = vpop.permute.xlu0 %484 }
 0x19c   :  { %v483_v55 = vmul.bf16 %v482_v52, %v473_v53  ;;  %v496_v57 = vmul.bf16 %v495_v54, %v485_v56 }
 0x19e   :  { %531 = vmatpush1.bf16.msra.mxu0 %v444_v36 }
 0x19f   :  { %532 = vmatprep.subr.bf16.mxu0 %v745_v0 }
 0x1a2   :  { %533 = vmatpush1.bf16.msra.mxu0 %v908_v8 }
 0x1a3   :  { %534 = vmatprep.subr.bf16.mxu0 %v745_v0 }
 0x1a6   :  { %535 = vmatpush1.bf16.msra.mxu0 %v458_v46 }
 0x1a7   :  { %536 = vmatprep.subr.bf16.mxu0 %v745_v0 }
 0x1aa   :  { %537 = vmatpush1.bf16.msra.mxu0 %v471_v50 }
 0x1ab   :  { %538 = vmatprep.subr.bf16.mxu0 %v745_v0 }
 0x1ac   :  { %v504_v59 = vpop.permute.xlu1 %503  ;;  %v509_v61 = vpop.permute.xlu0 %508 }
 0x1ae   :  { %539 = vmatpush1.bf16.msra.mxu0 %v483_v55 }
 0x1af   :  { %540 = vmatprep.subr.bf16.mxu0 %v745_v0 }
 0x1b1   :  { %v579_v8 = vpop.permute.xlu1 %578  ;;  %v589_v17 = vpop.permute.xlu0 %588 }
 0x1b2   :  { %541 = vmatpush1.bf16.msra.mxu0 %v496_v57 }
 0x1b5   :  { %557 = vmatmul.mubr.bf16.vlgmr.msra.gmra.mrb[4].mxu0 %v736_v58  ;;  %v583_v11 = vpop.permute.xlu1 %582 }
 0x1ba   :  { %v593_v18 = vpop.permute.xlu1 %592 }
 0x288   :  { %v558_v60 = vpop.f32.mrb[4].mxu0 }
 0x289   :  { %v559_v62 = vadd.f32 %v558_v60, %v504_v59  ;;  %v560_v63 = vpop.f32.mrb[5].mxu0 }
 0x28a   :  { %v561_v1 = vpop.f32.mrb[6].mxu0 }
 0x28b   :  { %v567_v2 = vmin.f32 %v559_v62, 0.0  ;;  %v562_v4 = vadd.f32 %v561_v1, %v509_v61  ;;  %v563_v5 = vpop.f32.mrb[7].mxu0  ;;  %vm565_vm4 = vcmp.gt.f32.partialorder %v559_v62, 0.0 }
 0x28d   :  { %v569_v6 = vmul.f32 1.442695, %v567_v2  ;;  %v568_v7 = vmin.f32 %v562_v4, 0.0  ;;  %vm566_vm5 = vcmp.gt.f32.partialorder %v562_v4, 0.0 }
 0x28f   :  { %741 = vpow2.f32 %v569_v6  ;;  %v571_v0 = vmul.f32 1.442695, %v568_v7 }
 0x291   :  { %743 = vpow2.f32 %v571_v0 }
 0x299   :  { %v742_v9 = vpop.eup %741 }
 0x29a   :  { %v648_v10 = vadd.f32 -1.0, %v742_v9 }
 0x29b   :  { %v744_v12 = vpop.eup %743 }
 0x29c   :  { %v575_v13 = vsel %vm565_vm4, %v559_v62, %v648_v10  ;;  %v649_v14 = vadd.f32 -1.0, %v744_v12 }
 0x29d   :  { %v585_v15 = vmul.f32 %v579_v8, %v575_v13 }
 0x29e   :  { %v576_v16 = vsel %vm566_vm5, %v562_v4, %v649_v14 }
 0x29f   :  { %v586_v19 = vmul.f32 %v583_v11, %v576_v16  ;;  %v595_v3 = vadd.f32 %v589_v17, %v585_v15 }
 0x2a1   :  { %v596_v20 = vadd.f32 %v593_v18, %v586_v19 }
 0x2a3   :  { %v657_v21 = vpack.c.bf16 %v596_v20, %v595_v3 }
 0x2a5   :  { %658 = vst [vmem:[%s966_s6] sm:$0xff] %v657_v21  }

// kernel: unet_forward.14
= control target key start
LH: loop header
LB: loop body
LE: loop exit
PB: predicated region body
PF: predicated region fallthrough
CT: control target
= control target key end

     0   :  { %v1536_v1 = vmov 0   ;;  %v1537_v2 = vmov 1   ;;  %vm371_vm0 = vcmask 719872   ;;  %v1538_v57 = vmov 2   ;;  %s1540_s15 = smov 17   ;;  %s1541_s16 = smov 113   ;;  %s1977_s5 = inlined_call_operand.vmem [shape: bf16[216,512], index: 5, kind: input, shape index: {}]   ;;  %s1978_s0 = inlined_call_operand.vmem [shape: bf16[16,216], index: 0, kind: input, shape index: {}]   ;;  %s1979_s1 = inlined_call_operand.vmem [shape: f32[16,3], index: 1, kind: input, shape index: {}]   ;;  %s1980_s2 = inlined_call_operand.vmem [shape: bf16[16,144], index: 2, kind: input, shape index: {}]   ;;  %s1981_s3 = inlined_call_operand.vmem [shape: f32[16,3], index: 3, kind: input, shape index: {}]   ;;  %s1982_s4 = inlined_call_operand.vmem [shape: bf16[9,512], index: 4, kind: input, shape index: {}]   ;;  %s1983_s6 = inlined_call_operand.vmem [shape: bf16[16,512], index: 6, kind: output, shape index: {}]  }
   0x1   :  { %v1396_v0 = vld [vmem:[%s1977_s5 + $0x4] ss:$16 sps:$4 sm:$0xff]   ;;  %1387 = vset.pattern.permute.xlu0 %v1536_v1  ;;  %1388 = vset.pattern.permute.xlu1 %v1537_v2  ;;  %v1398_v3 = vld [vmem:[%s1977_s5 + $0xc] ss:$16 sps:$4 sm:$0xff]   ;;  %v1400_v4 = vld [vmem:[%s1977_s5] ss:$16 sps:$4 sm:$0xff]  }
   0x2   :  { %388 = vmatprep.subr.bf16.mxu0 %v1396_v0  ;;  %v1401_v5 = vld [vmem:[%s1977_s5 + $0x8] ss:$16 sps:$4 sm:$0xff]   ;;  %431 = vmatprep.subr.bf16.mxu1 %v1398_v3  ;;  %v1402_v6 = vld [vmem:[%s1977_s5 + $0x24] ss:$16 sps:$4 sm:$0xff]   ;;  %v1404_v7 = vld [vmem:[%s1977_s5 + $0x2c] ss:$16 sps:$4 sm:$0xff]  }
   0x3   :  { %389 = vmatpush1.bf16.msra.mxu0 %v1400_v4  ;;  %432 = vmatpush1.bf16.msra.mxu1 %v1401_v5  ;;  %v1406_v8 = vld [vmem:[%s1977_s5 + $0x20] ss:$16 sps:$4 sm:$0xff]   ;;  %v1407_v9 = vld [vmem:[%s1977_s5 + $0x28] ss:$16 sps:$4 sm:$0xff]   ;;  %v1408_v10 = vld [vmem:[%s1977_s5 + $0x44] ss:$16 sps:$4 sm:$0xff]  }
   0x4   :  { %390 = vmatprep.subr.bf16.mxu0 %v1402_v6  ;;  %433 = vmatprep.subr.bf16.mxu1 %v1404_v7  ;;  %v1410_v11 = vld [vmem:[%s1977_s5 + $0x4c] ss:$16 sps:$4 sm:$0xff]   ;;  %v1412_v12 = vld [vmem:[%s1977_s5 + $0x40] ss:$16 sps:$4 sm:$0xff]   ;;  %v1413_v13 = vld [vmem:[%s1977_s5 + $0x48] ss:$16 sps:$4 sm:$0xff]  }
   0x5   :  { %v1414_v14 = vld [vmem:[%s1977_s5 + $0x64] ss:$16 sps:$4 sm:$0xff]   ;;  %v1416_v15 = vld [vmem:[%s1977_s5 + $0x6c] ss:$16 sps:$4 sm:$0xff]   ;;  %v1418_v16 = vld [vmem:[%s1977_s5 + $0x60] ss:$16 sps:$4 sm:$0xff]  }
   0x6   :  { %v1419_v17 = vld [vmem:[%s1977_s5 + $0x68] ss:$16 sps:$4 sm:$0xff]   ;;  %v1420_v18 = vld [vmem:[%s1977_s5 + $0x84] ss:$16 sps:$4 sm:$0xff]   ;;  %v1422_v19 = vld [vmem:[%s1977_s5 + $0x8c] ss:$16 sps:$4 sm:$0xff]  }
   0x7   :  { %391 = vmatpush1.bf16.msra.mxu0 %v1406_v8  ;;  %434 = vmatpush1.bf16.msra.mxu1 %v1407_v9  ;;  %v1424_v20 = vld [vmem:[%s1977_s5 + $0x80] ss:$16 sps:$4 sm:$0xff]   ;;  %v1425_v21 = vld [vmem:[%s1977_s5 + $0x88] ss:$16 sps:$4 sm:$0xff]   ;;  %v1426_v22 = vld [vmem:[%s1977_s5 + $0xa4] ss:$16 sps:$4 sm:$0xff]  }
   0x8   :  { %392 = vmatprep.subr.bf16.mxu0 %v1408_v10  ;;  %435 = vmatprep.subr.bf16.mxu1 %v1410_v11  ;;  %v1428_v23 = vld [vmem:[%s1977_s5 + $0xac] ss:$16 sps:$4 sm:$0xff]   ;;  %v1430_v24 = vld [vmem:[%s1977_s5 + $0xa0] ss:$16 sps:$4 sm:$0xff]   ;;  %v1431_v25 = vld [vmem:[%s1977_s5 + $0xa8] ss:$16 sps:$4 sm:$0xff]  }
   0x9   :  { %v1432_v26 = vld [vmem:[%s1977_s5 + $0xc4] ss:$16 sps:$4 sm:$0xff]   ;;  %v1434_v27 = vld [vmem:[%s1977_s5 + $0xcc] ss:$16 sps:$4 sm:$0xff]   ;;  %v1436_v28 = vld [vmem:[%s1977_s5 + $0xc0] ss:$16 sps:$4 sm:$0xff]  }
   0xa   :  { %v1437_v29 = vld [vmem:[%s1977_s5 + $0xc8] ss:$16 sps:$4 sm:$0xff]   ;;  %v1438_v30 = vld [vmem:[%s1977_s5 + $0xe4] ss:$16 sps:$4 sm:$0xff]   ;;  %v1440_v31 = vld [vmem:[%s1977_s5 + $0xec] ss:$16 sps:$4 sm:$0xff]  }
   0xb   :  { %393 = vmatpush1.bf16.msra.mxu0 %v1412_v12  ;;  %436 = vmatpush1.bf16.msra.mxu1 %v1413_v13  ;;  %v1442_v32 = vld [vmem:[%s1977_s5 + $0xe0] ss:$16 sps:$4 sm:$0xff]   ;;  %v1443_v33 = vld [vmem:[%s1977_s5 + $0xe8] ss:$16 sps:$4 sm:$0xff]   ;;  %v1444_v34 = vld [vmem:[%s1977_s5 + $0x104] ss:$16 sps:$4 sm:$0xff]  }
   0xc   :  { %394 = vmatprep.subr.bf16.mxu0 %v1414_v14  ;;  %437 = vmatprep.subr.bf16.mxu1 %v1416_v15  ;;  %v1446_v35 = vld [vmem:[%s1977_s5 + $0x10c] ss:$16 sps:$4 sm:$0xff]   ;;  %v1448_v36 = vld [vmem:[%s1977_s5 + $0x100] ss:$16 sps:$4 sm:$0xff]   ;;  %v1449_v37 = vld [vmem:[%s1977_s5 + $0x108] ss:$16 sps:$4 sm:$0xff]  }
   0xd   :  { %v1450_v38 = vld [vmem:[%s1977_s5 + $0x124] ss:$16 sps:$4 sm:$0xff]   ;;  %v1452_v39 = vld [vmem:[%s1977_s5 + $0x12c] ss:$16 sps:$4 sm:$0xff]   ;;  %v1454_v40 = vld [vmem:[%s1977_s5 + $0x120] ss:$16 sps:$4 sm:$0xff]  }
   0xe   :  { %v1455_v41 = vld [vmem:[%s1977_s5 + $0x128] ss:$16 sps:$4 sm:$0xff]   ;;  %v1480_v42 = vld [vmem:[%s1978_s0 + $0x4] ss:$8 sps:$4 sm:$0xff]   ;;  %v1460_v46 = vld [vmem:[%s1977_s5 + $0x140] ss:$16 sps:$4 sm:$0xff]  }
   0xf   :  { %395 = vmatpush1.bf16.msra.mxu0 %v1418_v16  ;;  %438 = vmatpush1.bf16.msra.mxu1 %v1419_v17  ;;  %v80_v43 = vld [vmem:[%s1979_s1] sm:$0xff]  ;;  %v1458_v45 = vld [vmem:[%s1977_s5 + $0x14c] ss:$16 sps:$4 sm:$0xff]   ;;  %v1461_v47 = vld [vmem:[%s1977_s5 + $0x148] ss:$16 sps:$4 sm:$0xff]   ;;  %vm375_vm1 = vcmask 1043456  }
  0x10   :  { %396 = vmatprep.subr.bf16.mxu0 %v1420_v18  ;;  %439 = vmatprep.subr.bf16.mxu1 %v1422_v19  ;;  %v1456_v44 = vld [vmem:[%s1977_s5 + $0x144] ss:$16 sps:$4 sm:$0xff]   ;;  %v81_v48 = vld [vmem:[%s1979_s1 + $0x8] sm:$0xff]  ;;  %v1466_v51 = vld [vmem:[%s1977_s5 + $0x160] ss:$16 sps:$4 sm:$0xff]   ;;  %s1542_s17 = smov 16  }
  0x11   :  { %1325 = vmatprep.mubr.msk.bf16.mxu0 %vm371_vm0, %v1480_v42  ;;  %1327 = vmatprep.mubr.msk.bf16.mxu1 %vm371_vm0, %v1480_v42  ;;  %v1462_v49 = vld [vmem:[%s1977_s5 + $0x164] ss:$16 sps:$4 sm:$0xff]   ;;  %v1464_v50 = vld [vmem:[%s1977_s5 + $0x16c] ss:$16 sps:$4 sm:$0xff]   ;;  %v1467_v52 = vld [vmem:[%s1977_s5 + $0x168] ss:$16 sps:$4 sm:$0xff]  }
  0x12   :  { %84 = vperm.xlu0 %1387, %v80_v43   ;;  %523 = vperm.xlu1 %1388, %v80_v43   ;;  %v1468_v53 = vld [vmem:[%s1977_s5 + $0x184] ss:$16 sps:$4 sm:$0xff]   ;;  %v1470_v54 = vld [vmem:[%s1977_s5 + $0x18c] ss:$16 sps:$4 sm:$0xff]   ;;  %v1472_v58 = vld [vmem:[%s1977_s5 + $0x180] ss:$16 sps:$4 sm:$0xff]  }
  0x13   :  { %397 = vmatpush1.bf16.msra.mxu0 %v1424_v20  ;;  %440 = vmatpush1.bf16.msra.mxu1 %v1425_v21  ;;  %v78_v55 = vld [vmem:[%s1977_s5 + $0x1a0] sm:$0xff]  ;;  %v79_v56 = vld [vmem:[%s1977_s5 + $0x1a8] sm:$0xff]  ;;  %s1543_s18 = smov 15   ;;  %s1544_s19 = smov 1   ;;  %vm634_vm10 = vcmask 130048   ;;  %vm570_vm11 = vcmask 138240  }
  0x14   :  { %398 = vmatprep.subr.bf16.mxu0 %v1426_v22  ;;  %441 = vmatprep.subr.bf16.mxu1 %v1428_v23  ;;  %v1473_v59 = vld [vmem:[%s1977_s5 + $0x188] ss:$16 sps:$4 sm:$0xff]   ;;  %v1321_v60 = vcombine.high %v78_v55, %v78_v55  ;;  %v1323_v61 = vcombine.high %v79_v56, %v79_v56  ;;  %v1320_v62 = vcombine.low %v78_v55, %v78_v55  ;;  %s1545_s20 = smov 112   ;;  %s1546_s23 = smov 111   ;;  %vm686_vm12 = vcmask 121856  }
  0x15   :  { %v1322_v63 = vcombine.low %v79_v56, %v79_v56  ;;  %v1478_v4 = vld [vmem:[%s1978_s0] ss:$8 sps:$4 sm:$0xff]   ;;  %s1539_s0 = smov 127   ;;  %vm750_vm13 = vcmask 7168   ;;  %vm802_vm14 = vcmask 1039360   ;;  %vm870_vm15 = vcmask 924672  }
  0x16   :  { %89 = vperm.xlu0 %1387, %v81_v48   ;;  %527 = vperm.xlu1 %1388, %v81_v48   ;;  %v377_v0 = vsel %vm375_vm1, %v1320_v62, 0  ;;  %vm934_vm0 = vcmask 916480  }
  0x17   :  { %399 = vmatpush1.bf16.msra.mxu0 %v1430_v24  ;;  %442 = vmatpush1.bf16.msra.mxu1 %v1431_v25  ;;  %v383_v3 = vsel %vm375_vm1, %v1322_v63, 0 }
  0x18   :  { %400 = vmatprep.subr.bf16.mxu0 %v1432_v26  ;;  %443 = vmatprep.subr.bf16.mxu1 %v1434_v27 }
  0x1a   :  { %1389 = vset.pattern.permute.xlu0 %v1538_v57  ;;  %1390 = vset.pattern.permute.xlu1 %v1538_v57 }
  0x1b   :  { %401 = vmatpush1.bf16.msra.mxu0 %v1436_v28  ;;  %444 = vmatpush1.bf16.msra.mxu1 %v1437_v29 }
  0x1c   :  { %402 = vmatprep.subr.bf16.mxu0 %v1438_v30  ;;  %445 = vmatprep.subr.bf16.mxu1 %v1440_v31 }
  0x1d   :  { %539 = vperm.xlu0 %1389, %v80_v43   ;;  %543 = vperm.xlu1 %1390, %v81_v48  }
  0x1f   :  { %403 = vmatpush1.bf16.msra.mxu0 %v1442_v32  ;;  %446 = vmatpush1.bf16.msra.mxu1 %v1443_v33 }
  0x20   :  { %404 = vmatprep.subr.bf16.mxu0 %v1444_v34  ;;  %447 = vmatprep.subr.bf16.mxu1 %v1446_v35 }
  0x21   :  { %1391 = vset.pattern.permute.xlu1 %v1536_v1  ;;  %1392 = vset.pattern.permute.xlu0 %v1536_v1 }
  0x23   :  { %405 = vmatpush1.bf16.msra.mxu0 %v1448_v36  ;;  %448 = vmatpush1.bf16.msra.mxu1 %v1449_v37 }
  0x24   :  { %406 = vmatprep.subr.bf16.mxu0 %v1450_v38  ;;  %449 = vmatprep.subr.bf16.mxu1 %v1452_v39 }
  0x27   :  { %407 = vmatpush1.bf16.msra.mxu0 %v1454_v40  ;;  %450 = vmatpush1.bf16.msra.mxu1 %v1455_v41 }
  0x28   :  { %408 = vmatprep.subr.bf16.mxu0 %v1456_v44  ;;  %451 = vmatprep.subr.bf16.mxu1 %v1458_v45 }
  0x2b   :  { %409 = vmatpush1.bf16.msra.mxu0 %v1460_v46  ;;  %452 = vmatpush1.bf16.msra.mxu1 %v1461_v47 }
  0x2c   :  { %410 = vmatprep.subr.bf16.mxu0 %v1462_v49  ;;  %453 = vmatprep.subr.bf16.mxu1 %v1464_v50 }
  0x2f   :  { %411 = vmatpush1.bf16.msra.mxu0 %v1466_v51  ;;  %454 = vmatpush1.bf16.msra.mxu1 %v1467_v52 }
  0x30   :  { %412 = vmatprep.subr.bf16.mxu0 %v1468_v53  ;;  %455 = vmatprep.subr.bf16.mxu1 %v1470_v54 }
  0x33   :  { %413 = vmatpush1.bf16.msra.mxu0 %v1472_v58  ;;  %456 = vmatpush1.bf16.msra.mxu1 %v1473_v59 }
  0x34   :  { %1324 = vmatprep.subr.msk.bf16.mxu0 %vm375_vm1, %v1321_v60  ;;  %1326 = vmatprep.subr.msk.bf16.mxu1 %vm375_vm1, %v1323_v61  ;;  %vm986_vm1 = vcmask 908288  }
  0x37   :  { %415 = vmatpush1.bf16.msra.mxu0 %v377_v0  ;;  %458 = vmatpush1.bf16.msra.mxu1 %v383_v3 }
  0x3a   :  { %421 = vmatmul.mubr.bf16.vlgmr.msra.gmra.mrb[0].mxu0 %v1478_v4  ;;  %464 = vmatmul.mubr.bf16.vlgmr.msra.gmra.mrb[0].mxu1 %v1478_v4 }
  0x91   :  { %v85_v5 = vpop.permute.xlu0 %84  ;;  %v524_v38 = vpop.permute.xlu1 %523 }
  0x95   :  { %v90_v19 = vpop.permute.xlu0 %89  ;;  %v528_v47 = vpop.permute.xlu1 %527 }
  0x9c   :  { %v540_v63 = vpop.permute.xlu0 %539  ;;  %v544_v0 = vpop.permute.xlu1 %543 }
 0x10d   :  { %v422_v6 = vpop.f32.mrb[0].mxu0  ;;  %v465_v7 = vpop.f32.mrb[0].mxu1 }
 0x10e   :  { %v423_v8 = vadd.f32 %v422_v6, %v85_v5  ;;  %v466_v9 = vadd.f32 %v465_v7, %v85_v5  ;;  %v424_v10 = vpop.f32.mrb[1].mxu0  ;;  %v467_v11 = vpop.f32.mrb[1].mxu1 }
 0x10f   :  { %v425_v12 = vadd.f32 %v424_v10, %v85_v5  ;;  %v468_v13 = vadd.f32 %v467_v11, %v85_v5  ;;  %v426_v14 = vpop.f32.mrb[2].mxu0  ;;  %v469_v15 = vpop.f32.mrb[2].mxu1 }
 0x110   :  { %v482_v1 = vmin.f32 %v423_v8, 0.0  ;;  %v484_v16 = vmin.f32 %v466_v9, 0.0  ;;  %v428_v17 = vpop.f32.mrb[3].mxu0  ;;  %v471_v18 = vpop.f32.mrb[3].mxu1  ;;  %v427_v24 = vadd.f32 %v426_v14, %v90_v19  ;;  %v470_v25 = vadd.f32 %v469_v15, %v90_v19 }
 0x111   :  { %v483_v20 = vmin.f32 %v425_v12, 0.0  ;;  %v485_v21 = vmin.f32 %v468_v13, 0.0  ;;  %v429_v28 = vadd.f32 %v428_v17, %v90_v19  ;;  %v472_v29 = vadd.f32 %v471_v18, %v90_v19 }
 0x112   :  { %v490_v22 = vmul.f32 1.442695, %v482_v1  ;;  %v494_v23 = vmul.f32 1.442695, %v484_v16  ;;  %v486_v30 = vmin.f32 %v427_v24, 0.0  ;;  %v488_v31 = vmin.f32 %v470_v25, 0.0 }
 0x113   :  { %v492_v26 = vmul.f32 1.442695, %v483_v20  ;;  %v496_v27 = vmul.f32 1.442695, %v485_v21  ;;  %v487_v32 = vmin.f32 %v429_v28, 0.0  ;;  %v489_v34 = vmin.f32 %v472_v29, 0.0 }
 0x114   :  { %1504 = vpow2.f32 %v490_v22  ;;  %v498_v33 = vmul.f32 1.442695, %v486_v30  ;;  %v502_v35 = vmul.f32 1.442695, %v488_v31  ;;  %vm474_vm2 = vcmp.gt.f32.partialorder %v423_v8, 0.0 }
 0x115   :  { %1506 = vpow2.f32 %v494_v23  ;;  %v500_v36 = vmul.f32 1.442695, %v487_v32  ;;  %v504_v37 = vmul.f32 1.442695, %v489_v34  ;;  %vm476_vm3 = vcmp.gt.f32.partialorder %v466_v9, 0.0 }
 0x116   :  { %1508 = vpow2.f32 %v492_v26  ;;  %vm475_vm4 = vcmp.gt.f32.partialorder %v425_v12, 0.0  ;;  %vm477_vm5 = vcmp.gt.f32.partialorder %v468_v13, 0.0  ;;  %vm478_vm6 = vcmp.gt.f32.partialorder %v427_v24, 0.0  ;;  %v1045_v26 = vld [vmem:[%s1981_s3 + $0x8] sm:$0xff]  ;;  %v582_v34 = vld [vmem:[%s1982_s4] sm:$0x11] }
 0x117   :  { %1510 = vpow2.f32 %v496_v27  ;;  %vm480_vm7 = vcmp.gt.f32.partialorder %v470_v25, 0.0  ;;  %vm479_vm8 = vcmp.gt.f32.partialorder %v429_v28, 0.0  ;;  %vm481_vm9 = vcmp.gt.f32.partialorder %v472_v29, 0.0 }
 0x118   :  { %1512 = vpow2.f32 %v498_v33  ;;  %v597_v27 = vlaneseq }
 0x119   :  { %1514 = vpow2.f32 %v502_v35 }
 0x11a   :  { %1516 = vpow2.f32 %v500_v36  ;;  %v1821_v32 = vshrl.u32 %v597_v27, 7  ;;  %v1337_v36 = vcombine.high %v582_v34, %v582_v34 }
 0x11b   :  { %1518 = vpow2.f32 %v504_v37 }
 0x11e   :  { %v1505_v39 = vpop.eup %1504 }
 0x11f   :  { %v1507_v40 = vpop.eup %1506  ;;  %v1328_v41 = vadd.f32 -1.0, %v1505_v39 }
 0x120   :  { %v1509_v42 = vpop.eup %1508  ;;  %v1330_v43 = vadd.f32 -1.0, %v1507_v40 }
 0x121   :  { %v1511_v44 = vpop.eup %1510  ;;  %v514_v45 = vsel %vm474_vm2, %v423_v8, %v1328_v41  ;;  %v1329_v46 = vadd.f32 -1.0, %v1509_v42  ;;  %v602_v42 = vpack.i.b16 %v1337_v36, %v1337_v36 }
 0x122   :  { %v1513_v48 = vpop.eup %1512  ;;  %v516_v49 = vsel %vm476_vm3, %v466_v9, %v1330_v43  ;;  %v1331_v50 = vadd.f32 -1.0, %v1511_v44  ;;  %v530_v58 = vmul.f32 %v524_v38, %v514_v45 }
 0x123   :  { %v1515_v51 = vpop.eup %1514  ;;  %v515_v52 = vsel %vm475_vm4, %v425_v12, %v1329_v46  ;;  %v1332_v53 = vadd.f32 -1.0, %v1513_v48  ;;  %v532_v62 = vmul.f32 %v524_v38, %v516_v49  ;;  %v653_v49 = vshrl.u32 %v1337_v36, 16 }
 0x124   :  { %v1517_v54 = vpop.eup %1516  ;;  %v517_v55 = vsel %vm477_vm5, %v468_v13, %v1331_v50  ;;  %v1334_v56 = vadd.f32 -1.0, %v1515_v51  ;;  %v531_v5 = vmul.f32 %v524_v38, %v515_v52  ;;  %v546_v12 = vadd.f32 %v540_v63, %v530_v58  ;;  %v699_v58 = vld [vmem:[%s1982_s4 + $0x8] sm:$0x22] }
 0x125   :  { %v1519_v59 = vpop.eup %1518  ;;  %v518_v60 = vsel %vm478_vm6, %v427_v24, %v1332_v53  ;;  %v1333_v61 = vadd.f32 -1.0, %v1517_v54  ;;  %v533_v8 = vmul.f32 %v524_v38, %v517_v55  ;;  %v548_v15 = vadd.f32 %v540_v63, %v532_v62  ;;  %v1501_v24 = vld [vmem:[%s1980_s2 + $0x4] ss:$8 sps:$4 sm:$0xff]  }
 0x126   :  { %v520_v3 = vsel %vm480_vm7, %v470_v25, %v1334_v56  ;;  %v1335_v4 = vadd.f32 -1.0, %v1519_v59  ;;  %v534_v6 = vmul.f32 %v528_v47, %v518_v60  ;;  %v547_v16 = vadd.f32 %v540_v63, %v531_v5  ;;  %1358 = vmatprep.mubr.msk.bf16.mxu0 %vm634_vm10, %v1501_v24  ;;  %1359 = vmatprep.mubr.msk.bf16.mxu1 %vm634_vm10, %v1501_v24  ;;  %v1044_v25 = vld [vmem:[%s1981_s3] sm:$0xff] }
 0x127   :  { %v519_v7 = vsel %vm479_vm8, %v429_v28, %v1333_v61  ;;  %v536_v9 = vmul.f32 %v528_v47, %v520_v3  ;;  %v549_v19 = vadd.f32 %v540_v63, %v533_v8  ;;  %v583_v28 = vld [vmem:[%s1982_s4 + $0x8] sm:$0x11]  ;;  %v1336_v38 = vcombine.low %v582_v34, %v582_v34  ;;  %v814_v34 = vld [vmem:[%s1982_s4] sm:$0x44] }
 0x128   :  { %v521_v10 = vsel %vm481_vm9, %v472_v29, %v1335_v4  ;;  %v535_v11 = vmul.f32 %v528_v47, %v519_v7  ;;  %v550_v13 = vadd.f32 %v544_v0, %v534_v6  ;;  %v1339_v31 = vcombine.high %v583_v28, %v583_v28 }
 0x129   :  { %v537_v14 = vmul.f32 %v528_v47, %v521_v10  ;;  %v552_v1 = vadd.f32 %v544_v0, %v536_v9  ;;  %v1338_v37 = vcombine.low %v583_v28, %v583_v28  ;;  %v595_v45 = vpack.i.b16 %v1336_v38, %v1336_v38 }
 0x12a   :  { %v551_v17 = vadd.f32 %v544_v0, %v535_v11  ;;  %v1762_v18 = vpack.c.bf16 %v550_v13, %v546_v12  ;;  %v616_v35 = vpack.i.b16 %v1339_v31, %v1339_v31  ;;  %v667_v44 = vshrl.u32 %v1339_v31, 16  ;;  %v698_v12 = vld [vmem:[%s1982_s4] sm:$0x22] }
 0x12b   :  { %v553_v20 = vadd.f32 %v544_v0, %v537_v14  ;;  %v1764_v21 = vpack.c.bf16 %v552_v1, %v548_v15  ;;  %v609_v43 = vpack.i.b16 %v1338_v37, %v1338_v37  ;;  %v660_v50 = vshrl.u32 %v1338_v37, 16 }
 0x12c   :  { %v1766_v22 = vpack.c.bf16 %v551_v17, %v547_v16  ;;  %794 = vrot.lane.b32.xlu1 %v1762_v18, %s1539_s0  ;;  %564 = vrot.lane.b32.xlu0 %v1762_v18, %s1540_s15  ;;  %v668_v54 = vpack.i.b16 %v667_v44, %v667_v44  ;;  %v646_v56 = vshrl.u32 %v1336_v38, 16  ;;  %v654_v0 = vpack.i.b16 %v653_v49, %v653_v49 }
 0x12d   :  { %v1770_v23 = vpack.c.bf16 %v553_v20, %v549_v19  ;;  %v661_v3 = vpack.i.b16 %v660_v50, %v660_v50  ;;  %v1343_v7 = vcombine.high %v699_v58, %v699_v58  ;;  %v1341_v1 = vcombine.high %v698_v12, %v698_v12 }
 0x12e   :  { %v647_v9 = vpack.i.b16 %v646_v56, %v646_v56  ;;  %v1854_v17 = vsub.s32 1, %v1821_v32  ;;  %v1342_v20 = vcombine.low %v699_v58, %v699_v58 }
 0x12f   :  { %v732_v19 = vpack.i.b16 %v1343_v7, %v1343_v7 }
 0x130   :  { %798 = vrot.lane.b32.xlu1 %v1764_v21, %s1539_s0  ;;  %568 = vrot.lane.b32.xlu0 %v1764_v21, %s1540_s15 }
 0x131   :  { %v737_v38 = vrot.slane %v732_v19, %v1854_v17 }
 0x134   :  { %862 = vrot.lane.b32.xlu1 %v1762_v18, %s1541_s16  ;;  %628 = vrot.lane.b32.xlu0 %v1762_v18, %s1542_s17 }
 0x138   :  { %559 = vrot.lane.b32.xlu1 %v1770_v23, %s1540_s15  ;;  %632 = vrot.lane.b32.xlu0 %v1764_v21, %s1542_s17 }
 0x13c   :  { %566 = vrot.lane.b32.xlu1 %v1766_v22, %s1540_s15  ;;  %680 = vrot.lane.b32.xlu0 %v1762_v18, %s1543_s18 }
 0x140   :  { %626 = vrot.lane.b32.xlu1 %v1770_v23, %s1542_s17  ;;  %684 = vrot.lane.b32.xlu0 %v1764_v21, %s1543_s18 }
 0x144   :  { %630 = vrot.lane.b32.xlu1 %v1766_v22, %s1542_s17  ;;  %744 = vrot.lane.b32.xlu0 %v1762_v18, %s1544_s19 }
 0x148   :  { %678 = vrot.lane.b32.xlu1 %v1770_v23, %s1543_s18  ;;  %748 = vrot.lane.b32.xlu0 %v1764_v21, %s1544_s19 }
 0x14c   :  { %682 = vrot.lane.b32.xlu1 %v1766_v22, %s1543_s18  ;;  %796 = vrot.lane.b32.xlu0 %v1766_v22, %s1539_s0 }
 0x150   :  { %742 = vrot.lane.b32.xlu1 %v1770_v23, %s1544_s19  ;;  %800 = vrot.lane.b32.xlu0 %v1770_v23, %s1539_s0 }
 0x154   :  { %746 = vrot.lane.b32.xlu1 %v1766_v22, %s1544_s19  ;;  %864 = vrot.lane.b32.xlu0 %v1766_v22, %s1541_s16 }
 0x158   :  { %866 = vrot.lane.b32.xlu1 %v1764_v21, %s1541_s16  ;;  %868 = vrot.lane.b32.xlu0 %v1770_v23, %s1541_s16 }
 0x15c   :  { %926 = vrot.lane.b32.xlu1 %v1762_v18, %s1545_s20  ;;  %928 = vrot.lane.b32.xlu0 %v1766_v22, %s1545_s20 }
 0x160   :  { %930 = vrot.lane.b32.xlu1 %v1764_v21, %s1545_s20  ;;  %932 = vrot.lane.b32.xlu0 %v1770_v23, %s1545_s20 }
 0x164   :  { %978 = vrot.lane.b32.xlu1 %v1762_v18, %s1546_s23  ;;  %980 = vrot.lane.b32.xlu0 %v1766_v22, %s1546_s23 }
 0x168   :  { %982 = vrot.lane.b32.xlu1 %v1764_v21, %s1546_s23  ;;  %984 = vrot.lane.b32.xlu0 %v1770_v23, %s1546_s23 }
 0x16c   :  { %1048 = vperm.xlu1 %1391, %v1044_v25   ;;  %1053 = vperm.xlu0 %1392, %v1045_v26  }
 0x170   :  { %1393 = vset.pattern.permute.xlu1 %v1537_v2  ;;  %1394 = vset.pattern.permute.xlu0 %v1538_v57 }
 0x171   :  { %1203 = vperm.xlu1 %1393, %v1044_v25   ;;  %1219 = vperm.xlu0 %1394, %v1044_v25   ;;  %v1340_v25 = vcombine.low %v698_v12, %v698_v12 }
 0x173   :  { %v762_v56 = vshrl.u32 %v1340_v25, 16 }
 0x175   :  { %1207 = vperm.xlu1 %1393, %v1045_v26  }
 0x179   :  { %1395 = vset.pattern.permute.xlu1 %v1538_v57  ;;  %v1829_v57 = vsub.s32 0, %v1821_v32 }
 0x17a   :  { %1223 = vperm.xlu1 %1395, %v1045_v26  }
 0x17b   :  { %v621_v41 = vrot.slane %v616_v35, %v1829_v57  ;;  %v607_v52 = vrot.slane %v602_v42, %v1829_v57  ;;  %v614_v53 = vrot.slane %v609_v43, %v1829_v57  ;;  %v600_v55 = vrot.slane %v595_v45, %v1829_v57 }
 0x17c   :  { %v673_v6 = vrot.slane %v668_v54, %v1829_v57  ;;  %v659_v14 = vrot.slane %v654_v0, %v1829_v57  ;;  %v666_v15 = vrot.slane %v661_v3, %v1829_v57  ;;  %v652_v24 = vrot.slane %v647_v9, %v1829_v57 }
 0x17d   :  { %v783_v35 = vshrl.u32 %v1343_v7, 16  ;;  %v711_v43 = vpack.i.b16 %v1340_v25, %v1340_v25 }
 0x17f   :  { %v784_v49 = vpack.i.b16 %v783_v35, %v783_v35  ;;  %v716_v54 = vrot.slane %v711_v43, %v1854_v17 }
 0x19e   :  { %v1819_v29 = vpop.permute.xlu1 %794  ;;  %v565_v30 = vpop.permute.xlu0 %564 }
 0x1a2   :  { %v1823_v2 = vpop.permute.xlu1 %798  ;;  %v569_v33 = vpop.permute.xlu0 %568 }
 0x1a6   :  { %v1831_v39 = vpop.permute.xlu1 %862  ;;  %v629_v40 = vpop.permute.xlu0 %628 }
 0x1aa   :  { %v560_v46 = vpop.permute.xlu1 %559  ;;  %v633_v47 = vpop.permute.xlu0 %632 }
 0x1ab   :  { %v573_v48 = vsel %vm570_vm11, %v569_v33, %v560_v46  ;;  %v580_v59 = vsel %vm570_vm11, %v560_v46, %v565_v30  ;;  %v815_v46 = vld [vmem:[%s1982_s4 + $0x8] sm:$0x44] }
 0x1ac   :  { %v625_v51 = vmul.bf16 %v621_v41, %v573_v48  ;;  %v622_v8 = vmul.bf16 %v600_v55, %v580_v59  ;;  %v725_v41 = vpack.i.b16 %v1342_v20, %v1342_v20  ;;  %v1345_v55 = vcombine.high %v814_v34, %v814_v34 }
 0x1ad   :  { %v1347_v58 = vcombine.high %v815_v46, %v815_v46  ;;  %v1346_v0 = vcombine.low %v815_v46, %v815_v46 }
 0x1ae   :  { %v567_v60 = vpop.permute.xlu1 %566  ;;  %1111 = vmatprep.subr.bf16.mxu1 %v625_v51  ;;  %v1842_v61 = vpop.permute.xlu0 %680  ;;  %v730_v51 = vrot.slane %v725_v41, %v1854_v17 }
 0x1af   :  { %v571_v62 = vsel %vm570_vm11, %v565_v30, %v567_v60  ;;  %v572_v63 = vsel %vm570_vm11, %v567_v60, %v569_v33  ;;  %v718_v33 = vpack.i.b16 %v1341_v1, %v1341_v1 }
 0x1b0   :  { %v623_v4 = vmul.bf16 %v607_v52, %v571_v62  ;;  %v624_v5 = vmul.bf16 %v614_v53, %v572_v63  ;;  %v769_v52 = vshrl.u32 %v1341_v1, 16  ;;  %v776_v53 = vshrl.u32 %v1342_v20, 16 }
 0x1b1   :  { %v723_v48 = vrot.slane %v718_v33, %v1854_v17  ;;  %v843_v1 = vshrl.u32 %v1346_v0, 16 }
 0x1b2   :  { %v627_v10 = vpop.permute.xlu1 %626  ;;  %1068 = vmatprep.subr.bf16.mxu0 %v623_v4  ;;  %1112 = vmatpush1.bf16.msra.mxu1 %v624_v5  ;;  %v685_v11 = vpop.permute.xlu0 %684  ;;  %v789_v5 = vrot.slane %v784_v49, %v1854_v17  ;;  %v770_v9 = vpack.i.b16 %v769_v52, %v769_v52 }
 0x1b3   :  { %v637_v13 = vsel %vm634_vm10, %v633_v47, %v627_v10  ;;  %1069 = vmatpush1.bf16.msra.mxu0 %v622_v8  ;;  %v644_v26 = vsel %vm634_vm10, %v627_v10, %v629_v40  ;;  %v777_v10 = vpack.i.b16 %v776_v53, %v776_v53  ;;  %v844_v41 = vpack.i.b16 %v843_v1, %v843_v1 }
 0x1b4   :  { %v677_v16 = vmul.bf16 %v673_v6, %v637_v13  ;;  %v674_v42 = vmul.bf16 %v652_v24, %v644_v26  ;;  %v882_v6 = vld [vmem:[%s1982_s4] sm:$0x88]  ;;  %v835_v13 = vshrl.u32 %v1345_v55, 16  ;;  %v832_v24 = vsub.s32 2, %v1821_v32 }
 0x1b5   :  { %v1889_v19 = vcombine.low %v882_v6, %v882_v6  ;;  %v1349_v26 = vcombine.high %v882_v6, %v882_v6 }
 0x1b6   :  { %v631_v27 = vpop.permute.xlu1 %630  ;;  %1113 = vmatprep.subr.bf16.mxu1 %v677_v16  ;;  %v1858_v28 = vpop.permute.xlu0 %744 }
 0x1b7   :  { %v635_v30 = vsel %vm634_vm10, %v629_v40, %v631_v27  ;;  %v636_v31 = vsel %vm634_vm10, %v631_v27, %v633_v47  ;;  %v1344_v40 = vcombine.low %v814_v34, %v814_v34  ;;  %v836_v34 = vpack.i.b16 %v835_v13, %v835_v13 }
 0x1b8   :  { %v675_v36 = vmul.bf16 %v659_v14, %v635_v30  ;;  %v676_v37 = vmul.bf16 %v666_v15, %v636_v31  ;;  %v763_v14 = vpack.i.b16 %v762_v56, %v762_v56  ;;  %v851_v15 = vshrl.u32 %v1347_v58, 16 }
 0x1b9   :  { %v827_v62 = vshrl.u32 %v1344_v40, 16  ;;  %v775_v30 = vrot.slane %v770_v9, %v1854_v17  ;;  %v782_v31 = vrot.slane %v777_v10, %v1854_v17  ;;  %v895_v43 = vpack.i.b16 %v1889_v19, %v1889_v19 }
 0x1ba   :  { %v679_v44 = vpop.permute.xlu1 %678  ;;  %1070 = vmatprep.subr.bf16.mxu0 %v675_v36  ;;  %1114 = vmatpush1.bf16.msra.mxu1 %v676_v37  ;;  %v1866_v45 = vpop.permute.xlu0 %748  ;;  %v768_v35 = vrot.slane %v763_v14, %v1854_v17  ;;  %v852_v36 = vpack.i.b16 %v851_v15, %v851_v15  ;;  %v1906_v17 = vsub.s32 3, %v1821_v32  ;;  %v953_v55 = vshrl.u32 %v1349_v26, 16 }
 0x1bb   :  { %v689_v47 = vsel %vm686_vm12, %v685_v11, %v679_v44  ;;  %1071 = vmatpush1.bf16.msra.mxu0 %v674_v42  ;;  %v696_v59 = vsel %vm686_vm12, %v679_v44, %v1842_v61  ;;  %v828_v20 = vpack.i.b16 %v827_v62, %v827_v62  ;;  %v841_v58 = vrot.slane %v836_v34, %v832_v24 }
 0x1bc   :  { %v741_v50 = vmul.bf16 %v737_v38, %v689_v47  ;;  %v738_v12 = vmul.bf16 %v716_v54, %v696_v59  ;;  %v902_v47 = vpack.i.b16 %v1349_v26, %v1349_v26  ;;  %v857_v53 = vrot.slane %v852_v36, %v832_v24 }
 0x1bd   :  { %v833_v56 = vrot.slane %v828_v20, %v832_v24  ;;  %v849_v62 = vrot.slane %v844_v41, %v832_v24  ;;  %v946_v0 = vshrl.u32 %v1889_v19, 16  ;;  %v954_v10 = vpack.i.b16 %v953_v55, %v953_v55 }
 0x1be   :  { %v683_v60 = vpop.permute.xlu1 %682  ;;  %1115 = vmatprep.subr.bf16.mxu1 %v741_v50  ;;  %v1877_v63 = vpop.permute.xlu0 %796 }
 0x1bf   :  { %v687_v3 = vsel %vm686_vm12, %v1842_v61, %v683_v60  ;;  %v688_v4 = vsel %vm686_vm12, %v683_v60, %v685_v11  ;;  %v883_v61 = vld [vmem:[%s1982_s4 + $0x8] sm:$0x88]  ;;  %v804_v60 = vsel %vm802_vm14, %v1877_v63, %v1823_v2  ;;  %v947_v1 = vpack.i.b16 %v946_v0, %v946_v0 }
 0x1c0   :  { %v739_v7 = vmul.bf16 %v723_v48, %v687_v3  ;;  %v740_v8 = vmul.bf16 %v730_v51, %v688_v4  ;;  %v1350_v33 = vcombine.low %v883_v61, %v883_v61  ;;  %v1351_v37 = vcombine.high %v883_v61, %v883_v61  ;;  %v998_v61 = vld [vmem:[%s1982_s4 + $0x10] sm:$0x11] }
 0x1c1   :  { %v900_v3 = vrot.slane %v895_v43, %v1906_v17  ;;  %v907_v4 = vrot.slane %v902_v47, %v1906_v17  ;;  %v859_v13 = vmul.bf16 %v841_v58, %v804_v60  ;;  %v1352_v26 = vcombine.low %v998_v61, %v998_v61 }
 0x1c2   :  { %v743_v11 = vpop.permute.xlu1 %742  ;;  %1072 = vmatprep.subr.bf16.mxu0 %v739_v7  ;;  %1116 = vmatpush1.bf16.msra.mxu1 %v740_v8  ;;  %v801_v16 = vpop.permute.xlu0 %800  ;;  %v909_v50 = vpack.i.b16 %v1350_v33, %v1350_v33  ;;  %v967_v51 = vshrl.u32 %v1351_v37, 16  ;;  %v916_v54 = vpack.i.b16 %v1351_v37, %v1351_v37  ;;  %v960_v32 = vshrl.u32 %v1350_v33, 16 }
 0x1c3   :  { %v753_v25 = vsel %vm750_vm13, %v1866_v45, %v743_v11  ;;  %1073 = vmatpush1.bf16.msra.mxu0 %v738_v12  ;;  %v760_v38 = vsel %vm750_vm13, %v743_v11, %v1858_v28  ;;  %v805_v7 = vsel %vm802_vm14, %v1823_v2, %v801_v16  ;;  %v803_v12 = vsel %vm802_vm14, %v1819_v29, %v1877_v63 }
 0x1c4   :  { %v793_v27 = vmul.bf16 %v789_v5, %v753_v25  ;;  %v790_v52 = vmul.bf16 %v768_v35, %v760_v38  ;;  %v914_v5 = vrot.slane %v909_v50, %v1906_v17  ;;  %v968_v6 = vpack.i.b16 %v967_v51, %v967_v51 }
 0x1c5   :  { %v921_v9 = vrot.slane %v916_v54, %v1906_v17  ;;  %v961_v15 = vpack.i.b16 %v960_v32, %v960_v32  ;;  %v860_v63 = vmul.bf16 %v849_v62, %v805_v7  ;;  %v858_v20 = vmul.bf16 %v833_v56, %v803_v12 }
 0x1c6   :  { %v747_v42 = vpop.permute.xlu1 %746  ;;  %1117 = vmatprep.subr.bf16.mxu1 %v793_v27  ;;  %v865_v44 = vpop.permute.xlu0 %864 }
 0x1c7   :  { %v751_v40 = vsel %vm750_vm13, %v1858_v28, %v747_v42  ;;  %v752_v46 = vsel %vm750_vm13, %v747_v42, %v1866_v45  ;;  %v812_v28 = vsel %vm802_vm14, %v801_v16, %v1819_v29  ;;  %v1353_v29 = vcombine.high %v998_v61, %v998_v61 }
 0x1c8   :  { %v791_v48 = vmul.bf16 %v775_v30, %v751_v40  ;;  %v792_v49 = vmul.bf16 %v782_v31, %v752_v46  ;;  %v861_v8 = vmul.bf16 %v857_v53, %v812_v28  ;;  %v973_v16 = vrot.slane %v968_v6, %v1906_v17 }
 0x1c9   :  { %v871_v27 = vsel %vm870_vm15, %v1831_v39, %v865_v44  ;;  %v959_v31 = vrot.slane %v954_v10, %v1906_v17  ;;  %v966_v33 = vrot.slane %v961_v15, %v1906_v17  ;;  %v1018_v37 = vpack.i.b16 %v1353_v29, %v1353_v29 }
 0x1ca   :  { %v867_v59 = vpop.permute.xlu1 %866  ;;  %1074 = vmatprep.subr.bf16.mxu0 %v791_v48  ;;  %1118 = vmatpush1.bf16.msra.mxu1 %v792_v49  ;;  %v869_v45 = vpop.permute.xlu0 %868  ;;  %v922_v43 = vmul.bf16 %v900_v3, %v871_v27  ;;  %v1011_v46 = vpack.i.b16 %v1352_v26, %v1352_v26 }
 0x1cb   :  { %1075 = vmatpush1.bf16.msra.mxu0 %v790_v52  ;;  %1119 = vmatprep.subr.bf16.mxu1 %v1770_v23  ;;  %v999_v23 = vld [vmem:[%s1982_s4 + $0x18] sm:$0x11]  ;;  %v872_v11 = vsel %vm870_vm15, %v865_v44, %v867_v59  ;;  %v873_v24 = vsel %vm870_vm15, %v867_v59, %v869_v45  ;;  %v952_v44 = vrot.slane %v947_v1, %v1906_v17 }
 0x1cc   :  { %1076 = vmatprep.subr.bf16.mxu0 %v1766_v22  ;;  %v880_v22 = vsel %vm870_vm15, %v869_v45, %v1831_v39  ;;  %v1354_v19 = vcombine.low %v999_v23, %v999_v23  ;;  %v923_v30 = vmul.bf16 %v907_v4, %v872_v11  ;;  %v924_v38 = vmul.bf16 %v914_v5, %v873_v24 }
 0x1cd   :  { %v925_v25 = vmul.bf16 %v921_v9, %v880_v22  ;;  %v1023_v52 = vrot.slane %v1018_v37, %v1829_v57  ;;  %v1016_v55 = vrot.slane %v1011_v46, %v1829_v57 }
 0x1ce   :  { %v927_v14 = vpop.permute.xlu1 %926  ;;  %1120 = vmatpush1.bf16.msra.mxu1 %v1764_v21  ;;  %v929_v2 = vpop.permute.xlu0 %928  ;;  %v1355_v21 = vcombine.high %v999_v23, %v999_v23  ;;  %v1025_v42 = vpack.i.b16 %v1354_v19, %v1354_v19 }
 0x1cf   :  { %1077 = vmatpush1.bf16.msra.mxu0 %v1762_v18  ;;  %1121 = vmatprep.subr.bf16.mxu1 %v861_v8  ;;  %v935_v47 = vsel %vm934_vm0, %v927_v14, %v929_v2 }
 0x1d0   :  { %1078 = vmatprep.subr.bf16.mxu0 %v859_v13  ;;  %v1032_v39 = vpack.i.b16 %v1355_v21, %v1355_v21  ;;  %v1030_v53 = vrot.slane %v1025_v42, %v1829_v57  ;;  %v974_v54 = vmul.bf16 %v952_v44, %v935_v47 }
 0x1d2   :  { %v931_v18 = vpop.permute.xlu1 %930  ;;  %1122 = vmatpush1.bf16.msra.mxu1 %v860_v63  ;;  %v933_v34 = vpop.permute.xlu0 %932  ;;  %v1037_v17 = vrot.slane %v1032_v39, %v1829_v57  ;;  %v1503_v57 = vld [vmem:[%s1980_s2] ss:$8 sps:$4 sm:$0xff]  }
 0x1d3   :  { %v936_v35 = vsel %vm934_vm0, %v929_v2, %v931_v18  ;;  %v944_v36 = vsel %vm934_vm0, %v933_v34, %v927_v14  ;;  %1079 = vmatpush1.bf16.msra.mxu0 %v858_v20  ;;  %1123 = vmatprep.subr.bf16.mxu1 %v925_v25  ;;  %v937_v40 = vsel %vm934_vm0, %v931_v18, %v933_v34 }
 0x1d4   :  { %v977_v41 = vmul.bf16 %v973_v16, %v944_v36  ;;  %1080 = vmatprep.subr.bf16.mxu0 %v923_v30  ;;  %v975_v48 = vmul.bf16 %v959_v31, %v936_v35  ;;  %v976_v51 = vmul.bf16 %v966_v33, %v937_v40 }
 0x1d6   :  { %v979_v49 = vpop.permute.xlu1 %978  ;;  %1124 = vmatpush1.bf16.msra.mxu1 %v924_v38  ;;  %v981_v50 = vpop.permute.xlu0 %980 }
 0x1d7   :  { %1081 = vmatpush1.bf16.msra.mxu0 %v922_v43  ;;  %1125 = vmatprep.subr.bf16.mxu1 %v977_v41  ;;  %v987_v56 = vsel %vm986_vm1, %v979_v49, %v981_v50 }
 0x1d8   :  { %1082 = vmatprep.subr.bf16.mxu0 %v975_v48  ;;  %v1038_v3 = vmul.bf16 %v1016_v55, %v987_v56 }
 0x1da   :  { %v983_v58 = vpop.permute.xlu1 %982  ;;  %1126 = vmatpush1.bf16.msra.mxu1 %v976_v51  ;;  %v985_v28 = vpop.permute.xlu0 %984 }
 0x1db   :  { %v988_v59 = vsel %vm986_vm1, %v981_v50, %v983_v58  ;;  %v989_v45 = vsel %vm986_vm1, %v983_v58, %v985_v28  ;;  %v996_v32 = vsel %vm986_vm1, %v985_v28, %v979_v49  ;;  %1083 = vmatpush1.bf16.msra.mxu0 %v974_v54 }
 0x1dc   :  { %v1039_v60 = vmul.bf16 %v1023_v52, %v988_v59  ;;  %v1040_v62 = vmul.bf16 %v1030_v53, %v989_v45  ;;  %v1041_v0 = vmul.bf16 %v1037_v17, %v996_v32 }
 0x1de   :  { %1084 = vmatprep.subr.bf16.mxu0 %v1039_v60  ;;  %1127 = vmatprep.subr.bf16.mxu1 %v1041_v0 }
 0x1df   :  { %1085 = vmatpush1.bf16.msra.mxu0 %v1038_v3  ;;  %1128 = vmatpush1.bf16.msra.mxu1 %v1040_v62 }
 0x1e2   :  { %1101 = vmatmul.mubr.bf16.vlgmr.msra.gmra.mrb[4].mxu0 %v1503_v57  ;;  %1144 = vmatmul.mubr.bf16.vlgmr.msra.gmra.mrb[4].mxu1 %v1503_v57 }
 0x1eb   :  { %v1049_v4 = vpop.permute.xlu1 %1048  ;;  %v1054_v5 = vpop.permute.xlu0 %1053 }
 0x1f0   :  { %v1204_v37 = vpop.permute.xlu1 %1203  ;;  %v1220_v48 = vpop.permute.xlu0 %1219 }
 0x1f4   :  { %v1208_v47 = vpop.permute.xlu1 %1207 }
 0x1f9   :  { %v1224_v3 = vpop.permute.xlu1 %1223 }
 0x2b5   :  { %v1102_v6 = vpop.f32.mrb[4].mxu0  ;;  %v1145_v7 = vpop.f32.mrb[4].mxu1 }
 0x2b6   :  { %v1103_v8 = vadd.f32 %v1102_v6, %v1049_v4  ;;  %v1146_v9 = vadd.f32 %v1145_v7, %v1049_v4  ;;  %v1104_v10 = vpop.f32.mrb[5].mxu0  ;;  %v1147_v23 = vpop.f32.mrb[5].mxu1 }
 0x2b7   :  { %v1105_v12 = vadd.f32 %v1104_v10, %v1049_v4  ;;  %v1148_v13 = vadd.f32 %v1147_v23, %v1049_v4  ;;  %v1106_v22 = vpop.f32.mrb[6].mxu0  ;;  %v1149_v14 = vpop.f32.mrb[6].mxu1 }
 0x2b8   :  { %v1162_v2 = vmin.f32 %v1103_v8, 0.0  ;;  %v1164_v15 = vmin.f32 %v1146_v9, 0.0  ;;  %v1108_v61 = vpop.f32.mrb[7].mxu0  ;;  %v1151_v11 = vpop.f32.mrb[7].mxu1  ;;  %v1107_v19 = vadd.f32 %v1106_v22, %v1054_v5  ;;  %v1150_v21 = vadd.f32 %v1149_v14, %v1054_v5 }
 0x2b9   :  { %v1163_v1 = vmin.f32 %v1105_v12, 0.0  ;;  %v1165_v29 = vmin.f32 %v1148_v13, 0.0  ;;  %v1109_v25 = vadd.f32 %v1108_v61, %v1054_v5  ;;  %v1958_v26 = vadd.f32 %v1151_v11, %v1054_v5 }
 0x2ba   :  { %v1170_v63 = vmul.f32 1.442695, %v1162_v2  ;;  %v1174_v16 = vmul.f32 1.442695, %v1164_v15  ;;  %v1166_v27 = vmin.f32 %v1107_v19, 0.0  ;;  %v1168_v30 = vmin.f32 %v1150_v21, 0.0 }
 0x2bb   :  { %v1172_v20 = vmul.f32 1.442695, %v1163_v1  ;;  %v1176_v24 = vmul.f32 1.442695, %v1165_v29  ;;  %v1167_v31 = vmin.f32 %v1109_v25, 0.0  ;;  %v1169_v34 = vmin.f32 %v1958_v26, 0.0 }
 0x2bc   :  { %1520 = vpow2.f32 %v1170_v63  ;;  %v1178_v18 = vmul.f32 1.442695, %v1166_v27  ;;  %v1182_v33 = vmul.f32 1.442695, %v1168_v30  ;;  %vm1154_vm2 = vcmp.gt.f32.partialorder %v1103_v8, 0.0 }
 0x2bd   :  { %1522 = vpow2.f32 %v1174_v16  ;;  %v1180_v35 = vmul.f32 1.442695, %v1167_v31  ;;  %v1184_v36 = vmul.f32 1.442695, %v1169_v34  ;;  %vm1156_vm3 = vcmp.gt.f32.partialorder %v1146_v9, 0.0 }
 0x2be   :  { %1524 = vpow2.f32 %v1172_v20  ;;  %vm1155_vm4 = vcmp.gt.f32.partialorder %v1105_v12, 0.0  ;;  %vm1157_vm5 = vcmp.gt.f32.partialorder %v1148_v13, 0.0  ;;  %vm1158_vm6 = vcmp.gt.f32.partialorder %v1107_v19, 0.0 }
 0x2bf   :  { %1526 = vpow2.f32 %v1176_v24  ;;  %vm1159_vm7 = vcmp.gt.f32.partialorder %v1109_v25, 0.0  ;;  %vm1160_vm8 = vcmp.gt.f32.partialorder %v1150_v21, 0.0  ;;  %vm1161_vm9 = vcmp.gt.f32.partialorder %v1958_v26, 0.0 }
 0x2c0   :  { %1528 = vpow2.f32 %v1178_v18 }
 0x2c1   :  { %1530 = vpow2.f32 %v1182_v33 }
 0x2c2   :  { %1532 = vpow2.f32 %v1180_v35 }
 0x2c3   :  { %1534 = vpow2.f32 %v1184_v36 }
 0x2c6   :  { %v1521_v38 = vpop.eup %1520 }
 0x2c7   :  { %v1523_v41 = vpop.eup %1522  ;;  %v1360_v42 = vadd.f32 -1.0, %v1521_v38 }
 0x2c8   :  { %v1525_v39 = vpop.eup %1524  ;;  %v1362_v43 = vadd.f32 -1.0, %v1523_v41 }
 0x2c9   :  { %v1527_v44 = vpop.eup %1526  ;;  %v1194_v40 = vsel %vm1154_vm2, %v1103_v8, %v1360_v42  ;;  %v1361_v46 = vadd.f32 -1.0, %v1525_v39 }
 0x2ca   :  { %v1529_v49 = vpop.eup %1528  ;;  %v1196_v50 = vsel %vm1156_vm3, %v1146_v9, %v1362_v43  ;;  %v1363_v51 = vadd.f32 -1.0, %v1527_v44  ;;  %v1210_v52 = vmul.f32 %v1204_v37, %v1194_v40 }
 0x2cb   :  { %v1531_v53 = vpop.eup %1530  ;;  %v1195_v17 = vsel %vm1155_vm4, %v1105_v12, %v1361_v46  ;;  %v1212_v54 = vmul.f32 %v1204_v37, %v1196_v50  ;;  %v1364_v55 = vadd.f32 -1.0, %v1529_v49 }
 0x2cc   :  { %v1533_v56 = vpop.eup %1532  ;;  %v1197_v58 = vsel %vm1157_vm5, %v1148_v13, %v1363_v51  ;;  %v1211_v28 = vmul.f32 %v1204_v37, %v1195_v17  ;;  %v1226_v59 = vadd.f32 %v1220_v48, %v1210_v52  ;;  %v1366_v45 = vadd.f32 -1.0, %v1531_v53 }
 0x2cd   :  { %v1535_v32 = vpop.eup %1534  ;;  %v1365_v60 = vadd.f32 -1.0, %v1533_v56  ;;  %v1213_v62 = vmul.f32 %v1204_v37, %v1197_v58  ;;  %v1228_v0 = vadd.f32 %v1220_v48, %v1212_v54  ;;  %v1198_v57 = vsel %vm1158_vm6, %v1107_v19, %v1364_v55 }
 0x2ce   :  { %v1367_v4 = vadd.f32 -1.0, %v1535_v32  ;;  %v1227_v5 = vadd.f32 %v1220_v48, %v1211_v28  ;;  %v1200_v6 = vsel %vm1160_vm8, %v1150_v21, %v1366_v45  ;;  %v1214_v7 = vmul.f32 %v1208_v47, %v1198_v57 }
 0x2cf   :  { %v1199_v8 = vsel %vm1159_vm7, %v1109_v25, %v1365_v60  ;;  %v1229_v9 = vadd.f32 %v1220_v48, %v1213_v62  ;;  %v1216_v10 = vmul.f32 %v1208_v47, %v1200_v6 }
 0x2d0   :  { %v1201_v23 = vsel %vm1161_vm9, %v1958_v26, %v1367_v4  ;;  %v1372_v12 = vpack.c.bf16 %v1227_v5, %v1226_v59  ;;  %v1215_v13 = vmul.f32 %v1208_v47, %v1199_v8  ;;  %v1230_v22 = vadd.f32 %v1224_v3, %v1214_v7 }
 0x2d1   :  { %v1373_v14 = vpack.c.bf16 %v1229_v9, %v1228_v0  ;;  %v1217_v2 = vmul.f32 %v1208_v47, %v1201_v23  ;;  %v1232_v15 = vadd.f32 %v1224_v3, %v1216_v10 }
 0x2d2   :  { %1258 = vst [vmem:[%s1983_s6] sm:$0xff] %v1372_v12  ;;  %v1231_v61 = vadd.f32 %v1224_v3, %v1215_v13 }
 0x2d3   :  { %1259 = vst [vmem:[%s1983_s6 + $0x8] sm:$0xff] %v1373_v14  ;;  %v1233_v11 = vadd.f32 %v1224_v3, %v1217_v2 }
 0x2d4   :  { %v1374_v1 = vpack.c.bf16 %v1231_v61, %v1230_v22 }
 0x2d5   :  { %v1375_v29 = vpack.c.bf16 %v1233_v11, %v1232_v15 }
 0x2d6   :  { %1260 = vst [vmem:[%s1983_s6 + $0x10] sm:$0xff] %v1374_v1 }
 0x2d7   :  { %1261 = vst [vmem:[%s1983_s6 + $0x18] sm:$0xff] %v1375_v29 }

// kernel: unet_forward.15
= control target key start
LH: loop header
LB: loop body
LE: loop exit
PB: predicated region body
PF: predicated region fallthrough
CT: control target
= control target key end

     0   :  { %s666_s12 = smov 0   ;;  %s668_s13 = smov 0   ;;  %s751_s0 = inlined_call_operand.vmem [shape: bf16[16,72], index: 0, kind: input, shape index: {}]   ;;  %s752_s1 = inlined_call_operand.vmem [shape: bf16[72,512], index: 1, kind: input, shape index: {}]   ;;  %s753_s2 = inlined_call_operand.vmem [shape: f32[16,3], index: 2, kind: input, shape index: {}]   ;;  %s754_s3 = inlined_call_operand.vmem [shape: f32[16,512], index: 3, kind: output, shape index: {}]  }
   0x1   :  { %s670_s14 = smov 0   ;;  %s672_s15 = smov 0  }
   0x2   :  { %s674_s16 = smov 0  }
   0x3 LB: > { %s25_s17 = sadd.s32 1, %s639_s15  ;;  %s517_s18 = sadd.s32 4294967295, %s643_s16   ;;  %s643_s16 = sphi %s674_s16, %s13_s16   ;;  %s639_s15 = sphi %s672_s15, %s759_s15   ;;  %s635_s14 = sphi %s670_s14, %s758_s14   ;;  %s631_s13 = sphi %s668_s13, %s757_s13   ;;  %s627_s12 = sphi %s666_s12, %s756_s12  }
   0x4   : > { %p27_p0 = scmp.ge.s32.totalorder %s25_s17, 2  ;;  %p67_p1 = scmp.ne.s32.totalorder %s631_s13, %s627_s12 }
   0x5   : > { %p68_p2 = scmp.eq.s32.totalorder %s643_s16, 0  ;;  %p118_p4 = scmp.eq.s32.totalorder %s517_s18, 1 }
   0x6   : > { %s761_s17 = smov (%p27_p0, %s25_s17), 0  ;;  %s60_s20 = sadd.s32 1, %s631_s13 }
   0x7   : > { %p69_p3 = por %p68_p2, %p67_p1  ;;  %s56_s19 = ssub.s32 %s639_s15, %s761_s17 }
   0x8   : > { %p58_p5 = scmp.eq.s32.totalorder %s56_s19, 0  ;;  %p701_p6 = por %p118_p4, %p67_p1 }
   0x9   : > { %p521_p7 = scmp.ge.s32.totalorder %s643_s16, 2 }
   0xa   : > { %s706_s22 = scalar_select %p58_p5, %s631_s13, %s60_s20  }
   0xb   : > { %150 = sbr.rel (%p521_p7) target bundleno = 27 (0x1b), region = 24 }
  0x12   : > { %153 = sbr.rel (!%p69_p3) target bundleno = 27 (0x1b), region = 28  ;;  %s155_s23 = sand.u32 (%p69_p3), 1, %s631_s13  }
  0x13   : > { %s544_s24 = sshll.u32 (%p69_p3), %s639_s15, 3  ;;  %s546_s25 = smul.u32 (%p69_p3), 72, %s155_s23 }
  0x14   : > { %s163_s28 = scalar_lea.vmem (%p69_p3), %s752_s1, %s544_s24 }
  0x15   : > { %v207_v0 = vld [vmem:[%s163_s28] sm:$0xff] (%p69_p3)  ;;  %v209_v1 = vld [vmem:[%s163_s28 + $0x10] sm:$0xff] (%p69_p3)  ;;  %s157_s29 = scalar_lea.vmem (%p69_p3), [#allocation2], %s546_s25 }
  0x16   : > { %v211_v2 = vld [vmem:[%s163_s28 + $0x20] sm:$0xff] (%p69_p3)  ;;  %v213_v3 = vld [vmem:[%s163_s28 + $0x30] sm:$0xff] (%p69_p3)  ;;  %208 = vst [vmem:[%s157_s29] sm:$0xff] (%p69_p3), %v207_v0  ;;  %210 = vst [vmem:[%s157_s29 + $0x8] sm:$0xff] (%p69_p3), %v209_v1 }
  0x17   : > { %v215_v4 = vld [vmem:[%s163_s28 + $0x40] sm:$0xff] (%p69_p3)  ;;  %v217_v5 = vld [vmem:[%s163_s28 + $0x50] sm:$0xff] (%p69_p3)  ;;  %212 = vst [vmem:[%s157_s29 + $0x10] sm:$0xff] (%p69_p3), %v211_v2  ;;  %214 = vst [vmem:[%s157_s29 + $0x18] sm:$0xff] (%p69_p3), %v213_v3 }
  0x18   : > { %216 = vst [vmem:[%s157_s29 + $0x20] sm:$0xff] (%p69_p3), %v215_v4  ;;  %218 = vst [vmem:[%s157_s29 + $0x28] sm:$0xff] (%p69_p3), %v217_v5  ;;  %v219_v6 = vld [vmem:[%s163_s28 + $0x60] sm:$0xff] (%p69_p3)  ;;  %v221_v7 = vld [vmem:[%s163_s28 + $0x70] sm:$0xff] (%p69_p3) }
  0x19   : > { %v223_v8 = vld [vmem:[%s163_s28 + $0x80] sm:$0xff]  ;;  %220 = vst [vmem:[%s157_s29 + $0x30] sm:$0xff] %v219_v6  ;;  %222 = vst [vmem:[%s157_s29 + $0x38] sm:$0xff] %v221_v7 }
  0x1a   : > { %224 = vst [vmem:[%s157_s29 + $0x40] sm:$0xff] %v223_v8 }
  0x1b PF: > { %p524_p8 = scmp.ge.s32.totalorder %s643_s16, 1  ;;  %p229_p9 = scmp.lt.s32.totalorder %s643_s16, 3 }
  0x1d   : > { %p230_p10 = pnand %p524_p8, %p229_p9 }
  0x1e   : > { %s236_s30 = sand.u32 (!%p230_p10), 1, %s627_s12   ;;  %v645_v9 = vmov (!%p230_p10), 0   ;;  %v281_v10 = vld [vmem:[%s753_s2] sm:$0xff] (!%p230_p10)  ;;  %v282_v11 = vld [vmem:[%s753_s2 + $0x8] sm:$0xff] (!%p230_p10)  ;;  %vm347_vm0 = vcmask (!%p230_p10), 1043456   ;;  %vm343_vm1 = vcmask (!%p230_p10), 588800  }
  0x1f   : > { %233 = sbr.rel (%p230_p10) target bundleno = 282 (0x11a), region = 66  ;;  %386 = vmatprep.mubr.bf16.mxu0 (!%p230_p10), %v645_v9  ;;  %589 = vset.pattern.permute.xlu0 (!%p230_p10), %v645_v9  ;;  %v604_v24 = vld [vmem:[%s751_s0] sm:$0xff] (!%p230_p10)   ;;  %s525_s18 = sshll.u32 (!%p230_p10), %s236_s30, 5 }
  0x20   : > { %s547_s4 = smul.u32 (!%p230_p10), 72, %s236_s30  ;;  %285 = vperm.xlu0 (!%p230_p10), %589, %v281_v10   ;;  %s261_s19 = scalar_lea.vmem (!%p230_p10), [#allocation3], %s525_s18 }
  0x22   : > { %s238_s9 = scalar_lea.vmem (!%p230_p10), [#allocation2], %s547_s4 }
  0x23   : > { %v590_v12 = vld [vmem:[%s238_s9 + $0x4] ss:$8 sps:$4 sm:$0xff] (!%p230_p10)   ;;  %v592_v13 = vld [vmem:[%s238_s9] ss:$8 sps:$4 sm:$0xff] (!%p230_p10)   ;;  %v593_v14 = vld [vmem:[%s238_s9 + $0x14] ss:$8 sps:$4 sm:$0xff] (!%p230_p10)  }
  0x24   : > { %354 = vmatprep.subr.bf16.mxu0 (!%p230_p10), %v590_v12  ;;  %290 = vperm.xlu0 (!%p230_p10), %589, %v282_v11   ;;  %v595_v15 = vld [vmem:[%s238_s9 + $0x10] ss:$8 sps:$4 sm:$0xff] (!%p230_p10)   ;;  %v596_v16 = vld [vmem:[%s238_s9 + $0x24] ss:$8 sps:$4 sm:$0xff] (!%p230_p10)   ;;  %v598_v17 = vld [vmem:[%s238_s9 + $0x20] ss:$8 sps:$4 sm:$0xff] (!%p230_p10)  }
  0x25   : > { %355 = vmatpush1.bf16.msra.mxu0 (!%p230_p10), %v592_v13  ;;  %v599_v18 = vld [vmem:[%s238_s9 + $0x34] ss:$8 sps:$4 sm:$0xff] (!%p230_p10)   ;;  %v280_v19 = vld [vmem:[%s238_s9 + $0x40] sm:$0xff] (!%p230_p10)  ;;  %v601_v20 = vld [vmem:[%s238_s9 + $0x30] ss:$8 sps:$4 sm:$0xff] (!%p230_p10)  }
  0x26   : > { %356 = vmatprep.subr.bf16.mxu0 %v593_v14  ;;  %v536_v21 = vcombine.high %v280_v19, %v280_v19  ;;  %v535_v22 = vcombine.low %v280_v19, %v280_v19  ;;  %s545_s12 = sshll.u32 (%p701_p6), %s635_s14, 4 }
  0x27   : > { %s410_s24 = scalar_lea.vmem (%p701_p6), %s754_s3, %s545_s12 }
  0x28   : > { %v349_v23 = vsel %vm347_vm0, %v535_v22, 0 }
  0x29   : > { %357 = vmatpush1.bf16.msra.mxu0 %v595_v15 }
  0x2a   : > { %358 = vmatprep.subr.bf16.mxu0 %v596_v16 }
  0x2d   : > { %359 = vmatpush1.bf16.msra.mxu0 %v598_v17 }
  0x2e   : > { %360 = vmatprep.subr.bf16.mxu0 %v599_v18 }
  0x31   : > { %361 = vmatpush1.bf16.msra.mxu0 %v601_v20 }
  0x32   : > { %537 = vmatprep.subr.msk.bf16.mxu0 %vm347_vm0, %v536_v21 }
  0x35   : > { %363 = vmatpush1.bf16.msra.mxu0 %v349_v23 }
  0x38   : > { %538 = vmatmul.mubr.msk.bf16.vlgmr.msra.gmra.mrb[0].mxu0 %vm343_vm1, %v604_v24 }
  0x9f   : > { %v286_v25 = vpop.permute.xlu0 %285 }
  0xa3   : > { %v291_v29 = vpop.permute.xlu0 %290 }
 0x10b   : > { %v388_v26 = vpop.f32.mrb[0].mxu0  ;;  %407 = sbr.rel (!%p701_p6) target bundleno = 282 (0x11a), region = 74 }
 0x10c   : > { %v389_v27 = vadd.f32 %v388_v26, %v286_v25  ;;  %v390_v28 = vpop.f32.mrb[1].mxu0 }
 0x10d   : > { %v391_v30 = vadd.f32 %v390_v28, %v286_v25  ;;  %v392_v31 = vpop.f32.mrb[2].mxu0 }
 0x10e   : > { %397 = vst [vmem:[%s261_s19] sm:$0xff] %v389_v27  ;;  %v393_v32 = vadd.f32 %v392_v31, %v291_v29  ;;  %v394_v33 = vpop.f32.mrb[3].mxu0 }
 0x10f   : > { %398 = vst [vmem:[%s261_s19 + $0x8] sm:$0xff] %v391_v30  ;;  %v395_v34 = vadd.f32 %v394_v33, %v291_v29 }
 0x110   : > { %399 = vst [vmem:[%s261_s19 + $0x10] sm:$0xff] %v393_v32 }
 0x111   : > { %400 = vst [vmem:[%s261_s19 + $0x18] sm:$0xff] %v395_v34 }
 0x115   : > { %v423_v35 = vld [vmem:[%s261_s19] sm:$0xff] }
 0x116   : > { %v425_v36 = vld [vmem:[%s261_s19 + $0x8] sm:$0xff]  ;;  %424 = vst [vmem:[%s410_s24] sm:$0xff] %v423_v35 }
 0x117   : > { %v427_v37 = vld [vmem:[%s261_s19 + $0x10] sm:$0xff]  ;;  %426 = vst [vmem:[%s410_s24 + $0x8] sm:$0xff] %v425_v36 }
 0x118   : > { %v429_v38 = vld [vmem:[%s261_s19 + $0x18] sm:$0xff]  ;;  %428 = vst [vmem:[%s410_s24 + $0x20] sm:$0xff] %v427_v37 }
 0x119   : > { %430 = vst [vmem:[%s410_s24 + $0x28] sm:$0xff] %v429_v38 }
 0x11a PF: > { %s13_s16 = sadd.s32 1, %s643_s16   ;;  %s756_s12 = smov %s631_s13 }
 0x11b   : > { %p10_p11 = scmp.ge.s32.totalorder %s13_s16, 4   ;;  %s757_s13 = smov %s706_s22 }
 0x11c   : > { %s758_s14 = smov %s639_s15  ;;  %s759_s15 = smov %s761_s17 }
 0x11d   :  { %12 = sbr.rel (!%p10_p11) target bundleno = 3 (0x3), region = 131 }

</bundles_post_ra>
